<compile_context>
chip_gen: v7x
topology: tpu7x:2x2x1
jax: 0.10.0
libtpu: 0.0.40
codegen_flags: <defaults>
</compile_context>

<pallas_src>
import math
import functools

import jax
import jax.numpy as jnp
from jax.experimental import pallas as pl
from jax.experimental.pallas import tpu as pltpu

PADDING_IDX = 2
LN_EPS = 1e-5
NEG_INF = -1e30
VMEM_LIMIT = 32 * 1024 * 1024   # explicit, safe on v5e/v6e/v7x


# ----------------------------- in-kernel helpers ----------------------------

def _layer_norm(y, gamma, beta):
    mean = jnp.mean(y, axis=-1, keepdims=True)
    var = jnp.mean(jnp.square(y - mean), axis=-1, keepdims=True)
    return (y - mean) * jax.lax.rsqrt(var + LN_EPS) * gamma + beta


def _admin_ln(fx, x, omega, gamma, beta):
    # admin residual: omega * f(x) + x, followed by LayerNorm (eps=1e-5), f32.
    return _layer_norm(fx * omega + x, gamma, beta)


def _ffn(x, w1, b1, w2, b2):
    h = jnp.dot(x.astype(jnp.bfloat16), w1,
                preferred_element_type=jnp.float32) + b1
    h = jnp.maximum(h, 0.0)
    return jnp.dot(h.astype(jnp.bfloat16), w2,
                   preferred_element_type=jnp.float32) + b2


def _mha_core(q, k, v, mask, wo, n_heads):
    """Multi-head attention from already-projected q/k/v ([S, D] f32).

    mask is [Sq, Skv] f32, 1.0 where the score is masked (query padding, key
    padding or causal).  Fully masked query rows yield all-zero attention
    weights, matching torch's softmax -> nan -> masked_fill(nan, 0) behaviour.
    """
    Sq, D = q.shape
    dk = D // n_heads
    scale = 1.0 / math.sqrt(dk)
    masked = mask > 0.5

    qb = q.astype(jnp.bfloat16)
    kb = k.astype(jnp.bfloat16)
    vb = v.astype(jnp.bfloat16)

    # TODO(synk): heads kept as a static 4-way unrolled loop; a single
    # head-batched dot_general would need a [S,H,dk]->[H,S,dk] transpose whose
    # Mosaic lowering is not guaranteed at these tiny, non-(8,128)-aligned
    # shapes.  The wide fused QKV projection above carries the MXU win.
    heads = []
    for h in range(n_heads):
        qh = qb[:, h * dk:(h + 1) * dk]
        kh = kb[:, h * dk:(h + 1) * dk]
        vh = vb[:, h * dk:(h + 1) * dk]
        # q @ k^T without an explicit transpose (contract last dims).
        s = jax.lax.dot_general(qh, kh, (((1,), (1,)), ((), ())),
                                preferred_element_type=jnp.float32) * scale
        s = jnp.where(masked, NEG_INF, s)
        m = jnp.max(s, axis=-1, keepdims=True)
        p = jnp.where(masked, 0.0, jnp.exp(s - m))
        denom = jnp.sum(p, axis=-1, keepdims=True)
        w = p * pl.reciprocal(jnp.maximum(denom, 1e-9), approx=True)
        heads.append(jnp.dot(w.astype(jnp.bfloat16), vh,
                             preferred_element_type=jnp.float32))
    attn = jnp.concatenate(heads, axis=-1)                       # [Sq, D]
    return jnp.dot(attn.astype(jnp.bfloat16), wo,
                   preferred_element_type=jnp.float32)


# ----------------------------- fused layer kernels ---------------------------

def encoder_layer_kernel(mask_ref, x_ref, wqkv_ref, wo_ref,
                         w1_ref, b1_ref, w2_ref, b2_ref,
                         ln1g_ref, ln1b_ref, ln2g_ref, ln2b_ref, om_ref,
                         out_ref, *, n_heads):
    """One batch element of a full encoder layer (grid axis 0 = batch)."""
    x = x_ref[0]                                                 # [S, D] f32
    D = x.shape[-1]
    qkv = jnp.dot(x.astype(jnp.bfloat16), wqkv_ref[...],         # fused QKV
                  preferred_element_type=jnp.float32)            # [S, 3D]
    attn = _mha_core(qkv[:, :D], qkv[:, D:2 * D], qkv[:, 2 * D:],
                     mask_ref[0], wo_ref[...], n_heads)
    h1 = _admin_ln(attn, x, om_ref[:, 0:1], ln1g_ref[...], ln1b_ref[...])
    ff = _ffn(h1, w1_ref[...], b1_ref[...], w2_ref[...], b2_ref[...])
    out_ref[0] = _admin_ln(ff, h1, om_ref[:, 1:2], ln2g_ref[...], ln2b_ref[...])


def decoder_layer_kernel(smask_ref, cmask_ref, tgt_ref, mem_ref,
                         s_wqkv_ref, s_wo_ref, c_wq_ref, c_wkv_ref, c_wo_ref,
                         w1_ref, b1_ref, w2_ref, b2_ref,
                         ln1g_ref, ln1b_ref, ln2g_ref, ln2b_ref,
                         ln3g_ref, ln3b_ref, om_ref, out_ref, *, n_heads):
    """One batch element of a full decoder layer (grid axis 0 = batch)."""
    tgt = tgt_ref[0]                                             # [St, D]
    mem = mem_ref[0]                                             # [Ss, D]
    D = tgt.shape[-1]
    # masked (causal) self-attention, fused QKV projection
    qkv = jnp.dot(tgt.astype(jnp.bfloat16), s_wqkv_ref[...],
                  preferred_element_type=jnp.float32)            # [St, 3D]
    sa = _mha_core(qkv[:, :D], qkv[:, D:2 * D], qkv[:, 2 * D:],
                   smask_ref[0], s_wo_ref[...], n_heads)
    h1 = _admin_ln(sa, tgt, om_ref[:, 0:1], ln1g_ref[...], ln1b_ref[...])
    # cross-attention: Q from decoder stream, fused KV from encoder memory
    q = jnp.dot(h1.astype(jnp.bfloat16), c_wq_ref[...],
                preferred_element_type=jnp.float32)
    kv = jnp.dot(mem.astype(jnp.bfloat16), c_wkv_ref[...],
                 preferred_element_type=jnp.float32)             # [Ss, 2D]
    ca = _mha_core(q, kv[:, :D], kv[:, D:], cmask_ref[0], c_wo_ref[...],
                   n_heads)
    h2 = _admin_ln(ca, h1, om_ref[:, 1:2], ln2g_ref[...], ln2b_ref[...])
    ff = _ffn(h2, w1_ref[...], b1_ref[...], w2_ref[...], b2_ref[...])
    out_ref[0] = _admin_ln(ff, h2, om_ref[:, 2:3], ln3g_ref[...], ln3b_ref[...])


def unembed_kernel(x_ref, w_ref, out_ref):
    out_ref[...] = jnp.dot(x_ref[...].astype(jnp.bfloat16), w_ref[...],
                           preferred_element_type=jnp.float32)


# ----------------------------- kernel wrappers -------------------------------

def _w_spec(shape):
    nd = len(shape)
    return pl.BlockSpec(shape, lambda b, _n=nd: (0,) * _n)


def encoder_layer_pallas(x, mask, lp, *, n_heads):
    B, S, D = x.shape
    F = lp["w1"].shape[1]
    kernel = functools.partial(encoder_layer_kernel, n_heads=n_heads)
    return pl.pallas_call(
        kernel,
        out_shape=jax.ShapeDtypeStruct((B, S, D), jnp.float32),
        grid=(B,),
        in_specs=[
            pl.BlockSpec((1, S, S), lambda b: (b, 0, 0)),   # combined pad mask
            pl.BlockSpec((1, S, D), lambda b: (b, 0, 0)),   # activations
            _w_spec((D, 3 * D)),                            # fused Wqkv (bf16)
            _w_spec((D, D)),                                # Wo (bf16)
            _w_spec((D, F)), _w_spec((1, F)),               # FFN layer 1
            _w_spec((F, D)), _w_spec((1, D)),               # FFN layer 2
            _w_spec((1, D)), _w_spec((1, D)),               # LN1 gamma/beta
            _w_spec((1, D)), _w_spec((1, D)),               # LN2 gamma/beta
            _w_spec((1, 2)),                                # admin omegas
        ],
        out_specs=pl.BlockSpec((1, S, D), lambda b: (b, 0, 0)),
        compiler_params=pltpu.CompilerParams(
            dimension_semantics=("parallel",),
            vmem_limit_bytes=VMEM_LIMIT),
    )(mask, x, lp["wqkv"], lp["wo"], lp["w1"], lp["b1"], lp["w2"], lp["b2"],
      lp["ln1_g"], lp["ln1_b"], lp["ln2_g"], lp["ln2_b"], lp["omegas"])


def decoder_layer_pallas(tgt, memory, self_mask, cross_mask, lp, *, n_heads):
    B, St, D = tgt.shape
    Ss = memory.shape[1]
    F = lp["w1"].shape[1]
    kernel = functools.partial(decoder_layer_kernel, n_heads=n_heads)
    return pl.pallas_call(
        kernel,
        out_shape=jax.ShapeDtypeStruct((B, St, D), jnp.float32),
        grid=(B,),
        in_specs=[
            pl.BlockSpec((1, St, St), lambda b: (b, 0, 0)),  # self mask
            pl.BlockSpec((1, St, Ss), lambda b: (b, 0, 0)),  # cross mask
            pl.BlockSpec((1, St, D), lambda b: (b, 0, 0)),   # tgt activations
            pl.BlockSpec((1, Ss, D), lambda b: (b, 0, 0)),   # encoder memory
            _w_spec((D, 3 * D)), _w_spec((D, D)),            # self-attn
            _w_spec((D, D)), _w_spec((D, 2 * D)), _w_spec((D, D)),  # cross-attn
            _w_spec((D, F)), _w_spec((1, F)),                # FFN layer 1
            _w_spec((F, D)), _w_spec((1, D)),                # FFN layer 2
            _w_spec((1, D)), _w_spec((1, D)),                # LN1
            _w_spec((1, D)), _w_spec((1, D)),                # LN2
            _w_spec((1, D)), _w_spec((1, D)),                # LN3
            _w_spec((1, 3)),                                 # admin omegas
        ],
        out_specs=pl.BlockSpec((1, St, D), lambda b: (b, 0, 0)),
        compiler_params=pltpu.CompilerParams(
            dimension_semantics=("parallel",),
            vmem_limit_bytes=VMEM_LIMIT),
    )(self_mask, cross_mask, tgt, memory,
      lp["s_wqkv"], lp["s_wo"], lp["c_wq"], lp["c_wkv"], lp["c_wo"],
      lp["w1"], lp["b1"], lp["w2"], lp["b2"],
      lp["ln1_g"], lp["ln1_b"], lp["ln2_g"], lp["ln2_b"],
      lp["ln3_g"], lp["ln3_b"], lp["omegas"])


def pallas_unembed(x2d, out_w, vocab_size):
    """Row-tiled, lane-dense tied unembedding: [M, D] @ [D, Vpad] -> [M, V]."""
    M, D = x2d.shape
    Vp = out_w.shape[1]
    tm = 256 if M >= 256 else 8
    Mp = ((M + tm - 1) // tm) * tm
    if Mp != M:
        x2d = jnp.pad(x2d, ((0, Mp - M), (0, 0)))
    out = pl.pallas_call(
        unembed_kernel,
        out_shape=jax.ShapeDtypeStruct((Mp, Vp), jnp.float32),
        grid=(Mp // tm,),
        in_specs=[pl.BlockSpec((tm, D), lambda i: (i, 0)),
                  pl.BlockSpec((D, Vp), lambda i: (0, 0))],
        out_specs=pl.BlockSpec((tm, Vp), lambda i: (i, 0)),
        compiler_params=pltpu.CompilerParams(
            dimension_semantics=("parallel",),
            vmem_limit_bytes=VMEM_LIMIT),
    )(x2d, out_w)
    return out[:M, :vocab_size]


# ----------------------------- model pieces ----------------------------------

def positional_encoding_table(maxlen, d_model):
    den = jnp.exp(-jnp.arange(0, d_model, 2, dtype=jnp.float32)
                  * math.log(10000.0) / d_model)
    pos = jnp.arange(0, maxlen, dtype=jnp.float32).reshape(maxlen, 1)
    pe = jnp.zeros((maxlen, d_model), jnp.float32)
    pe = pe.at[:, 0::2].set(jnp.sin(pos * den))
    pe = pe.at[:, 1::2].set(jnp.cos(pos * den))
    return pe


def build_masks(src_pad, tgt_pad):
    """Combined boolean masks (1.0 = masked), causal baked into dec self."""
    sp = src_pad.astype(jnp.bool_)
    tp = tgt_pad.astype(jnp.bool_)
    St = tp.shape[1]
    causal = jnp.triu(jnp.ones((St, St), jnp.bool_), k=1)        # col > row
    enc_mask = (sp[:, :, None] | sp[:, None, :]).astype(jnp.float32)
    dec_self = (tp[:, :, None] | tp[:, None, :] | causal[None]).astype(jnp.float32)
    dec_cross = (tp[:, :, None] | sp[:, None, :]).astype(jnp.float32)
    return enc_mask, dec_self, dec_cross


def transformer_forward(params, src, tgt, src_pad, tgt_pad, *, d_model, n_heads):
    emb = params["emb"]
    pe = params["pos"]
    scale = math.sqrt(d_model)
    B, Ss = src.shape
    St = tgt.shape[1]

    enc_mask, dec_self_mask, dec_cross_mask = build_masks(src_pad, tgt_pad)

    # token-embedding gather + positional encoding: plain JAX glue
    enc = emb[src] * scale + pe[:Ss]
    for lp in list(params["encoder"]) + list(reversed(params["encoder"])):
        enc = encoder_layer_pallas(enc, enc_mask, lp, n_heads=n_heads)

    dec = emb[tgt] * scale + pe[:St]
    for lp in list(params["decoder"]) + list(reversed(params["decoder"])):
        dec = decoder_layer_pallas(dec, enc, dec_self_mask, dec_cross_mask, lp,
                                   n_heads=n_heads)

    logits = pallas_unembed(dec.reshape(B * St, d_model), params["out_w"],
                            emb.shape[0])
    return logits.reshape(B, St, emb.shape[0])


# ----------------------------- parameter init --------------------------------

def init_params(key, vocab_size, d_model, d_ff, n_enc, n_dec, maxlen=64):
    keys = iter(jax.random.split(key, 512))

    def xavier(shape, gain=0.1):
        fan_in, fan_out = shape
        bound = gain * math.sqrt(6.0 / (fan_in + fan_out))
        return jax.random.uniform(next(keys), shape, jnp.float32, -bound, bound)

    def attn_self():
        wq = xavier((d_model, d_model)); wk = xavier((d_model, d_model))
        wv = xavier((d_model, d_model)); wo = xavier((d_model, d_model))
        return (jnp.concatenate([wq, wk, wv], axis=1).astype(jnp.bfloat16),
                wo.astype(jnp.bfloat16))

    def attn_cross():
        wq = xavier((d_model, d_model)); wk = xavier((d_model, d_model))
        wv = xavier((d_model, d_model)); wo = xavier((d_model, d_model))
        return (wq.astype(jnp.bfloat16),
                jnp.concatenate([wk, wv], axis=1).astype(jnp.bfloat16),
                wo.astype(jnp.bfloat16))

    def ffn_params():
        return dict(w1=xavier((d_model, d_ff)).astype(jnp.bfloat16),
                    b1=jnp.zeros((1, d_ff), jnp.float32),
                    w2=xavier((d_ff, d_model)).astype(jnp.bfloat16),
                    b2=jnp.zeros((1, d_model), jnp.float32))

    ones = jnp.ones((1, d_model), jnp.float32)
    zeros = jnp.zeros((1, d_model), jnp.float32)

    # TODO(synk): admin_torch omega init approximated as sqrt(num_res_layers + 1)
    omega_enc = float(math.sqrt(2 * n_enc + 1))
    omega_dec = float(math.sqrt(3 * n_dec + 1))

    encoder = []
    for _ in range(n_enc):
        wqkv, wo = attn_self()
        encoder.append(dict(wqkv=wqkv, wo=wo,
                            ln1_g=ones, ln1_b=zeros, ln2_g=ones, ln2_b=zeros,
                            omegas=jnp.full((1, 2), omega_enc, jnp.float32),
                            **ffn_params()))

    decoder = []
    for _ in range(n_dec):
        s_wqkv, s_wo = attn_self()
        c_wq, c_wkv, c_wo = attn_cross()
        decoder.append(dict(s_wqkv=s_wqkv, s_wo=s_wo,
                            c_wq=c_wq, c_wkv=c_wkv, c_wo=c_wo,
                            ln1_g=ones, ln1_b=zeros, ln2_g=ones, ln2_b=zeros,
                            ln3_g=ones, ln3_b=zeros,
                            omegas=jnp.full((1, 3), omega_dec, jnp.float32),
                            **ffn_params()))

    emb = xavier((vocab_size, d_model))
    # tied, vocab-padded unembedding weight: lane-dense [D, Vpad] bf16
    vpad = ((vocab_size + 127) // 128) * 128
    out_w = jnp.zeros((d_model, vpad), jnp.bfloat16)
    out_w = out_w.at[:, :vocab_size].set(emb.T.astype(jnp.bfloat16))

    return dict(emb=emb, out_w=out_w,
                pos=positional_encoding_table(maxlen, d_model),
                encoder=encoder, decoder=decoder)


# --------------------------------- demo ---------------------------------------

if __name__ == "__main__":
    vocab_size, d_model, n_heads, d_ff = 16, 32, 4, 64
    n_enc, n_dec = 2, 2
    B, S_src, S_tgt = 2, 10, 8

    key = jax.random.PRNGKey(0)
    k_par, k_src, k_tgt = jax.random.split(key, 3)
    params = init_params(k_par, vocab_size, d_model, d_ff, n_enc, n_dec)

    src = jax.random.randint(k_src, (B, S_src), 3, vocab_size, dtype=jnp.int32)
    tgt = jax.random.randint(k_tgt, (B, S_tgt), 3, vocab_size, dtype=jnp.int32)
    src = src.at[0, -2:].set(PADDING_IDX)
    tgt = tgt.at[1, -3:].set(PADDING_IDX)
    src_padding_mask = src == PADDING_IDX    # True = padding position
    tgt_padding_mask = tgt == PADDING_IDX

    fwd = jax.jit(functools.partial(transformer_forward,
                                    d_model=d_model, n_heads=n_heads))
    logits = fwd(params, src, tgt, src_padding_mask, tgt_padding_mask)
    logits = jax.block_until_ready(logits)

    assert logits.shape == (B, S_tgt, vocab_size)
    assert bool(jnp.all(jnp.isfinite(logits)))
    print("KERNEL_OK")
</pallas_src>

<mosaic_0001>
module attributes {stable_mosaic.version = 11 : i64} {
  func.func @encoder_layer_kernel(%arg0: i32, %arg1: memref<1x10x10xf32, #tpu.memory_space<vmem>>, %arg2: memref<1x10x32xf32, #tpu.memory_space<vmem>>, %arg3: memref<32x96xbf16, #tpu.memory_space<vmem>>, %arg4: memref<32x32xbf16, #tpu.memory_space<vmem>>, %arg5: memref<32x64xbf16, #tpu.memory_space<vmem>>, %arg6: memref<1x64xf32, #tpu.memory_space<vmem>>, %arg7: memref<64x32xbf16, #tpu.memory_space<vmem>>, %arg8: memref<1x32xf32, #tpu.memory_space<vmem>>, %arg9: memref<1x32xf32, #tpu.memory_space<vmem>>, %arg10: memref<1x32xf32, #tpu.memory_space<vmem>>, %arg11: memref<1x32xf32, #tpu.memory_space<vmem>>, %arg12: memref<1x32xf32, #tpu.memory_space<vmem>>, %arg13: memref<1x2xf32, #tpu.memory_space<vmem>>, %arg14: memref<1x10x32xf32, #tpu.memory_space<vmem>>) attributes {dimension_semantics = [#tpu.dimension_semantics<parallel>], iteration_bounds = array<i64: 2>, scalar_prefetch = 0 : i64, scratch_operands = 0 : i64, tpu.core_type = #tpu.core_type<tc>, window_params = [{transform_indices = @transform_0, window_bounds = array<i64: 1, 10, 10>}, {transform_indices = @transform_1, window_bounds = array<i64: 1, 10, 32>}, {pipeline_mode = #tpu.pipeline_mode<synchronous>, transform_indices = @transform_2, window_bounds = array<i64: 32, 96>}, {pipeline_mode = #tpu.pipeline_mode<synchronous>, transform_indices = @transform_3, window_bounds = array<i64: 32, 32>}, {pipeline_mode = #tpu.pipeline_mode<synchronous>, transform_indices = @transform_4, window_bounds = array<i64: 32, 64>}, {pipeline_mode = #tpu.pipeline_mode<synchronous>, transform_indices = @transform_5, window_bounds = array<i64: 1, 64>}, {pipeline_mode = #tpu.pipeline_mode<synchronous>, transform_indices = @transform_6, window_bounds = array<i64: 64, 32>}, {pipeline_mode = #tpu.pipeline_mode<synchronous>, transform_indices = @transform_7, window_bounds = array<i64: 1, 32>}, {pipeline_mode = #tpu.pipeline_mode<synchronous>, transform_indices = @transform_8, window_bounds = array<i64: 1, 32>}, {pipeline_mode = #tpu.pipeline_mode<synchronous>, transform_indices = @transform_9, window_bounds = array<i64: 1, 32>}, {pipeline_mode = #tpu.pipeline_mode<synchronous>, transform_indices = @transform_10, window_bounds = array<i64: 1, 32>}, {pipeline_mode = #tpu.pipeline_mode<synchronous>, transform_indices = @transform_11, window_bounds = array<i64: 1, 32>}, {pipeline_mode = #tpu.pipeline_mode<synchronous>, transform_indices = @transform_12, window_bounds = array<i64: 1, 2>}, {transform_indices = @transform_13, window_bounds = array<i64: 1, 10, 32>}]} {
    %c0 = arith.constant 0 : index
    %c0_0 = arith.constant 0 : index
    %c0_1 = arith.constant 0 : index
    %0 = vector.load %arg2[%c0, %c0_0, %c0_1] : memref<1x10x32xf32, #tpu.memory_space<vmem>>, vector<1x10x32xf32>
    %1 = vector.shape_cast %0 : vector<1x10x32xf32> to vector<10x32xf32>
    %2 = arith.truncf %1 : vector<10x32xf32> to vector<10x32xbf16>
    %c0_2 = arith.constant 0 : index
    %c0_3 = arith.constant 0 : index
    %3 = vector.load %arg3[%c0_2, %c0_3] : memref<32x96xbf16, #tpu.memory_space<vmem>>, vector<32x96xbf16>
    %cst = arith.constant dense<0.000000e+00> : vector<10x96xf32>
    %4 = tpu.matmul %2, %3, %cst {dimension_numbers = #tpu.dot_dimension_numbers<[1], [0], [0], [1], [0, 0, 1, 1], [], []>} : vector<10x32xbf16>, vector<32x96xbf16>, vector<10x96xf32> -> vector<10x96xf32>
    %5 = vector.extract_strided_slice %4 {offsets = [0, 0], sizes = [10, 32], strides = [1, 1]} : vector<10x96xf32> to vector<10x32xf32>
    %6 = vector.extract_strided_slice %4 {offsets = [0, 32], sizes = [10, 32], strides = [1, 1]} : vector<10x96xf32> to vector<10x32xf32>
    %7 = vector.extract_strided_slice %4 {offsets = [0, 64], sizes = [10, 32], strides = [1, 1]} : vector<10x96xf32> to vector<10x32xf32>
    %c0_4 = arith.constant 0 : index
    %c0_5 = arith.constant 0 : index
    %c0_6 = arith.constant 0 : index
    %8 = vector.load %arg1[%c0_4, %c0_5, %c0_6] : memref<1x10x10xf32, #tpu.memory_space<vmem>>, vector<1x10x10xf32>
    %9 = vector.shape_cast %8 : vector<1x10x10xf32> to vector<10x10xf32>
    %c0_7 = arith.constant 0 : index
    %c0_8 = arith.constant 0 : index
    %10 = vector.load %arg4[%c0_7, %c0_8] : memref<32x32xbf16, #tpu.memory_space<vmem>>, vector<32x32xbf16>
    %cst_9 = arith.constant 5.000000e-01 : f32
    %11 = vector.broadcast %cst_9 : f32 to vector<10x10xf32>
    %12 = arith.cmpf ogt, %9, %11 : vector<10x10xf32>
    %13 = arith.truncf %5 : vector<10x32xf32> to vector<10x32xbf16>
    %14 = arith.truncf %6 : vector<10x32xf32> to vector<10x32xbf16>
    %15 = arith.truncf %7 : vector<10x32xf32> to vector<10x32xbf16>
    %16 = vector.extract_strided_slice %13 {offsets = [0, 0], sizes = [10, 8], strides = [1, 1]} : vector<10x32xbf16> to vector<10x8xbf16>
    %17 = vector.extract_strided_slice %14 {offsets = [0, 0], sizes = [10, 8], strides = [1, 1]} : vector<10x32xbf16> to vector<10x8xbf16>
    %18 = vector.extract_strided_slice %15 {offsets = [0, 0], sizes = [10, 8], strides = [1, 1]} : vector<10x32xbf16> to vector<10x8xbf16>
    %cst_10 = arith.constant dense<0.000000e+00> : vector<10x10xf32>
    %19 = tpu.matmul %16, %17, %cst_10 {dimension_numbers = #tpu.dot_dimension_numbers<[1], [1], [0], [0], [0, 0, 1, 0], [], []>} : vector<10x8xbf16>, vector<10x8xbf16>, vector<10x10xf32> -> vector<10x10xf32>
    %cst_11 = arith.constant 0.353553385 : f32
    %20 = vector.broadcast %cst_11 : f32 to vector<10x10xf32>
    %21 = arith.mulf %19, %20 : vector<10x10xf32>
    %cst_12 = arith.constant -1.000000e+30 : f32
    %22 = vector.broadcast %cst_12 : f32 to vector<10x10xf32>
    %23 = arith.select %12, %22, %21 : vector<10x10xi1>, vector<10x10xf32>
    %cst_13 = arith.constant dense<0xFF800000> : vector<10xf32>
    %24 = vector.multi_reduction <maximumf>, %23, %cst_13 [1] : vector<10x10xf32> to vector<10xf32>
    %25 = vector.shape_cast %24 : vector<10xf32> to vector<10x1xf32>
    %26 = vector.broadcast %25 : vector<10x1xf32> to vector<10x10xf32>
    %27 = arith.subf %23, %26 : vector<10x10xf32>
    %28 = math.exp %27 : vector<10x10xf32>
    %cst_14 = arith.constant 0.000000e+00 : f32
    %29 = vector.broadcast %cst_14 : f32 to vector<10x10xf32>
    %30 = arith.select %12, %29, %28 : vector<10x10xi1>, vector<10x10xf32>
    %cst_15 = arith.constant dense<0.000000e+00> : vector<10xf32>
    %31 = vector.multi_reduction <add>, %30, %cst_15 [1] : vector<10x10xf32> to vector<10xf32>
    %32 = vector.shape_cast %31 : vector<10xf32> to vector<10x1xf32>
    %cst_16 = arith.constant 9.99999971E-10 : f32
    %33 = vector.broadcast %cst_16 : f32 to vector<10x1xf32>
    %34 = arith.maximumf %32, %33 : vector<10x1xf32>
    %35 = tpu.reciprocal %34 {approx = true} : vector<10x1xf32> -> vector<10x1xf32>
    %36 = vector.broadcast %35 : vector<10x1xf32> to vector<10x10xf32>
    %37 = arith.mulf %30, %36 : vector<10x10xf32>
    %38 = arith.truncf %37 : vector<10x10xf32> to vector<10x10xbf16>
    %cst_17 = arith.constant dense<0.000000e+00> : vector<10x8xf32>
    %39 = tpu.matmul %38, %18, %cst_17 {dimension_numbers = #tpu.dot_dimension_numbers<[1], [0], [0], [1], [0, 0, 1, 1], [], []>} : vector<10x10xbf16>, vector<10x8xbf16>, vector<10x8xf32> -> vector<10x8xf32>
    %40 = vector.extract_strided_slice %13 {offsets = [0, 8], sizes = [10, 8], strides = [1, 1]} : vector<10x32xbf16> to vector<10x8xbf16>
    %41 = vector.extract_strided_slice %14 {offsets = [0, 8], sizes = [10, 8], strides = [1, 1]} : vector<10x32xbf16> to vector<10x8xbf16>
    %42 = vector.extract_strided_slice %15 {offsets = [0, 8], sizes = [10, 8], strides = [1, 1]} : vector<10x32xbf16> to vector<10x8xbf16>
    %cst_18 = arith.constant dense<0.000000e+00> : vector<10x10xf32>
    %43 = tpu.matmul %40, %41, %cst_18 {dimension_numbers = #tpu.dot_dimension_numbers<[1], [1], [0], [0], [0, 0, 1, 0], [], []>} : vector<10x8xbf16>, vector<10x8xbf16>, vector<10x10xf32> -> vector<10x10xf32>
    %cst_19 = arith.constant 0.353553385 : f32
    %44 = vector.broadcast %cst_19 : f32 to vector<10x10xf32>
    %45 = arith.mulf %43, %44 : vector<10x10xf32>
    %cst_20 = arith.constant -1.000000e+30 : f32
    %46 = vector.broadcast %cst_20 : f32 to vector<10x10xf32>
    %47 = arith.select %12, %46, %45 : vector<10x10xi1>, vector<10x10xf32>
    %cst_21 = arith.constant dense<0xFF800000> : vector<10xf32>
    %48 = vector.multi_reduction <maximumf>, %47, %cst_21 [1] : vector<10x10xf32> to vector<10xf32>
    %49 = vector.shape_cast %48 : vector<10xf32> to vector<10x1xf32>
    %50 = vector.broadcast %49 : vector<10x1xf32> to vector<10x10xf32>
    %51 = arith.subf %47, %50 : vector<10x10xf32>
    %52 = math.exp %51 : vector<10x10xf32>
    %cst_22 = arith.constant 0.000000e+00 : f32
    %53 = vector.broadcast %cst_22 : f32 to vector<10x10xf32>
    %54 = arith.select %12, %53, %52 : vector<10x10xi1>, vector<10x10xf32>
    %cst_23 = arith.constant dense<0.000000e+00> : vector<10xf32>
    %55 = vector.multi_reduction <add>, %54, %cst_23 [1] : vector<10x10xf32> to vector<10xf32>
    %56 = vector.shape_cast %55 : vector<10xf32> to vector<10x1xf32>
    %cst_24 = arith.constant 9.99999971E-10 : f32
    %57 = vector.broadcast %cst_24 : f32 to vector<10x1xf32>
    %58 = arith.maximumf %56, %57 : vector<10x1xf32>
    %59 = tpu.reciprocal %58 {approx = true} : vector<10x1xf32> -> vector<10x1xf32>
    %60 = vector.broadcast %59 : vector<10x1xf32> to vector<10x10xf32>
    %61 = arith.mulf %54, %60 : vector<10x10xf32>
    %62 = arith.truncf %61 : vector<10x10xf32> to vector<10x10xbf16>
    %cst_25 = arith.constant dense<0.000000e+00> : vector<10x8xf32>
    %63 = tpu.matmul %62, %42, %cst_25 {dimension_numbers = #tpu.dot_dimension_numbers<[1], [0], [0], [1], [0, 0, 1, 1], [], []>} : vector<10x10xbf16>, vector<10x8xbf16>, vector<10x8xf32> -> vector<10x8xf32>
    %64 = vector.extract_strided_slice %13 {offsets = [0, 16], sizes = [10, 8], strides = [1, 1]} : vector<10x32xbf16> to vector<10x8xbf16>
    %65 = vector.extract_strided_slice %14 {offsets = [0, 16], sizes = [10, 8], strides = [1, 1]} : vector<10x32xbf16> to vector<10x8xbf16>
    %66 = vector.extract_strided_slice %15 {offsets = [0, 16], sizes = [10, 8], strides = [1, 1]} : vector<10x32xbf16> to vector<10x8xbf16>
    %cst_26 = arith.constant dense<0.000000e+00> : vector<10x10xf32>
    %67 = tpu.matmul %64, %65, %cst_26 {dimension_numbers = #tpu.dot_dimension_numbers<[1], [1], [0], [0], [0, 0, 1, 0], [], []>} : vector<10x8xbf16>, vector<10x8xbf16>, vector<10x10xf32> -> vector<10x10xf32>
    %cst_27 = arith.constant 0.353553385 : f32
    %68 = vector.broadcast %cst_27 : f32 to vector<10x10xf32>
    %69 = arith.mulf %67, %68 : vector<10x10xf32>
    %cst_28 = arith.constant -1.000000e+30 : f32
    %70 = vector.broadcast %cst_28 : f32 to vector<10x10xf32>
    %71 = arith.select %12, %70, %69 : vector<10x10xi1>, vector<10x10xf32>
    %cst_29 = arith.constant dense<0xFF800000> : vector<10xf32>
    %72 = vector.multi_reduction <maximumf>, %71, %cst_29 [1] : vector<10x10xf32> to vector<10xf32>
    %73 = vector.shape_cast %72 : vector<10xf32> to vector<10x1xf32>
    %74 = vector.broadcast %73 : vector<10x1xf32> to vector<10x10xf32>
    %75 = arith.subf %71, %74 : vector<10x10xf32>
    %76 = math.exp %75 : vector<10x10xf32>
    %cst_30 = arith.constant 0.000000e+00 : f32
    %77 = vector.broadcast %cst_30 : f32 to vector<10x10xf32>
    %78 = arith.select %12, %77, %76 : vector<10x10xi1>, vector<10x10xf32>
    %cst_31 = arith.constant dense<0.000000e+00> : vector<10xf32>
    %79 = vector.multi_reduction <add>, %78, %cst_31 [1] : vector<10x10xf32> to vector<10xf32>
    %80 = vector.shape_cast %79 : vector<10xf32> to vector<10x1xf32>
    %cst_32 = arith.constant 9.99999971E-10 : f32
    %81 = vector.broadcast %cst_32 : f32 to vector<10x1xf32>
    %82 = arith.maximumf %80, %81 : vector<10x1xf32>
    %83 = tpu.reciprocal %82 {approx = true} : vector<10x1xf32> -> vector<10x1xf32>
    %84 = vector.broadcast %83 : vector<10x1xf32> to vector<10x10xf32>
    %85 = arith.mulf %78, %84 : vector<10x10xf32>
    %86 = arith.truncf %85 : vector<10x10xf32> to vector<10x10xbf16>
    %cst_33 = arith.constant dense<0.000000e+00> : vector<10x8xf32>
    %87 = tpu.matmul %86, %66, %cst_33 {dimension_numbers = #tpu.dot_dimension_numbers<[1], [0], [0], [1], [0, 0, 1, 1], [], []>} : vector<10x10xbf16>, vector<10x8xbf16>, vector<10x8xf32> -> vector<10x8xf32>
    %88 = vector.extract_strided_slice %13 {offsets = [0, 24], sizes = [10, 8], strides = [1, 1]} : vector<10x32xbf16> to vector<10x8xbf16>
    %89 = vector.extract_strided_slice %14 {offsets = [0, 24], sizes = [10, 8], strides = [1, 1]} : vector<10x32xbf16> to vector<10x8xbf16>
    %90 = vector.extract_strided_slice %15 {offsets = [0, 24], sizes = [10, 8], strides = [1, 1]} : vector<10x32xbf16> to vector<10x8xbf16>
    %cst_34 = arith.constant dense<0.000000e+00> : vector<10x10xf32>
    %91 = tpu.matmul %88, %89, %cst_34 {dimension_numbers = #tpu.dot_dimension_numbers<[1], [1], [0], [0], [0, 0, 1, 0], [], []>} : vector<10x8xbf16>, vector<10x8xbf16>, vector<10x10xf32> -> vector<10x10xf32>
    %cst_35 = arith.constant 0.353553385 : f32
    %92 = vector.broadcast %cst_35 : f32 to vector<10x10xf32>
    %93 = arith.mulf %91, %92 : vector<10x10xf32>
    %cst_36 = arith.constant -1.000000e+30 : f32
    %94 = vector.broadcast %cst_36 : f32 to vector<10x10xf32>
    %95 = arith.select %12, %94, %93 : vector<10x10xi1>, vector<10x10xf32>
    %cst_37 = arith.constant dense<0xFF800000> : vector<10xf32>
    %96 = vector.multi_reduction <maximumf>, %95, %cst_37 [1] : vector<10x10xf32> to vector<10xf32>
    %97 = vector.shape_cast %96 : vector<10xf32> to vector<10x1xf32>
    %98 = vector.broadcast %97 : vector<10x1xf32> to vector<10x10xf32>
    %99 = arith.subf %95, %98 : vector<10x10xf32>
    %100 = math.exp %99 : vector<10x10xf32>
    %cst_38 = arith.constant 0.000000e+00 : f32
    %101 = vector.broadcast %cst_38 : f32 to vector<10x10xf32>
    %102 = arith.select %12, %101, %100 : vector<10x10xi1>, vector<10x10xf32>
    %cst_39 = arith.constant dense<0.000000e+00> : vector<10xf32>
    %103 = vector.multi_reduction <add>, %102, %cst_39 [1] : vector<10x10xf32> to vector<10xf32>
    %104 = vector.shape_cast %103 : vector<10xf32> to vector<10x1xf32>
    %cst_40 = arith.constant 9.99999971E-10 : f32
    %105 = vector.broadcast %cst_40 : f32 to vector<10x1xf32>
    %106 = arith.maximumf %104, %105 : vector<10x1xf32>
    %107 = tpu.reciprocal %106 {approx = true} : vector<10x1xf32> -> vector<10x1xf32>
    %108 = vector.broadcast %107 : vector<10x1xf32> to vector<10x10xf32>
    %109 = arith.mulf %102, %108 : vector<10x10xf32>
    %110 = arith.truncf %109 : vector<10x10xf32> to vector<10x10xbf16>
    %cst_41 = arith.constant dense<0.000000e+00> : vector<10x8xf32>
    %111 = tpu.matmul %110, %90, %cst_41 {dimension_numbers = #tpu.dot_dimension_numbers<[1], [0], [0], [1], [0, 0, 1, 1], [], []>} : vector<10x10xbf16>, vector<10x8xbf16>, vector<10x8xf32> -> vector<10x8xf32>
    %112 = tpu.concatenate %39, %63, %87, %111 in 1 : vector<10x8xf32>, vector<10x8xf32>, vector<10x8xf32>, vector<10x8xf32> -> vector<10x32xf32>
    %113 = arith.truncf %112 : vector<10x32xf32> to vector<10x32xbf16>
    %cst_42 = arith.constant dense<0.000000e+00> : vector<10x32xf32>
    %114 = tpu.matmul %113, %10, %cst_42 {dimension_numbers = #tpu.dot_dimension_numbers<[1], [0], [0], [1], [0, 0, 1, 1], [], []>} : vector<10x32xbf16>, vector<32x32xbf16>, vector<10x32xf32> -> vector<10x32xf32>
    %c0_43 = arith.constant 0 : index
    %c0_44 = arith.constant 0 : index
    %115 = vector.load %arg13[%c0_43, %c0_44] : memref<1x2xf32, #tpu.memory_space<vmem>>, vector<1x1xf32>
    %c0_45 = arith.constant 0 : index
    %c0_46 = arith.constant 0 : index
    %116 = vector.load %arg9[%c0_45, %c0_46] : memref<1x32xf32, #tpu.memory_space<vmem>>, vector<1x32xf32>
    %c0_47 = arith.constant 0 : index
    %c0_48 = arith.constant 0 : index
    %117 = vector.load %arg10[%c0_47, %c0_48] : memref<1x32xf32, #tpu.memory_space<vmem>>, vector<1x32xf32>
    %118 = vector.broadcast %115 : vector<1x1xf32> to vector<10x32xf32>
    %119 = arith.mulf %114, %118 : vector<10x32xf32>
    %120 = arith.addf %119, %1 : vector<10x32xf32>
    %cst_49 = arith.constant dense<0.000000e+00> : vector<10xf32>
    %121 = vector.multi_reduction <add>, %120, %cst_49 [1] : vector<10x32xf32> to vector<10xf32>
    %122 = vector.shape_cast %121 : vector<10xf32> to vector<10x1xf32>
    %cst_50 = arith.constant 3.200000e+01 : f32
    %123 = vector.broadcast %cst_50 : f32 to vector<10x1xf32>
    %124 = arith.divf %122, %123 : vector<10x1xf32>
    %125 = vector.broadcast %124 : vector<10x1xf32> to vector<10x32xf32>
    %126 = arith.subf %120, %125 : vector<10x32xf32>
    %127 = arith.mulf %126, %126 : vector<10x32xf32>
    %cst_51 = arith.constant dense<0.000000e+00> : vector<10xf32>
    %128 = vector.multi_reduction <add>, %127, %cst_51 [1] : vector<10x32xf32> to vector<10xf32>
    %129 = vector.shape_cast %128 : vector<10xf32> to vector<10x1xf32>
    %cst_52 = arith.constant 3.200000e+01 : f32
    %130 = vector.broadcast %cst_52 : f32 to vector<10x1xf32>
    %131 = arith.divf %129, %130 : vector<10x1xf32>
    %132 = vector.broadcast %124 : vector<10x1xf32> to vector<10x32xf32>
    %133 = arith.subf %120, %132 : vector<10x32xf32>
    %cst_53 = arith.constant 9.99999974E-6 : f32
    %134 = vector.broadcast %cst_53 : f32 to vector<10x1xf32>
    %135 = arith.addf %131, %134 : vector<10x1xf32>
    %136 = math.rsqrt %135 : vector<10x1xf32>
    %137 = vector.broadcast %136 : vector<10x1xf32> to vector<10x32xf32>
    %138 = arith.mulf %133, %137 : vector<10x32xf32>
    %139 = vector.broadcast %116 : vector<1x32xf32> to vector<10x32xf32>
    %140 = arith.mulf %138, %139 : vector<10x32xf32>
    %141 = vector.broadcast %117 : vector<1x32xf32> to vector<10x32xf32>
    %142 = arith.addf %140, %141 : vector<10x32xf32>
    %c0_54 = arith.constant 0 : index
    %c0_55 = arith.constant 0 : index
    %143 = vector.load %arg5[%c0_54, %c0_55] : memref<32x64xbf16, #tpu.memory_space<vmem>>, vector<32x64xbf16>
    %c0_56 = arith.constant 0 : index
    %c0_57 = arith.constant 0 : index
    %144 = vector.load %arg6[%c0_56, %c0_57] : memref<1x64xf32, #tpu.memory_space<vmem>>, vector<1x64xf32>
    %c0_58 = arith.constant 0 : index
    %c0_59 = arith.constant 0 : index
    %145 = vector.load %arg7[%c0_58, %c0_59] : memref<64x32xbf16, #tpu.memory_space<vmem>>, vector<64x32xbf16>
    %c0_60 = arith.constant 0 : index
    %c0_61 = arith.constant 0 : index
    %146 = vector.load %arg8[%c0_60, %c0_61] : memref<1x32xf32, #tpu.memory_space<vmem>>, vector<1x32xf32>
    %147 = arith.truncf %142 : vector<10x32xf32> to vector<10x32xbf16>
    %cst_62 = arith.constant dense<0.000000e+00> : vector<10x64xf32>
    %148 = tpu.matmul %147, %143, %cst_62 {dimension_numbers = #tpu.dot_dimension_numbers<[1], [0], [0], [1], [0, 0, 1, 1], [], []>} : vector<10x32xbf16>, vector<32x64xbf16>, vector<10x64xf32> -> vector<10x64xf32>
    %149 = vector.broadcast %144 : vector<1x64xf32> to vector<10x64xf32>
    %150 = arith.addf %148, %149 : vector<10x64xf32>
    %cst_63 = arith.constant 0.000000e+00 : f32
    %151 = vector.broadcast %cst_63 : f32 to vector<10x64xf32>
    %152 = arith.maximumf %150, %151 : vector<10x64xf32>
    %153 = arith.truncf %152 : vector<10x64xf32> to vector<10x64xbf16>
    %cst_64 = arith.constant dense<0.000000e+00> : vector<10x32xf32>
    %154 = tpu.matmul %153, %145, %cst_64 {dimension_numbers = #tpu.dot_dimension_numbers<[1], [0], [0], [1], [0, 0, 1, 1], [], []>} : vector<10x64xbf16>, vector<64x32xbf16>, vector<10x32xf32> -> vector<10x32xf32>
    %155 = vector.broadcast %146 : vector<1x32xf32> to vector<10x32xf32>
    %156 = arith.addf %154, %155 : vector<10x32xf32>
    %c0_65 = arith.constant 0 : index
    %c1 = arith.constant 1 : index
    %157 = vector.load %arg13[%c0_65, %c1] : memref<1x2xf32, #tpu.memory_space<vmem>>, vector<1x1xf32>
    %c0_66 = arith.constant 0 : index
    %c0_67 = arith.constant 0 : index
    %158 = vector.load %arg11[%c0_66, %c0_67] : memref<1x32xf32, #tpu.memory_space<vmem>>, vector<1x32xf32>
    %c0_68 = arith.constant 0 : index
    %c0_69 = arith.constant 0 : index
    %159 = vector.load %arg12[%c0_68, %c0_69] : memref<1x32xf32, #tpu.memory_space<vmem>>, vector<1x32xf32>
    %160 = vector.broadcast %157 : vector<1x1xf32> to vector<10x32xf32>
    %161 = arith.mulf %156, %160 : vector<10x32xf32>
    %162 = arith.addf %161, %142 : vector<10x32xf32>
    %cst_70 = arith.constant dense<0.000000e+00> : vector<10xf32>
    %163 = vector.multi_reduction <add>, %162, %cst_70 [1] : vector<10x32xf32> to vector<10xf32>
    %164 = vector.shape_cast %163 : vector<10xf32> to vector<10x1xf32>
    %cst_71 = arith.constant 3.200000e+01 : f32
    %165 = vector.broadcast %cst_71 : f32 to vector<10x1xf32>
    %166 = arith.divf %164, %165 : vector<10x1xf32>
    %167 = vector.broadcast %166 : vector<10x1xf32> to vector<10x32xf32>
    %168 = arith.subf %162, %167 : vector<10x32xf32>
    %169 = arith.mulf %168, %168 : vector<10x32xf32>
    %cst_72 = arith.constant dense<0.000000e+00> : vector<10xf32>
    %170 = vector.multi_reduction <add>, %169, %cst_72 [1] : vector<10x32xf32> to vector<10xf32>
    %171 = vector.shape_cast %170 : vector<10xf32> to vector<10x1xf32>
    %cst_73 = arith.constant 3.200000e+01 : f32
    %172 = vector.broadcast %cst_73 : f32 to vector<10x1xf32>
    %173 = arith.divf %171, %172 : vector<10x1xf32>
    %174 = vector.broadcast %166 : vector<10x1xf32> to vector<10x32xf32>
    %175 = arith.subf %162, %174 : vector<10x32xf32>
    %cst_74 = arith.constant 9.99999974E-6 : f32
    %176 = vector.broadcast %cst_74 : f32 to vector<10x1xf32>
    %177 = arith.addf %173, %176 : vector<10x1xf32>
    %178 = math.rsqrt %177 : vector<10x1xf32>
    %179 = vector.broadcast %178 : vector<10x1xf32> to vector<10x32xf32>
    %180 = arith.mulf %175, %179 : vector<10x32xf32>
    %181 = vector.broadcast %158 : vector<1x32xf32> to vector<10x32xf32>
    %182 = arith.mulf %180, %181 : vector<10x32xf32>
    %183 = vector.broadcast %159 : vector<1x32xf32> to vector<10x32xf32>
    %184 = arith.addf %182, %183 : vector<10x32xf32>
    %c0_75 = arith.constant 0 : index
    %c0_76 = arith.constant 0 : index
    %c0_77 = arith.constant 0 : index
    %185 = vector.load %arg14[%c0_75, %c0_76, %c0_77] : memref<1x10x32xf32, #tpu.memory_space<vmem>>, vector<1x10x32xf32>
    %186 = vector.shape_cast %185 : vector<1x10x32xf32> to vector<10x32xf32>
    %187 = vector.shape_cast %184 : vector<10x32xf32> to vector<1x10x32xf32>
    tpu.vector_store %arg14[%c0_75, %c0_76, %c0_77], %187 {strides = array<i32>} : memref<1x10x32xf32, #tpu.memory_space<vmem>>, vector<1x10x32xf32>,
    return
  }
  func.func @transform_0(%arg0: i32) -> (i32, i32, i32) {
    %c0_i32 = arith.constant 0 : i32
    %c0_i32_0 = arith.constant 0 : i32
    %c0_i32_1 = arith.constant 0 : i32
    return %arg0, %c0_i32, %c0_i32_0 : i32, i32, i32
  }
  func.func @transform_1(%arg0: i32) -> (i32, i32, i32) {
    %c0_i32 = arith.constant 0 : i32
    %c0_i32_0 = arith.constant 0 : i32
    %c0_i32_1 = arith.constant 0 : i32
    return %arg0, %c0_i32, %c0_i32_0 : i32, i32, i32
  }
  func.func @transform_2(%arg0: i32) -> (i32, i32) {
    %c0_i32 = arith.constant 0 : i32
    %c0_i32_0 = arith.constant 0 : i32
    %c0_i32_1 = arith.constant 0 : i32
    return %c0_i32, %c0_i32_0 : i32, i32
  }
  func.func @transform_3(%arg0: i32) -> (i32, i32) {
    %c0_i32 = arith.constant 0 : i32
    %c0_i32_0 = arith.constant 0 : i32
    %c0_i32_1 = arith.constant 0 : i32
    return %c0_i32, %c0_i32_0 : i32, i32
  }
  func.func @transform_4(%arg0: i32) -> (i32, i32) {
    %c0_i32 = arith.constant 0 : i32
    %c0_i32_0 = arith.constant 0 : i32
    %c0_i32_1 = arith.constant 0 : i32
    return %c0_i32, %c0_i32_0 : i32, i32
  }
  func.func @transform_5(%arg0: i32) -> (i32, i32) {
    %c0_i32 = arith.constant 0 : i32
    %c0_i32_0 = arith.constant 0 : i32
    %c0_i32_1 = arith.constant 0 : i32
    return %c0_i32, %c0_i32_0 : i32, i32
  }
  func.func @transform_6(%arg0: i32) -> (i32, i32) {
    %c0_i32 = arith.constant 0 : i32
    %c0_i32_0 = arith.constant 0 : i32
    %c0_i32_1 = arith.constant 0 : i32
    return %c0_i32, %c0_i32_0 : i32, i32
  }
  func.func @transform_7(%arg0: i32) -> (i32, i32) {
    %c0_i32 = arith.constant 0 : i32
    %c0_i32_0 = arith.constant 0 : i32
    %c0_i32_1 = arith.constant 0 : i32
    return %c0_i32, %c0_i32_0 : i32, i32
  }
  func.func @transform_8(%arg0: i32) -> (i32, i32) {
    %c0_i32 = arith.constant 0 : i32
    %c0_i32_0 = arith.constant 0 : i32
    %c0_i32_1 = arith.constant 0 : i32
    return %c0_i32, %c0_i32_0 : i32, i32
  }
  func.func @transform_9(%arg0: i32) -> (i32, i32) {
    %c0_i32 = arith.constant 0 : i32
    %c0_i32_0 = arith.constant 0 : i32
    %c0_i32_1 = arith.constant 0 : i32
    return %c0_i32, %c0_i32_0 : i32, i32
  }
  func.func @transform_10(%arg0: i32) -> (i32, i32) {
    %c0_i32 = arith.constant 0 : i32
    %c0_i32_0 = arith.constant 0 : i32
    %c0_i32_1 = arith.constant 0 : i32
    return %c0_i32, %c0_i32_0 : i32, i32
  }
  func.func @transform_11(%arg0: i32) -> (i32, i32) {
    %c0_i32 = arith.constant 0 : i32
    %c0_i32_0 = arith.constant 0 : i32
    %c0_i32_1 = arith.constant 0 : i32
    return %c0_i32, %c0_i32_0 : i32, i32
  }
  func.func @transform_12(%arg0: i32) -> (i32, i32) {
    %c0_i32 = arith.constant 0 : i32
    %c0_i32_0 = arith.constant 0 : i32
    %c0_i32_1 = arith.constant 0 : i32
    return %c0_i32, %c0_i32_0 : i32, i32
  }
  func.func @transform_13(%arg0: i32) -> (i32, i32, i32) {
    %c0_i32 = arith.constant 0 : i32
    %c0_i32_0 = arith.constant 0 : i32
    %c0_i32_1 = arith.constant 0 : i32
    return %arg0, %c0_i32, %c0_i32_0 : i32, i32, i32
  }
}

module attributes {stable_mosaic.version = 11 : i64} {
  func.func @unembed_kernel(%arg0: i32, %arg1: memref<8x32xf32, #tpu.memory_space<vmem>>, %arg2: memref<32x128xbf16, #tpu.memory_space<vmem>>, %arg3: memref<8x128xf32, #tpu.memory_space<vmem>>) attributes {dimension_semantics = [#tpu.dimension_semantics<parallel>], iteration_bounds = array<i64: 2>, scalar_prefetch = 0 : i64, scratch_operands = 0 : i64, tpu.core_type = #tpu.core_type<tc>, window_params = [{transform_indices = @transform_0, window_bounds = array<i64: 8, 32>}, {pipeline_mode = #tpu.pipeline_mode<synchronous>, transform_indices = @transform_1, window_bounds = array<i64: 32, 128>}, {transform_indices = @transform_2, window_bounds = array<i64: 8, 128>}]} {
    %c0 = arith.constant 0 : index
    %c0_0 = arith.constant 0 : index
    %0 = vector.load %arg1[%c0, %c0_0] : memref<8x32xf32, #tpu.memory_space<vmem>>, vector<8x32xf32>
    %1 = arith.truncf %0 : vector<8x32xf32> to vector<8x32xbf16>
    %c0_1 = arith.constant 0 : index
    %c0_2 = arith.constant 0 : index
    %2 = vector.load %arg2[%c0_1, %c0_2] : memref<32x128xbf16, #tpu.memory_space<vmem>>, vector<32x128xbf16>
    %cst = arith.constant dense<0.000000e+00> : vector<8x128xf32>
    %3 = tpu.matmul %1, %2, %cst {dimension_numbers = #tpu.dot_dimension_numbers<[1], [0], [0], [1], [0, 0, 1, 1], [], []>} : vector<8x32xbf16>, vector<32x128xbf16>, vector<8x128xf32> -> vector<8x128xf32>
    %c0_3 = arith.constant 0 : index
    %c0_4 = arith.constant 0 : index
    %4 = vector.load %arg3[%c0_3, %c0_4] : memref<8x128xf32, #tpu.memory_space<vmem>>, vector<8x128xf32>
    tpu.vector_store %arg3[%c0_3, %c0_4], %3 {strides = array<i32>} : memref<8x128xf32, #tpu.memory_space<vmem>>, vector<8x128xf32>,
    return
  }
  func.func @transform_0(%arg0: i32) -> (i32, i32) {
    %c0_i32 = arith.constant 0 : i32
    %c0_i32_0 = arith.constant 0 : i32
    return %arg0, %c0_i32 : i32, i32
  }
  func.func @transform_1(%arg0: i32) -> (i32, i32) {
    %c0_i32 = arith.constant 0 : i32
    %c0_i32_0 = arith.constant 0 : i32
    %c0_i32_1 = arith.constant 0 : i32
    return %c0_i32, %c0_i32_0 : i32, i32
  }
  func.func @transform_2(%arg0: i32) -> (i32, i32) {
    %c0_i32 = arith.constant 0 : i32
    %c0_i32_0 = arith.constant 0 : i32
    return %arg0, %c0_i32 : i32, i32
  }
}

module attributes {stable_mosaic.version = 11 : i64} {
  func.func @decoder_layer_kernel(%arg0: i32, %arg1: memref<1x8x8xf32, #tpu.memory_space<vmem>>, %arg2: memref<1x8x10xf32, #tpu.memory_space<vmem>>, %arg3: memref<1x8x32xf32, #tpu.memory_space<vmem>>, %arg4: memref<1x10x32xf32, #tpu.memory_space<vmem>>, %arg5: memref<32x96xbf16, #tpu.memory_space<vmem>>, %arg6: memref<32x32xbf16, #tpu.memory_space<vmem>>, %arg7: memref<32x32xbf16, #tpu.memory_space<vmem>>, %arg8: memref<32x64xbf16, #tpu.memory_space<vmem>>, %arg9: memref<32x32xbf16, #tpu.memory_space<vmem>>, %arg10: memref<32x64xbf16, #tpu.memory_space<vmem>>, %arg11: memref<1x64xf32, #tpu.memory_space<vmem>>, %arg12: memref<64x32xbf16, #tpu.memory_space<vmem>>, %arg13: memref<1x32xf32, #tpu.memory_space<vmem>>, %arg14: memref<1x32xf32, #tpu.memory_space<vmem>>, %arg15: memref<1x32xf32, #tpu.memory_space<vmem>>, %arg16: memref<1x32xf32, #tpu.memory_space<vmem>>, %arg17: memref<1x32xf32, #tpu.memory_space<vmem>>, %arg18: memref<1x32xf32, #tpu.memory_space<vmem>>, %arg19: memref<1x32xf32, #tpu.memory_space<vmem>>, %arg20: memref<1x3xf32, #tpu.memory_space<vmem>>, %arg21: memref<1x8x32xf32, #tpu.memory_space<vmem>>) attributes {dimension_semantics = [#tpu.dimension_semantics<parallel>], iteration_bounds = array<i64: 2>, scalar_prefetch = 0 : i64, scratch_operands = 0 : i64, tpu.core_type = #tpu.core_type<tc>, window_params = [{transform_indices = @transform_0, window_bounds = array<i64: 1, 8, 8>}, {transform_indices = @transform_1, window_bounds = array<i64: 1, 8, 10>}, {transform_indices = @transform_2, window_bounds = array<i64: 1, 8, 32>}, {transform_indices = @transform_3, window_bounds = array<i64: 1, 10, 32>}, {pipeline_mode = #tpu.pipeline_mode<synchronous>, transform_indices = @transform_4, window_bounds = array<i64: 32, 96>}, {pipeline_mode = #tpu.pipeline_mode<synchronous>, transform_indices = @transform_5, window_bounds = array<i64: 32, 32>}, {pipeline_mode = #tpu.pipeline_mode<synchronous>, transform_indices = @transform_6, window_bounds = array<i64: 32, 32>}, {pipeline_mode = #tpu.pipeline_mode<synchronous>, transform_indices = @transform_7, window_bounds = array<i64: 32, 64>}, {pipeline_mode = #tpu.pipeline_mode<synchronous>, transform_indices = @transform_8, window_bounds = array<i64: 32, 32>}, {pipeline_mode = #tpu.pipeline_mode<synchronous>, transform_indices = @transform_9, window_bounds = array<i64: 32, 64>}, {pipeline_mode = #tpu.pipeline_mode<synchronous>, transform_indices = @transform_10, window_bounds = array<i64: 1, 64>}, {pipeline_mode = #tpu.pipeline_mode<synchronous>, transform_indices = @transform_11, window_bounds = array<i64: 64, 32>}, {pipeline_mode = #tpu.pipeline_mode<synchronous>, transform_indices = @transform_12, window_bounds = array<i64: 1, 32>}, {pipeline_mode = #tpu.pipeline_mode<synchronous>, transform_indices = @transform_13, window_bounds = array<i64: 1, 32>}, {pipeline_mode = #tpu.pipeline_mode<synchronous>, transform_indices = @transform_14, window_bounds = array<i64: 1, 32>}, {pipeline_mode = #tpu.pipeline_mode<synchronous>, transform_indices = @transform_15, window_bounds = array<i64: 1, 32>}, {pipeline_mode = #tpu.pipeline_mode<synchronous>, transform_indices = @transform_16, window_bounds = array<i64: 1, 32>}, {pipeline_mode = #tpu.pipeline_mode<synchronous>, transform_indices = @transform_17, window_bounds = array<i64: 1, 32>}, {pipeline_mode = #tpu.pipeline_mode<synchronous>, transform_indices = @transform_18, window_bounds = array<i64: 1, 32>}, {pipeline_mode = #tpu.pipeline_mode<synchronous>, transform_indices = @transform_19, window_bounds = array<i64: 1, 3>}, {transform_indices = @transform_20, window_bounds = array<i64: 1, 8, 32>}]} {
    %c0 = arith.constant 0 : index
    %c0_0 = arith.constant 0 : index
    %c0_1 = arith.constant 0 : index
    %0 = vector.load %arg3[%c0, %c0_0, %c0_1] : memref<1x8x32xf32, #tpu.memory_space<vmem>>, vector<1x8x32xf32>
    %1 = vector.shape_cast %0 : vector<1x8x32xf32> to vector<8x32xf32>
    %c0_2 = arith.constant 0 : index
    %c0_3 = arith.constant 0 : index
    %c0_4 = arith.constant 0 : index
    %2 = vector.load %arg4[%c0_2, %c0_3, %c0_4] : memref<1x10x32xf32, #tpu.memory_space<vmem>>, vector<1x10x32xf32>
    %3 = vector.shape_cast %2 : vector<1x10x32xf32> to vector<10x32xf32>
    %4 = arith.truncf %1 : vector<8x32xf32> to vector<8x32xbf16>
    %c0_5 = arith.constant 0 : index
    %c0_6 = arith.constant 0 : index
    %5 = vector.load %arg5[%c0_5, %c0_6] : memref<32x96xbf16, #tpu.memory_space<vmem>>, vector<32x96xbf16>
    %cst = arith.constant dense<0.000000e+00> : vector<8x96xf32>
    %6 = tpu.matmul %4, %5, %cst {dimension_numbers = #tpu.dot_dimension_numbers<[1], [0], [0], [1], [0, 0, 1, 1], [], []>} : vector<8x32xbf16>, vector<32x96xbf16>, vector<8x96xf32> -> vector<8x96xf32>
    %7 = vector.extract_strided_slice %6 {offsets = [0, 0], sizes = [8, 32], strides = [1, 1]} : vector<8x96xf32> to vector<8x32xf32>
    %8 = vector.extract_strided_slice %6 {offsets = [0, 32], sizes = [8, 32], strides = [1, 1]} : vector<8x96xf32> to vector<8x32xf32>
    %9 = vector.extract_strided_slice %6 {offsets = [0, 64], sizes = [8, 32], strides = [1, 1]} : vector<8x96xf32> to vector<8x32xf32>
    %c0_7 = arith.constant 0 : index
    %c0_8 = arith.constant 0 : index
    %c0_9 = arith.constant 0 : index
    %10 = vector.load %arg1[%c0_7, %c0_8, %c0_9] : memref<1x8x8xf32, #tpu.memory_space<vmem>>, vector<1x8x8xf32>
    %11 = vector.shape_cast %10 : vector<1x8x8xf32> to vector<8x8xf32>
    %c0_10 = arith.constant 0 : index
    %c0_11 = arith.constant 0 : index
    %12 = vector.load %arg6[%c0_10, %c0_11] : memref<32x32xbf16, #tpu.memory_space<vmem>>, vector<32x32xbf16>
    %cst_12 = arith.constant 5.000000e-01 : f32
    %13 = vector.broadcast %cst_12 : f32 to vector<8x8xf32>
    %14 = arith.cmpf ogt, %11, %13 : vector<8x8xf32>
    %15 = arith.truncf %7 : vector<8x32xf32> to vector<8x32xbf16>
    %16 = arith.truncf %8 : vector<8x32xf32> to vector<8x32xbf16>
    %17 = arith.truncf %9 : vector<8x32xf32> to vector<8x32xbf16>
    %18 = vector.extract_strided_slice %15 {offsets = [0, 0], sizes = [8, 8], strides = [1, 1]} : vector<8x32xbf16> to vector<8x8xbf16>
    %19 = vector.extract_strided_slice %16 {offsets = [0, 0], sizes = [8, 8], strides = [1, 1]} : vector<8x32xbf16> to vector<8x8xbf16>
    %20 = vector.extract_strided_slice %17 {offsets = [0, 0], sizes = [8, 8], strides = [1, 1]} : vector<8x32xbf16> to vector<8x8xbf16>
    %cst_13 = arith.constant dense<0.000000e+00> : vector<8x8xf32>
    %21 = tpu.matmul %18, %19, %cst_13 {dimension_numbers = #tpu.dot_dimension_numbers<[1], [1], [0], [0], [0, 0, 1, 0], [], []>} : vector<8x8xbf16>, vector<8x8xbf16>, vector<8x8xf32> -> vector<8x8xf32>
    %cst_14 = arith.constant 0.353553385 : f32
    %22 = vector.broadcast %cst_14 : f32 to vector<8x8xf32>
    %23 = arith.mulf %21, %22 : vector<8x8xf32>
    %cst_15 = arith.constant -1.000000e+30 : f32
    %24 = vector.broadcast %cst_15 : f32 to vector<8x8xf32>
    %25 = arith.select %14, %24, %23 : vector<8x8xi1>, vector<8x8xf32>
    %cst_16 = arith.constant dense<0xFF800000> : vector<8xf32>
    %26 = vector.multi_reduction <maximumf>, %25, %cst_16 [1] : vector<8x8xf32> to vector<8xf32>
    %27 = vector.shape_cast %26 : vector<8xf32> to vector<8x1xf32>
    %28 = vector.broadcast %27 : vector<8x1xf32> to vector<8x8xf32>
    %29 = arith.subf %25, %28 : vector<8x8xf32>
    %30 = math.exp %29 : vector<8x8xf32>
    %cst_17 = arith.constant 0.000000e+00 : f32
    %31 = vector.broadcast %cst_17 : f32 to vector<8x8xf32>
    %32 = arith.select %14, %31, %30 : vector<8x8xi1>, vector<8x8xf32>
    %cst_18 = arith.constant dense<0.000000e+00> : vector<8xf32>
    %33 = vector.multi_reduction <add>, %32, %cst_18 [1] : vector<8x8xf32> to vector<8xf32>
    %34 = vector.shape_cast %33 : vector<8xf32> to vector<8x1xf32>
    %cst_19 = arith.constant 9.99999971E-10 : f32
    %35 = vector.broadcast %cst_19 : f32 to vector<8x1xf32>
    %36 = arith.maximumf %34, %35 : vector<8x1xf32>
    %37 = tpu.reciprocal %36 {approx = true} : vector<8x1xf32> -> vector<8x1xf32>
    %38 = vector.broadcast %37 : vector<8x1xf32> to vector<8x8xf32>
    %39 = arith.mulf %32, %38 : vector<8x8xf32>
    %40 = arith.truncf %39 : vector<8x8xf32> to vector<8x8xbf16>
    %cst_20 = arith.constant dense<0.000000e+00> : vector<8x8xf32>
    %41 = tpu.matmul %40, %20, %cst_20 {dimension_numbers = #tpu.dot_dimension_numbers<[1], [0], [0], [1], [0, 0, 1, 1], [], []>} : vector<8x8xbf16>, vector<8x8xbf16>, vector<8x8xf32> -> vector<8x8xf32>
    %42 = vector.extract_strided_slice %15 {offsets = [0, 8], sizes = [8, 8], strides = [1, 1]} : vector<8x32xbf16> to vector<8x8xbf16>
    %43 = vector.extract_strided_slice %16 {offsets = [0, 8], sizes = [8, 8], strides = [1, 1]} : vector<8x32xbf16> to vector<8x8xbf16>
    %44 = vector.extract_strided_slice %17 {offsets = [0, 8], sizes = [8, 8], strides = [1, 1]} : vector<8x32xbf16> to vector<8x8xbf16>
    %cst_21 = arith.constant dense<0.000000e+00> : vector<8x8xf32>
    %45 = tpu.matmul %42, %43, %cst_21 {dimension_numbers = #tpu.dot_dimension_numbers<[1], [1], [0], [0], [0, 0, 1, 0], [], []>} : vector<8x8xbf16>, vector<8x8xbf16>, vector<8x8xf32> -> vector<8x8xf32>
    %cst_22 = arith.constant 0.353553385 : f32
    %46 = vector.broadcast %cst_22 : f32 to vector<8x8xf32>
    %47 = arith.mulf %45, %46 : vector<8x8xf32>
    %cst_23 = arith.constant -1.000000e+30 : f32
    %48 = vector.broadcast %cst_23 : f32 to vector<8x8xf32>
    %49 = arith.select %14, %48, %47 : vector<8x8xi1>, vector<8x8xf32>
    %cst_24 = arith.constant dense<0xFF800000> : vector<8xf32>
    %50 = vector.multi_reduction <maximumf>, %49, %cst_24 [1] : vector<8x8xf32> to vector<8xf32>
    %51 = vector.shape_cast %50 : vector<8xf32> to vector<8x1xf32>
    %52 = vector.broadcast %51 : vector<8x1xf32> to vector<8x8xf32>
    %53 = arith.subf %49, %52 : vector<8x8xf32>
    %54 = math.exp %53 : vector<8x8xf32>
    %cst_25 = arith.constant 0.000000e+00 : f32
    %55 = vector.broadcast %cst_25 : f32 to vector<8x8xf32>
    %56 = arith.select %14, %55, %54 : vector<8x8xi1>, vector<8x8xf32>
    %cst_26 = arith.constant dense<0.000000e+00> : vector<8xf32>
    %57 = vector.multi_reduction <add>, %56, %cst_26 [1] : vector<8x8xf32> to vector<8xf32>
    %58 = vector.shape_cast %57 : vector<8xf32> to vector<8x1xf32>
    %cst_27 = arith.constant 9.99999971E-10 : f32
    %59 = vector.broadcast %cst_27 : f32 to vector<8x1xf32>
    %60 = arith.maximumf %58, %59 : vector<8x1xf32>
    %61 = tpu.reciprocal %60 {approx = true} : vector<8x1xf32> -> vector<8x1xf32>
    %62 = vector.broadcast %61 : vector<8x1xf32> to vector<8x8xf32>
    %63 = arith.mulf %56, %62 : vector<8x8xf32>
    %64 = arith.truncf %63 : vector<8x8xf32> to vector<8x8xbf16>
    %cst_28 = arith.constant dense<0.000000e+00> : vector<8x8xf32>
    %65 = tpu.matmul %64, %44, %cst_28 {dimension_numbers = #tpu.dot_dimension_numbers<[1], [0], [0], [1], [0, 0, 1, 1], [], []>} : vector<8x8xbf16>, vector<8x8xbf16>, vector<8x8xf32> -> vector<8x8xf32>
    %66 = vector.extract_strided_slice %15 {offsets = [0, 16], sizes = [8, 8], strides = [1, 1]} : vector<8x32xbf16> to vector<8x8xbf16>
    %67 = vector.extract_strided_slice %16 {offsets = [0, 16], sizes = [8, 8], strides = [1, 1]} : vector<8x32xbf16> to vector<8x8xbf16>
    %68 = vector.extract_strided_slice %17 {offsets = [0, 16], sizes = [8, 8], strides = [1, 1]} : vector<8x32xbf16> to vector<8x8xbf16>
    %cst_29 = arith.constant dense<0.000000e+00> : vector<8x8xf32>
    %69 = tpu.matmul %66, %67, %cst_29 {dimension_numbers = #tpu.dot_dimension_numbers<[1], [1], [0], [0], [0, 0, 1, 0], [], []>} : vector<8x8xbf16>, vector<8x8xbf16>, vector<8x8xf32> -> vector<8x8xf32>
    %cst_30 = arith.constant 0.353553385 : f32
    %70 = vector.broadcast %cst_30 : f32 to vector<8x8xf32>
    %71 = arith.mulf %69, %70 : vector<8x8xf32>
    %cst_31 = arith.constant -1.000000e+30 : f32
    %72 = vector.broadcast %cst_31 : f32 to vector<8x8xf32>
    %73 = arith.select %14, %72, %71 : vector<8x8xi1>, vector<8x8xf32>
    %cst_32 = arith.constant dense<0xFF800000> : vector<8xf32>
    %74 = vector.multi_reduction <maximumf>, %73, %cst_32 [1] : vector<8x8xf32> to vector<8xf32>
    %75 = vector.shape_cast %74 : vector<8xf32> to vector<8x1xf32>
    %76 = vector.broadcast %75 : vector<8x1xf32> to vector<8x8xf32>
    %77 = arith.subf %73, %76 : vector<8x8xf32>
    %78 = math.exp %77 : vector<8x8xf32>
    %cst_33 = arith.constant 0.000000e+00 : f32
    %79 = vector.broadcast %cst_33 : f32 to vector<8x8xf32>
    %80 = arith.select %14, %79, %78 : vector<8x8xi1>, vector<8x8xf32>
    %cst_34 = arith.constant dense<0.000000e+00> : vector<8xf32>
    %81 = vector.multi_reduction <add>, %80, %cst_34 [1] : vector<8x8xf32> to vector<8xf32>
    %82 = vector.shape_cast %81 : vector<8xf32> to vector<8x1xf32>
    %cst_35 = arith.constant 9.99999971E-10 : f32
    %83 = vector.broadcast %cst_35 : f32 to vector<8x1xf32>
    %84 = arith.maximumf %82, %83 : vector<8x1xf32>
    %85 = tpu.reciprocal %84 {approx = true} : vector<8x1xf32> -> vector<8x1xf32>
    %86 = vector.broadcast %85 : vector<8x1xf32> to vector<8x8xf32>
    %87 = arith.mulf %80, %86 : vector<8x8xf32>
    %88 = arith.truncf %87 : vector<8x8xf32> to vector<8x8xbf16>
    %cst_36 = arith.constant dense<0.000000e+00> : vector<8x8xf32>
    %89 = tpu.matmul %88, %68, %cst_36 {dimension_numbers = #tpu.dot_dimension_numbers<[1], [0], [0], [1], [0, 0, 1, 1], [], []>} : vector<8x8xbf16>, vector<8x8xbf16>, vector<8x8xf32> -> vector<8x8xf32>
    %90 = vector.extract_strided_slice %15 {offsets = [0, 24], sizes = [8, 8], strides = [1, 1]} : vector<8x32xbf16> to vector<8x8xbf16>
    %91 = vector.extract_strided_slice %16 {offsets = [0, 24], sizes = [8, 8], strides = [1, 1]} : vector<8x32xbf16> to vector<8x8xbf16>
    %92 = vector.extract_strided_slice %17 {offsets = [0, 24], sizes = [8, 8], strides = [1, 1]} : vector<8x32xbf16> to vector<8x8xbf16>
    %cst_37 = arith.constant dense<0.000000e+00> : vector<8x8xf32>
    %93 = tpu.matmul %90, %91, %cst_37 {dimension_numbers = #tpu.dot_dimension_numbers<[1], [1], [0], [0], [0, 0, 1, 0], [], []>} : vector<8x8xbf16>, vector<8x8xbf16>, vector<8x8xf32> -> vector<8x8xf32>
    %cst_38 = arith.constant 0.353553385 : f32
    %94 = vector.broadcast %cst_38 : f32 to vector<8x8xf32>
    %95 = arith.mulf %93, %94 : vector<8x8xf32>
    %cst_39 = arith.constant -1.000000e+30 : f32
    %96 = vector.broadcast %cst_39 : f32 to vector<8x8xf32>
    %97 = arith.select %14, %96, %95 : vector<8x8xi1>, vector<8x8xf32>
    %cst_40 = arith.constant dense<0xFF800000> : vector<8xf32>
    %98 = vector.multi_reduction <maximumf>, %97, %cst_40 [1] : vector<8x8xf32> to vector<8xf32>
    %99 = vector.shape_cast %98 : vector<8xf32> to vector<8x1xf32>
    %100 = vector.broadcast %99 : vector<8x1xf32> to vector<8x8xf32>
    %101 = arith.subf %97, %100 : vector<8x8xf32>
    %102 = math.exp %101 : vector<8x8xf32>
    %cst_41 = arith.constant 0.000000e+00 : f32
    %103 = vector.broadcast %cst_41 : f32 to vector<8x8xf32>
    %104 = arith.select %14, %103, %102 : vector<8x8xi1>, vector<8x8xf32>
    %cst_42 = arith.constant dense<0.000000e+00> : vector<8xf32>
    %105 = vector.multi_reduction <add>, %104, %cst_42 [1] : vector<8x8xf32> to vector<8xf32>
    %106 = vector.shape_cast %105 : vector<8xf32> to vector<8x1xf32>
    %cst_43 = arith.constant 9.99999971E-10 : f32
    %107 = vector.broadcast %cst_43 : f32 to vector<8x1xf32>
    %108 = arith.maximumf %106, %107 : vector<8x1xf32>
    %109 = tpu.reciprocal %108 {approx = true} : vector<8x1xf32> -> vector<8x1xf32>
    %110 = vector.broadcast %109 : vector<8x1xf32> to vector<8x8xf32>
    %111 = arith.mulf %104, %110 : vector<8x8xf32>
    %112 = arith.truncf %111 : vector<8x8xf32> to vector<8x8xbf16>
    %cst_44 = arith.constant dense<0.000000e+00> : vector<8x8xf32>
    %113 = tpu.matmul %112, %92, %cst_44 {dimension_numbers = #tpu.dot_dimension_numbers<[1], [0], [0], [1], [0, 0, 1, 1], [], []>} : vector<8x8xbf16>, vector<8x8xbf16>, vector<8x8xf32> -> vector<8x8xf32>
    %114 = tpu.concatenate %41, %65, %89, %113 in 1 : vector<8x8xf32>, vector<8x8xf32>, vector<8x8xf32>, vector<8x8xf32> -> vector<8x32xf32>
    %115 = arith.truncf %114 : vector<8x32xf32> to vector<8x32xbf16>
    %cst_45 = arith.constant dense<0.000000e+00> : vector<8x32xf32>
    %116 = tpu.matmul %115, %12, %cst_45 {dimension_numbers = #tpu.dot_dimension_numbers<[1], [0], [0], [1], [0, 0, 1, 1], [], []>} : vector<8x32xbf16>, vector<32x32xbf16>, vector<8x32xf32> -> vector<8x32xf32>
    %c0_46 = arith.constant 0 : index
    %c0_47 = arith.constant 0 : index
    %117 = vector.load %arg20[%c0_46, %c0_47] : memref<1x3xf32, #tpu.memory_space<vmem>>, vector<1x1xf32>
    %c0_48 = arith.constant 0 : index
    %c0_49 = arith.constant 0 : index
    %118 = vector.load %arg14[%c0_48, %c0_49] : memref<1x32xf32, #tpu.memory_space<vmem>>, vector<1x32xf32>
    %c0_50 = arith.constant 0 : index
    %c0_51 = arith.constant 0 : index
    %119 = vector.load %arg15[%c0_50, %c0_51] : memref<1x32xf32, #tpu.memory_space<vmem>>, vector<1x32xf32>
    %120 = vector.broadcast %117 : vector<1x1xf32> to vector<8x32xf32>
    %121 = arith.mulf %116, %120 : vector<8x32xf32>
    %122 = arith.addf %121, %1 : vector<8x32xf32>
    %cst_52 = arith.constant dense<0.000000e+00> : vector<8xf32>
    %123 = vector.multi_reduction <add>, %122, %cst_52 [1] : vector<8x32xf32> to vector<8xf32>
    %124 = vector.shape_cast %123 : vector<8xf32> to vector<8x1xf32>
    %cst_53 = arith.constant 3.200000e+01 : f32
    %125 = vector.broadcast %cst_53 : f32 to vector<8x1xf32>
    %126 = arith.divf %124, %125 : vector<8x1xf32>
    %127 = vector.broadcast %126 : vector<8x1xf32> to vector<8x32xf32>
    %128 = arith.subf %122, %127 : vector<8x32xf32>
    %129 = arith.mulf %128, %128 : vector<8x32xf32>
    %cst_54 = arith.constant dense<0.000000e+00> : vector<8xf32>
    %130 = vector.multi_reduction <add>, %129, %cst_54 [1] : vector<8x32xf32> to vector<8xf32>
    %131 = vector.shape_cast %130 : vector<8xf32> to vector<8x1xf32>
    %cst_55 = arith.constant 3.200000e+01 : f32
    %132 = vector.broadcast %cst_55 : f32 to vector<8x1xf32>
    %133 = arith.divf %131, %132 : vector<8x1xf32>
    %134 = vector.broadcast %126 : vector<8x1xf32> to vector<8x32xf32>
    %135 = arith.subf %122, %134 : vector<8x32xf32>
    %cst_56 = arith.constant 9.99999974E-6 : f32
    %136 = vector.broadcast %cst_56 : f32 to vector<8x1xf32>
    %137 = arith.addf %133, %136 : vector<8x1xf32>
    %138 = math.rsqrt %137 : vector<8x1xf32>
    %139 = vector.broadcast %138 : vector<8x1xf32> to vector<8x32xf32>
    %140 = arith.mulf %135, %139 : vector<8x32xf32>
    %141 = vector.broadcast %118 : vector<1x32xf32> to vector<8x32xf32>
    %142 = arith.mulf %140, %141 : vector<8x32xf32>
    %143 = vector.broadcast %119 : vector<1x32xf32> to vector<8x32xf32>
    %144 = arith.addf %142, %143 : vector<8x32xf32>
    %145 = arith.truncf %144 : vector<8x32xf32> to vector<8x32xbf16>
    %c0_57 = arith.constant 0 : index
    %c0_58 = arith.constant 0 : index
    %146 = vector.load %arg7[%c0_57, %c0_58] : memref<32x32xbf16, #tpu.memory_space<vmem>>, vector<32x32xbf16>
    %cst_59 = arith.constant dense<0.000000e+00> : vector<8x32xf32>
    %147 = tpu.matmul %145, %146, %cst_59 {dimension_numbers = #tpu.dot_dimension_numbers<[1], [0], [0], [1], [0, 0, 1, 1], [], []>} : vector<8x32xbf16>, vector<32x32xbf16>, vector<8x32xf32> -> vector<8x32xf32>
    %148 = arith.truncf %3 : vector<10x32xf32> to vector<10x32xbf16>
    %c0_60 = arith.constant 0 : index
    %c0_61 = arith.constant 0 : index
    %149 = vector.load %arg8[%c0_60, %c0_61] : memref<32x64xbf16, #tpu.memory_space<vmem>>, vector<32x64xbf16>
    %cst_62 = arith.constant dense<0.000000e+00> : vector<10x64xf32>
    %150 = tpu.matmul %148, %149, %cst_62 {dimension_numbers = #tpu.dot_dimension_numbers<[1], [0], [0], [1], [0, 0, 1, 1], [], []>} : vector<10x32xbf16>, vector<32x64xbf16>, vector<10x64xf32> -> vector<10x64xf32>
    %151 = vector.extract_strided_slice %150 {offsets = [0, 0], sizes = [10, 32], strides = [1, 1]} : vector<10x64xf32> to vector<10x32xf32>
    %152 = vector.extract_strided_slice %150 {offsets = [0, 32], sizes = [10, 32], strides = [1, 1]} : vector<10x64xf32> to vector<10x32xf32>
    %c0_63 = arith.constant 0 : index
    %c0_64 = arith.constant 0 : index
    %c0_65 = arith.constant 0 : index
    %153 = vector.load %arg2[%c0_63, %c0_64, %c0_65] : memref<1x8x10xf32, #tpu.memory_space<vmem>>, vector<1x8x10xf32>
    %154 = vector.shape_cast %153 : vector<1x8x10xf32> to vector<8x10xf32>
    %c0_66 = arith.constant 0 : index
    %c0_67 = arith.constant 0 : index
    %155 = vector.load %arg9[%c0_66, %c0_67] : memref<32x32xbf16, #tpu.memory_space<vmem>>, vector<32x32xbf16>
    %cst_68 = arith.constant 5.000000e-01 : f32
    %156 = vector.broadcast %cst_68 : f32 to vector<8x10xf32>
    %157 = arith.cmpf ogt, %154, %156 : vector<8x10xf32>
    %158 = arith.truncf %147 : vector<8x32xf32> to vector<8x32xbf16>
    %159 = arith.truncf %151 : vector<10x32xf32> to vector<10x32xbf16>
    %160 = arith.truncf %152 : vector<10x32xf32> to vector<10x32xbf16>
    %161 = vector.extract_strided_slice %158 {offsets = [0, 0], sizes = [8, 8], strides = [1, 1]} : vector<8x32xbf16> to vector<8x8xbf16>
    %162 = vector.extract_strided_slice %159 {offsets = [0, 0], sizes = [10, 8], strides = [1, 1]} : vector<10x32xbf16> to vector<10x8xbf16>
    %163 = vector.extract_strided_slice %160 {offsets = [0, 0], sizes = [10, 8], strides = [1, 1]} : vector<10x32xbf16> to vector<10x8xbf16>
    %cst_69 = arith.constant dense<0.000000e+00> : vector<8x10xf32>
    %164 = tpu.matmul %161, %162, %cst_69 {dimension_numbers = #tpu.dot_dimension_numbers<[1], [1], [0], [0], [0, 0, 1, 0], [], []>} : vector<8x8xbf16>, vector<10x8xbf16>, vector<8x10xf32> -> vector<8x10xf32>
    %cst_70 = arith.constant 0.353553385 : f32
    %165 = vector.broadcast %cst_70 : f32 to vector<8x10xf32>
    %166 = arith.mulf %164, %165 : vector<8x10xf32>
    %cst_71 = arith.constant -1.000000e+30 : f32
    %167 = vector.broadcast %cst_71 : f32 to vector<8x10xf32>
    %168 = arith.select %157, %167, %166 : vector<8x10xi1>, vector<8x10xf32>
    %cst_72 = arith.constant dense<0xFF800000> : vector<8xf32>
    %169 = vector.multi_reduction <maximumf>, %168, %cst_72 [1] : vector<8x10xf32> to vector<8xf32>
    %170 = vector.shape_cast %169 : vector<8xf32> to vector<8x1xf32>
    %171 = vector.broadcast %170 : vector<8x1xf32> to vector<8x10xf32>
    %172 = arith.subf %168, %171 : vector<8x10xf32>
    %173 = math.exp %172 : vector<8x10xf32>
    %cst_73 = arith.constant 0.000000e+00 : f32
    %174 = vector.broadcast %cst_73 : f32 to vector<8x10xf32>
    %175 = arith.select %157, %174, %173 : vector<8x10xi1>, vector<8x10xf32>
    %cst_74 = arith.constant dense<0.000000e+00> : vector<8xf32>
    %176 = vector.multi_reduction <add>, %175, %cst_74 [1] : vector<8x10xf32> to vector<8xf32>
    %177 = vector.shape_cast %176 : vector<8xf32> to vector<8x1xf32>
    %cst_75 = arith.constant 9.99999971E-10 : f32
    %178 = vector.broadcast %cst_75 : f32 to vector<8x1xf32>
    %179 = arith.maximumf %177, %178 : vector<8x1xf32>
    %180 = tpu.reciprocal %179 {approx = true} : vector<8x1xf32> -> vector<8x1xf32>
    %181 = vector.broadcast %180 : vector<8x1xf32> to vector<8x10xf32>
    %182 = arith.mulf %175, %181 : vector<8x10xf32>
    %183 = arith.truncf %182 : vector<8x10xf32> to vector<8x10xbf16>
    %cst_76 = arith.constant dense<0.000000e+00> : vector<8x8xf32>
    %184 = tpu.matmul %183, %163, %cst_76 {dimension_numbers = #tpu.dot_dimension_numbers<[1], [0], [0], [1], [0, 0, 1, 1], [], []>} : vector<8x10xbf16>, vector<10x8xbf16>, vector<8x8xf32> -> vector<8x8xf32>
    %185 = vector.extract_strided_slice %158 {offsets = [0, 8], sizes = [8, 8], strides = [1, 1]} : vector<8x32xbf16> to vector<8x8xbf16>
    %186 = vector.extract_strided_slice %159 {offsets = [0, 8], sizes = [10, 8], strides = [1, 1]} : vector<10x32xbf16> to vector<10x8xbf16>
    %187 = vector.extract_strided_slice %160 {offsets = [0, 8], sizes = [10, 8], strides = [1, 1]} : vector<10x32xbf16> to vector<10x8xbf16>
    %cst_77 = arith.constant dense<0.000000e+00> : vector<8x10xf32>
    %188 = tpu.matmul %185, %186, %cst_77 {dimension_numbers = #tpu.dot_dimension_numbers<[1], [1], [0], [0], [0, 0, 1, 0], [], []>} : vector<8x8xbf16>, vector<10x8xbf16>, vector<8x10xf32> -> vector<8x10xf32>
    %cst_78 = arith.constant 0.353553385 : f32
    %189 = vector.broadcast %cst_78 : f32 to vector<8x10xf32>
    %190 = arith.mulf %188, %189 : vector<8x10xf32>
    %cst_79 = arith.constant -1.000000e+30 : f32
    %191 = vector.broadcast %cst_79 : f32 to vector<8x10xf32>
    %192 = arith.select %157, %191, %190 : vector<8x10xi1>, vector<8x10xf32>
    %cst_80 = arith.constant dense<0xFF800000> : vector<8xf32>
    %193 = vector.multi_reduction <maximumf>, %192, %cst_80 [1] : vector<8x10xf32> to vector<8xf32>
    %194 = vector.shape_cast %193 : vector<8xf32> to vector<8x1xf32>
    %195 = vector.broadcast %194 : vector<8x1xf32> to vector<8x10xf32>
    %196 = arith.subf %192, %195 : vector<8x10xf32>
    %197 = math.exp %196 : vector<8x10xf32>
    %cst_81 = arith.constant 0.000000e+00 : f32
    %198 = vector.broadcast %cst_81 : f32 to vector<8x10xf32>
    %199 = arith.select %157, %198, %197 : vector<8x10xi1>, vector<8x10xf32>
    %cst_82 = arith.constant dense<0.000000e+00> : vector<8xf32>
    %200 = vector.multi_reduction <add>, %199, %cst_82 [1] : vector<8x10xf32> to vector<8xf32>
    %201 = vector.shape_cast %200 : vector<8xf32> to vector<8x1xf32>
    %cst_83 = arith.constant 9.99999971E-10 : f32
    %202 = vector.broadcast %cst_83 : f32 to vector<8x1xf32>
    %203 = arith.maximumf %201, %202 : vector<8x1xf32>
    %204 = tpu.reciprocal %203 {approx = true} : vector<8x1xf32> -> vector<8x1xf32>
    %205 = vector.broadcast %204 : vector<8x1xf32> to vector<8x10xf32>
    %206 = arith.mulf %199, %205 : vector<8x10xf32>
    %207 = arith.truncf %206 : vector<8x10xf32> to vector<8x10xbf16>
    %cst_84 = arith.constant dense<0.000000e+00> : vector<8x8xf32>
    %208 = tpu.matmul %207, %187, %cst_84 {dimension_numbers = #tpu.dot_dimension_numbers<[1], [0], [0], [1], [0, 0, 1, 1], [], []>} : vector<8x10xbf16>, vector<10x8xbf16>, vector<8x8xf32> -> vector<8x8xf32>
    %209 = vector.extract_strided_slice %158 {offsets = [0, 16], sizes = [8, 8], strides = [1, 1]} : vector<8x32xbf16> to vector<8x8xbf16>
    %210 = vector.extract_strided_slice %159 {offsets = [0, 16], sizes = [10, 8], strides = [1, 1]} : vector<10x32xbf16> to vector<10x8xbf16>
    %211 = vector.extract_strided_slice %160 {offsets = [0, 16], sizes = [10, 8], strides = [1, 1]} : vector<10x32xbf16> to vector<10x8xbf16>
    %cst_85 = arith.constant dense<0.000000e+00> : vector<8x10xf32>
    %212 = tpu.matmul %209, %210, %cst_85 {dimension_numbers = #tpu.dot_dimension_numbers<[1], [1], [0], [0], [0, 0, 1, 0], [], []>} : vector<8x8xbf16>, vector<10x8xbf16>, vector<8x10xf32> -> vector<8x10xf32>
    %cst_86 = arith.constant 0.353553385 : f32
    %213 = vector.broadcast %cst_86 : f32 to vector<8x10xf32>
    %214 = arith.mulf %212, %213 : vector<8x10xf32>
    %cst_87 = arith.constant -1.000000e+30 : f32
    %215 = vector.broadcast %cst_87 : f32 to vector<8x10xf32>
    %216 = arith.select %157, %215, %214 : vector<8x10xi1>, vector<8x10xf32>
    %cst_88 = arith.constant dense<0xFF800000> : vector<8xf32>
    %217 = vector.multi_reduction <maximumf>, %216, %cst_88 [1] : vector<8x10xf32> to vector<8xf32>
    %218 = vector.shape_cast %217 : vector<8xf32> to vector<8x1xf32>
    %219 = vector.broadcast %218 : vector<8x1xf32> to vector<8x10xf32>
    %220 = arith.subf %216, %219 : vector<8x10xf32>
    %221 = math.exp %220 : vector<8x10xf32>
    %cst_89 = arith.constant 0.000000e+00 : f32
    %222 = vector.broadcast %cst_89 : f32 to vector<8x10xf32>
    %223 = arith.select %157, %222, %221 : vector<8x10xi1>, vector<8x10xf32>
    %cst_90 = arith.constant dense<0.000000e+00> : vector<8xf32>
    %224 = vector.multi_reduction <add>, %223, %cst_90 [1] : vector<8x10xf32> to vector<8xf32>
    %225 = vector.shape_cast %224 : vector<8xf32> to vector<8x1xf32>
    %cst_91 = arith.constant 9.99999971E-10 : f32
    %226 = vector.broadcast %cst_91 : f32 to vector<8x1xf32>
    %227 = arith.maximumf %225, %226 : vector<8x1xf32>
    %228 = tpu.reciprocal %227 {approx = true} : vector<8x1xf32> -> vector<8x1xf32>
    %229 = vector.broadcast %228 : vector<8x1xf32> to vector<8x10xf32>
    %230 = arith.mulf %223, %229 : vector<8x10xf32>
    %231 = arith.truncf %230 : vector<8x10xf32> to vector<8x10xbf16>
    %cst_92 = arith.constant dense<0.000000e+00> : vector<8x8xf32>
    %232 = tpu.matmul %231, %211, %cst_92 {dimension_numbers = #tpu.dot_dimension_numbers<[1], [0], [0], [1], [0, 0, 1, 1], [], []>} : vector<8x10xbf16>, vector<10x8xbf16>, vector<8x8xf32> -> vector<8x8xf32>
    %233 = vector.extract_strided_slice %158 {offsets = [0, 24], sizes = [8, 8], strides = [1, 1]} : vector<8x32xbf16> to vector<8x8xbf16>
    %234 = vector.extract_strided_slice %159 {offsets = [0, 24], sizes = [10, 8], strides = [1, 1]} : vector<10x32xbf16> to vector<10x8xbf16>
    %235 = vector.extract_strided_slice %160 {offsets = [0, 24], sizes = [10, 8], strides = [1, 1]} : vector<10x32xbf16> to vector<10x8xbf16>
    %cst_93 = arith.constant dense<0.000000e+00> : vector<8x10xf32>
    %236 = tpu.matmul %233, %234, %cst_93 {dimension_numbers = #tpu.dot_dimension_numbers<[1], [1], [0], [0], [0, 0, 1, 0], [], []>} : vector<8x8xbf16>, vector<10x8xbf16>, vector<8x10xf32> -> vector<8x10xf32>
    %cst_94 = arith.constant 0.353553385 : f32
    %237 = vector.broadcast %cst_94 : f32 to vector<8x10xf32>
    %238 = arith.mulf %236, %237 : vector<8x10xf32>
    %cst_95 = arith.constant -1.000000e+30 : f32
    %239 = vector.broadcast %cst_95 : f32 to vector<8x10xf32>
    %240 = arith.select %157, %239, %238 : vector<8x10xi1>, vector<8x10xf32>
    %cst_96 = arith.constant dense<0xFF800000> : vector<8xf32>
    %241 = vector.multi_reduction <maximumf>, %240, %cst_96 [1] : vector<8x10xf32> to vector<8xf32>
    %242 = vector.shape_cast %241 : vector<8xf32> to vector<8x1xf32>
    %243 = vector.broadcast %242 : vector<8x1xf32> to vector<8x10xf32>
    %244 = arith.subf %240, %243 : vector<8x10xf32>
    %245 = math.exp %244 : vector<8x10xf32>
    %cst_97 = arith.constant 0.000000e+00 : f32
    %246 = vector.broadcast %cst_97 : f32 to vector<8x10xf32>
    %247 = arith.select %157, %246, %245 : vector<8x10xi1>, vector<8x10xf32>
    %cst_98 = arith.constant dense<0.000000e+00> : vector<8xf32>
    %248 = vector.multi_reduction <add>, %247, %cst_98 [1] : vector<8x10xf32> to vector<8xf32>
    %249 = vector.shape_cast %248 : vector<8xf32> to vector<8x1xf32>
    %cst_99 = arith.constant 9.99999971E-10 : f32
    %250 = vector.broadcast %cst_99 : f32 to vector<8x1xf32>
    %251 = arith.maximumf %249, %250 : vector<8x1xf32>
    %252 = tpu.reciprocal %251 {approx = true} : vector<8x1xf32> -> vector<8x1xf32>
    %253 = vector.broadcast %252 : vector<8x1xf32> to vector<8x10xf32>
    %254 = arith.mulf %247, %253 : vector<8x10xf32>
    %255 = arith.truncf %254 : vector<8x10xf32> to vector<8x10xbf16>
    %cst_100 = arith.constant dense<0.000000e+00> : vector<8x8xf32>
    %256 = tpu.matmul %255, %235, %cst_100 {dimension_numbers = #tpu.dot_dimension_numbers<[1], [0], [0], [1], [0, 0, 1, 1], [], []>} : vector<8x10xbf16>, vector<10x8xbf16>, vector<8x8xf32> -> vector<8x8xf32>
    %257 = tpu.concatenate %184, %208, %232, %256 in 1 : vector<8x8xf32>, vector<8x8xf32>, vector<8x8xf32>, vector<8x8xf32> -> vector<8x32xf32>
    %258 = arith.truncf %257 : vector<8x32xf32> to vector<8x32xbf16>
    %cst_101 = arith.constant dense<0.000000e+00> : vector<8x32xf32>
    %259 = tpu.matmul %258, %155, %cst_101 {dimension_numbers = #tpu.dot_dimension_numbers<[1], [0], [0], [1], [0, 0, 1, 1], [], []>} : vector<8x32xbf16>, vector<32x32xbf16>, vector<8x32xf32> -> vector<8x32xf32>
    %c0_102 = arith.constant 0 : index
    %c1 = arith.constant 1 : index
    %260 = vector.load %arg20[%c0_102, %c1] : memref<1x3xf32, #tpu.memory_space<vmem>>, vector<1x1xf32>
    %c0_103 = arith.constant 0 : index
    %c0_104 = arith.constant 0 : index
    %261 = vector.load %arg16[%c0_103, %c0_104] : memref<1x32xf32, #tpu.memory_space<vmem>>, vector<1x32xf32>
    %c0_105 = arith.constant 0 : index
    %c0_106 = arith.constant 0 : index
    %262 = vector.load %arg17[%c0_105, %c0_106] : memref<1x32xf32, #tpu.memory_space<vmem>>, vector<1x32xf32>
    %263 = vector.broadcast %260 : vector<1x1xf32> to vector<8x32xf32>
    %264 = arith.mulf %259, %263 : vector<8x32xf32>
    %265 = arith.addf %264, %144 : vector<8x32xf32>
    %cst_107 = arith.constant dense<0.000000e+00> : vector<8xf32>
    %266 = vector.multi_reduction <add>, %265, %cst_107 [1] : vector<8x32xf32> to vector<8xf32>
    %267 = vector.shape_cast %266 : vector<8xf32> to vector<8x1xf32>
    %cst_108 = arith.constant 3.200000e+01 : f32
    %268 = vector.broadcast %cst_108 : f32 to vector<8x1xf32>
    %269 = arith.divf %267, %268 : vector<8x1xf32>
    %270 = vector.broadcast %269 : vector<8x1xf32> to vector<8x32xf32>
    %271 = arith.subf %265, %270 : vector<8x32xf32>
    %272 = arith.mulf %271, %271 : vector<8x32xf32>
    %cst_109 = arith.constant dense<0.000000e+00> : vector<8xf32>
    %273 = vector.multi_reduction <add>, %272, %cst_109 [1] : vector<8x32xf32> to vector<8xf32>
    %274 = vector.shape_cast %273 : vector<8xf32> to vector<8x1xf32>
    %cst_110 = arith.constant 3.200000e+01 : f32
    %275 = vector.broadcast %cst_110 : f32 to vector<8x1xf32>
    %276 = arith.divf %274, %275 : vector<8x1xf32>
    %277 = vector.broadcast %269 : vector<8x1xf32> to vector<8x32xf32>
    %278 = arith.subf %265, %277 : vector<8x32xf32>
    %cst_111 = arith.constant 9.99999974E-6 : f32
    %279 = vector.broadcast %cst_111 : f32 to vector<8x1xf32>
    %280 = arith.addf %276, %279 : vector<8x1xf32>
    %281 = math.rsqrt %280 : vector<8x1xf32>
    %282 = vector.broadcast %281 : vector<8x1xf32> to vector<8x32xf32>
    %283 = arith.mulf %278, %282 : vector<8x32xf32>
    %284 = vector.broadcast %261 : vector<1x32xf32> to vector<8x32xf32>
    %285 = arith.mulf %283, %284 : vector<8x32xf32>
    %286 = vector.broadcast %262 : vector<1x32xf32> to vector<8x32xf32>
    %287 = arith.addf %285, %286 : vector<8x32xf32>
    %c0_112 = arith.constant 0 : index
    %c0_113 = arith.constant 0 : index
    %288 = vector.load %arg10[%c0_112, %c0_113] : memref<32x64xbf16, #tpu.memory_space<vmem>>, vector<32x64xbf16>
    %c0_114 = arith.constant 0 : index
    %c0_115 = arith.constant 0 : index
    %289 = vector.load %arg11[%c0_114, %c0_115] : memref<1x64xf32, #tpu.memory_space<vmem>>, vector<1x64xf32>
    %c0_116 = arith.constant 0 : index
    %c0_117 = arith.constant 0 : index
    %290 = vector.load %arg12[%c0_116, %c0_117] : memref<64x32xbf16, #tpu.memory_space<vmem>>, vector<64x32xbf16>
    %c0_118 = arith.constant 0 : index
    %c0_119 = arith.constant 0 : index
    %291 = vector.load %arg13[%c0_118, %c0_119] : memref<1x32xf32, #tpu.memory_space<vmem>>, vector<1x32xf32>
    %292 = arith.truncf %287 : vector<8x32xf32> to vector<8x32xbf16>
    %cst_120 = arith.constant dense<0.000000e+00> : vector<8x64xf32>
    %293 = tpu.matmul %292, %288, %cst_120 {dimension_numbers = #tpu.dot_dimension_numbers<[1], [0], [0], [1], [0, 0, 1, 1], [], []>} : vector<8x32xbf16>, vector<32x64xbf16>, vector<8x64xf32> -> vector<8x64xf32>
    %294 = vector.broadcast %289 : vector<1x64xf32> to vector<8x64xf32>
    %295 = arith.addf %293, %294 : vector<8x64xf32>
    %cst_121 = arith.constant 0.000000e+00 : f32
    %296 = vector.broadcast %cst_121 : f32 to vector<8x64xf32>
    %297 = arith.maximumf %295, %296 : vector<8x64xf32>
    %298 = arith.truncf %297 : vector<8x64xf32> to vector<8x64xbf16>
    %cst_122 = arith.constant dense<0.000000e+00> : vector<8x32xf32>
    %299 = tpu.matmul %298, %290, %cst_122 {dimension_numbers = #tpu.dot_dimension_numbers<[1], [0], [0], [1], [0, 0, 1, 1], [], []>} : vector<8x64xbf16>, vector<64x32xbf16>, vector<8x32xf32> -> vector<8x32xf32>
    %300 = vector.broadcast %291 : vector<1x32xf32> to vector<8x32xf32>
    %301 = arith.addf %299, %300 : vector<8x32xf32>
    %c0_123 = arith.constant 0 : index
    %c2 = arith.constant 2 : index
    %302 = vector.load %arg20[%c0_123, %c2] : memref<1x3xf32, #tpu.memory_space<vmem>>, vector<1x1xf32>
    %c0_124 = arith.constant 0 : index
    %c0_125 = arith.constant 0 : index
    %303 = vector.load %arg18[%c0_124, %c0_125] : memref<1x32xf32, #tpu.memory_space<vmem>>, vector<1x32xf32>
    %c0_126 = arith.constant 0 : index
    %c0_127 = arith.constant 0 : index
    %304 = vector.load %arg19[%c0_126, %c0_127] : memref<1x32xf32, #tpu.memory_space<vmem>>, vector<1x32xf32>
    %305 = vector.broadcast %302 : vector<1x1xf32> to vector<8x32xf32>
    %306 = arith.mulf %301, %305 : vector<8x32xf32>
    %307 = arith.addf %306, %287 : vector<8x32xf32>
    %cst_128 = arith.constant dense<0.000000e+00> : vector<8xf32>
    %308 = vector.multi_reduction <add>, %307, %cst_128 [1] : vector<8x32xf32> to vector<8xf32>
    %309 = vector.shape_cast %308 : vector<8xf32> to vector<8x1xf32>
    %cst_129 = arith.constant 3.200000e+01 : f32
    %310 = vector.broadcast %cst_129 : f32 to vector<8x1xf32>
    %311 = arith.divf %309, %310 : vector<8x1xf32>
    %312 = vector.broadcast %311 : vector<8x1xf32> to vector<8x32xf32>
    %313 = arith.subf %307, %312 : vector<8x32xf32>
    %314 = arith.mulf %313, %313 : vector<8x32xf32>
    %cst_130 = arith.constant dense<0.000000e+00> : vector<8xf32>
    %315 = vector.multi_reduction <add>, %314, %cst_130 [1] : vector<8x32xf32> to vector<8xf32>
    %316 = vector.shape_cast %315 : vector<8xf32> to vector<8x1xf32>
    %cst_131 = arith.constant 3.200000e+01 : f32
    %317 = vector.broadcast %cst_131 : f32 to vector<8x1xf32>
    %318 = arith.divf %316, %317 : vector<8x1xf32>
    %319 = vector.broadcast %311 : vector<8x1xf32> to vector<8x32xf32>
    %320 = arith.subf %307, %319 : vector<8x32xf32>
    %cst_132 = arith.constant 9.99999974E-6 : f32
    %321 = vector.broadcast %cst_132 : f32 to vector<8x1xf32>
    %322 = arith.addf %318, %321 : vector<8x1xf32>
    %323 = math.rsqrt %322 : vector<8x1xf32>
    %324 = vector.broadcast %323 : vector<8x1xf32> to vector<8x32xf32>
    %325 = arith.mulf %320, %324 : vector<8x32xf32>
    %326 = vector.broadcast %303 : vector<1x32xf32> to vector<8x32xf32>
    %327 = arith.mulf %325, %326 : vector<8x32xf32>
    %328 = vector.broadcast %304 : vector<1x32xf32> to vector<8x32xf32>
    %329 = arith.addf %327, %328 : vector<8x32xf32>
    %c0_133 = arith.constant 0 : index
    %c0_134 = arith.constant 0 : index
    %c0_135 = arith.constant 0 : index
    %330 = vector.load %arg21[%c0_133, %c0_134, %c0_135] : memref<1x8x32xf32, #tpu.memory_space<vmem>>, vector<1x8x32xf32>
    %331 = vector.shape_cast %330 : vector<1x8x32xf32> to vector<8x32xf32>
    %332 = vector.shape_cast %329 : vector<8x32xf32> to vector<1x8x32xf32>
    tpu.vector_store %arg21[%c0_133, %c0_134, %c0_135], %332 {strides = array<i32>} : memref<1x8x32xf32, #tpu.memory_space<vmem>>, vector<1x8x32xf32>,
    return
  }
  func.func @transform_0(%arg0: i32) -> (i32, i32, i32) {
    %c0_i32 = arith.constant 0 : i32
    %c0_i32_0 = arith.constant 0 : i32
    %c0_i32_1 = arith.constant 0 : i32
    return %arg0, %c0_i32, %c0_i32_0 : i32, i32, i32
  }
  func.func @transform_1(%arg0: i32) -> (i32, i32, i32) {
    %c0_i32 = arith.constant 0 : i32
    %c0_i32_0 = arith.constant 0 : i32
    %c0_i32_1 = arith.constant 0 : i32
    return %arg0, %c0_i32, %c0_i32_0 : i32, i32, i32
  }
  func.func @transform_2(%arg0: i32) -> (i32, i32, i32) {
    %c0_i32 = arith.constant 0 : i32
    %c0_i32_0 = arith.constant 0 : i32
    %c0_i32_1 = arith.constant 0 : i32
    return %arg0, %c0_i32, %c0_i32_0 : i32, i32, i32
  }
  func.func @transform_3(%arg0: i32) -> (i32, i32, i32) {
    %c0_i32 = arith.constant 0 : i32
    %c0_i32_0 = arith.constant 0 : i32
    %c0_i32_1 = arith.constant 0 : i32
    return %arg0, %c0_i32, %c0_i32_0 : i32, i32, i32
  }
  func.func @transform_4(%arg0: i32) -> (i32, i32) {
    %c0_i32 = arith.constant 0 : i32
    %c0_i32_0 = arith.constant 0 : i32
    %c0_i32_1 = arith.constant 0 : i32
    return %c0_i32, %c0_i32_0 : i32, i32
  }
  func.func @transform_5(%arg0: i32) -> (i32, i32) {
    %c0_i32 = arith.constant 0 : i32
    %c0_i32_0 = arith.constant 0 : i32
    %c0_i32_1 = arith.constant 0 : i32
    return %c0_i32, %c0_i32_0 : i32, i32
  }
  func.func @transform_6(%arg0: i32) -> (i32, i32) {
    %c0_i32 = arith.constant 0 : i32
    %c0_i32_0 = arith.constant 0 : i32
    %c0_i32_1 = arith.constant 0 : i32
    return %c0_i32, %c0_i32_0 : i32, i32
  }
  func.func @transform_7(%arg0: i32) -> (i32, i32) {
    %c0_i32 = arith.constant 0 : i32
    %c0_i32_0 = arith.constant 0 : i32
    %c0_i32_1 = arith.constant 0 : i32
    return %c0_i32, %c0_i32_0 : i32, i32
  }
  func.func @transform_8(%arg0: i32) -> (i32, i32) {
    %c0_i32 = arith.constant 0 : i32
    %c0_i32_0 = arith.constant 0 : i32
    %c0_i32_1 = arith.constant 0 : i32
    return %c0_i32, %c0_i32_0 : i32, i32
  }
  func.func @transform_9(%arg0: i32) -> (i32, i32) {
    %c0_i32 = arith.constant 0 : i32
    %c0_i32_0 = arith.constant 0 : i32
    %c0_i32_1 = arith.constant 0 : i32
    return %c0_i32, %c0_i32_0 : i32, i32
  }
  func.func @transform_10(%arg0: i32) -> (i32, i32) {
    %c0_i32 = arith.constant 0 : i32
    %c0_i32_0 = arith.constant 0 : i32
    %c0_i32_1 = arith.constant 0 : i32
    return %c0_i32, %c0_i32_0 : i32, i32
  }
  func.func @transform_11(%arg0: i32) -> (i32, i32) {
    %c0_i32 = arith.constant 0 : i32
    %c0_i32_0 = arith.constant 0 : i32
    %c0_i32_1 = arith.constant 0 : i32
    return %c0_i32, %c0_i32_0 : i32, i32
  }
  func.func @transform_12(%arg0: i32) -> (i32, i32) {
    %c0_i32 = arith.constant 0 : i32
    %c0_i32_0 = arith.constant 0 : i32
    %c0_i32_1 = arith.constant 0 : i32
    return %c0_i32, %c0_i32_0 : i32, i32
  }
  func.func @transform_13(%arg0: i32) -> (i32, i32) {
    %c0_i32 = arith.constant 0 : i32
    %c0_i32_0 = arith.constant 0 : i32
    %c0_i32_1 = arith.constant 0 : i32
    return %c0_i32, %c0_i32_0 : i32, i32
  }
  func.func @transform_14(%arg0: i32) -> (i32, i32) {
    %c0_i32 = arith.constant 0 : i32
    %c0_i32_0 = arith.constant 0 : i32
    %c0_i32_1 = arith.constant 0 : i32
    return %c0_i32, %c0_i32_0 : i32, i32
  }
  func.func @transform_15(%arg0: i32) -> (i32, i32) {
    %c0_i32 = arith.constant 0 : i32
    %c0_i32_0 = arith.constant 0 : i32
    %c0_i32_1 = arith.constant 0 : i32
    return %c0_i32, %c0_i32_0 : i32, i32
  }
  func.func @transform_16(%arg0: i32) -> (i32, i32) {
    %c0_i32 = arith.constant 0 : i32
    %c0_i32_0 = arith.constant 0 : i32
    %c0_i32_1 = arith.constant 0 : i32
    return %c0_i32, %c0_i32_0 : i32, i32
  }
  func.func @transform_17(%arg0: i32) -> (i32, i32) {
    %c0_i32 = arith.constant 0 : i32
    %c0_i32_0 = arith.constant 0 : i32
    %c0_i32_1 = arith.constant 0 : i32
    return %c0_i32, %c0_i32_0 : i32, i32
  }
  func.func @transform_18(%arg0: i32) -> (i32, i32) {
    %c0_i32 = arith.constant 0 : i32
    %c0_i32_0 = arith.constant 0 : i32
    %c0_i32_1 = arith.constant 0 : i32
    return %c0_i32, %c0_i32_0 : i32, i32
  }
  func.func @transform_19(%arg0: i32) -> (i32, i32) {
    %c0_i32 = arith.constant 0 : i32
    %c0_i32_0 = arith.constant 0 : i32
    %c0_i32_1 = arith.constant 0 : i32
    return %c0_i32, %c0_i32_0 : i32, i32
  }
  func.func @transform_20(%arg0: i32) -> (i32, i32, i32) {
    %c0_i32 = arith.constant 0 : i32
    %c0_i32_0 = arith.constant 0 : i32
    %c0_i32_1 = arith.constant 0 : i32
    return %arg0, %c0_i32, %c0_i32_0 : i32, i32, i32
  }
}

</mosaic_0001>

<bundles_post_ra>
// kernel: transformer_forward.17
= control target key start
LH: loop header
LB: loop body
LE: loop exit
PB: predicated region body
PF: predicated region fallthrough
CT: control target
= control target key end

     0   :  { %s316_s9 = smov 0   ;;  %s339_s0 = inlined_call_operand.vmem [shape: f32[16,32], index: 0, kind: input, shape index: {}]   ;;  %s340_s1 = inlined_call_operand.vmem [shape: bf16[32,128], index: 1, kind: input, shape index: {}]   ;;  %s341_s2 = inlined_call_operand.vmem [shape: f32[16,128], index: 2, kind: output, shape index: {}]  }
   0x1 LB: > { %s256_s10 = sadd.s32 4294967295, %s297_s9   ;;  %p260_p0 = scmp.ge.s32.totalorder %s297_s9, 1  ;;  %s297_s9 = sphi %s316_s9, %s12_s9  }
   0x2   : > { %p111_p1 = scmp.lt.s32.totalorder %s297_s9, 3 }
   0x4   : > { %p112_p2 = pnand %p260_p0, %p111_p1 }
   0x5   : > { %v289_v0 = vld [vmem:[%s340_s1] sm:$0xff] (!%p112_p2)   ;;  %v299_v1 = vmov (!%p112_p2), 0.0   ;;  %v290_v2 = vld [vmem:[%s340_s1 + $0x8] sm:$0xff] (!%p112_p2)   ;;  %vm300_vm0 = vmmov (!%p112_p2), 0   ;;  %p131_p3 = scmp.lt.s32.totalorder (!%p112_p2), %s256_s10, 1  ;;  %vm158_vm1 = vcmask (!%p112_p2), 261120  }
   0x6   : > { %115 = sbr.rel (%p112_p2) target bundleno = 234 (0xea), region = 28  ;;  %271 = vmatprep.subr.bf16.mxu0 (!%p112_p2), %v299_v1  ;;  %275 = vmatprep.mubr.msk.bf16.mxu0 (!%p112_p2), %vm300_vm0, %v299_v1 }
   0x7   : > { %272 = vmatpush3.bf16.msra.mxu0 (!%p112_p2), %v289_v0 }
   0x8   : > { %273 = vmatprep.subr.bf16.mxu0 (!%p112_p2), %v299_v1 }
   0xb   : > { %274 = vmatpush3.bf16.msra.mxu0 (!%p112_p2), %v290_v2 }
   0xd   : > { %s343_s10 = smov (!%p131_p3, %s256_s10), 1 }
   0xe   : > { %s261_s15 = sshll.u32 %s343_s10, 3 }
   0xf   : > { %s134_s18 = scalar_lea.vmem %s339_s0, %s261_s15  ;;  %s138_s21 = scalar_lea.vmem %s341_s2, %s261_s15 }
  0x10   : > { %v140_v3 = vld [vmem:[%s134_s18] sm:$0xff] }
  0x11   : > { %v141_v4 = vpack.c.bf16 %v140_v3, %v140_v3 }
  0x13   : > { %276 = vmatmul.mubr.msk.bf16.vlgmr.msra.gmra.mrb[0].mxu0 %vm158_vm1, %v141_v4 }
  0xe6   : > { %v196_v5 = vpop.f32.mrb[0].mxu0 }
  0xe7   : > { %202 = vst [vmem:[%s138_s21] sm:$0xff] %v196_v5  ;;  %v277_v6 = vpop.f32.mrb[1].mxu0 }
  0xe8   : > { %v199_v7 = vpop.f32.mrb[2].mxu0 }
  0xe9   : > { %v278_v8 = vpop.f32.mrb[3].mxu0 }
  0xea PF: > { %s12_s9 = sadd.s32 1, %s297_s9  }
  0xeb   : > { %p9_p4 = scmp.ge.s32.totalorder %s12_s9, 4  }
  0xed   :  { %11 = sbr.rel (!%p9_p4) target bundleno = 1 (0x1), region = 58 }

// kernel: transformer_forward.9
= control target key start
LH: loop header
LB: loop body
LE: loop exit
PB: predicated region body
PF: predicated region fallthrough
CT: control target
= control target key end

     0   :  { %s1836_s25 = smov 0   ;;  %s2097_s0 = inlined_call_operand.vmem [shape: f32[2,10,10], index: 0, kind: input, shape index: {}]   ;;  %s2098_s1 = inlined_call_operand.vmem [shape: f32[2,10,32], index: 1, kind: input, shape index: {}]   ;;  %s2099_s2 = inlined_call_operand.vmem [shape: bf16[32,96], index: 2, kind: input, shape index: {}]   ;;  %s2100_s3 = inlined_call_operand.vmem [shape: bf16[32,32], index: 3, kind: input, shape index: {}]   ;;  %s2101_s4 = inlined_call_operand.vmem [shape: bf16[32,64], index: 4, kind: input, shape index: {}]   ;;  %s2102_s5 = inlined_call_operand.vmem [shape: f32[1,64], index: 5, kind: input, shape index: {}]   ;;  %s2103_s6 = inlined_call_operand.vmem [shape: bf16[64,32], index: 6, kind: input, shape index: {}]   ;;  %s2104_s7 = inlined_call_operand.vmem [shape: f32[1,32], index: 7, kind: input, shape index: {}]   ;;  %s2105_s8 = inlined_call_operand.vmem [shape: f32[1,32], index: 8, kind: input, shape index: {}]   ;;  %s2106_s9 = inlined_call_operand.vmem [shape: f32[1,32], index: 9, kind: input, shape index: {}]   ;;  %s2107_s10 = inlined_call_operand.vmem [shape: f32[1,32], index: 10, kind: input, shape index: {}]   ;;  %s2108_s11 = inlined_call_operand.vmem [shape: f32[1,32], index: 11, kind: input, shape index: {}]   ;;  %s2109_s12 = inlined_call_operand.vmem [shape: f32[1,2], index: 12, kind: input, shape index: {}]   ;;  %s2110_s13 = inlined_call_operand.vmem [shape: f32[2,10,32], index: 13, kind: output, shape index: {}]  }
   0x1 LB: > { %s1487_s26 = sadd.s32 4294967295, %s1746_s25   ;;  %p1491_p0 = scmp.ge.s32.totalorder %s1746_s25, 1  ;;  %s1746_s25 = sphi %s1836_s25, %s23_s25  }
   0x2   : > { %p397_p1 = scmp.lt.s32.totalorder %s1746_s25, 3 }
   0x4   : > { %p398_p2 = pnand %p1491_p0, %p397_p1 }
   0x5   : > { %v1690_v0 = vld [vmem:[%s2099_s2] sm:$0xff] (!%p398_p2)   ;;  %v1748_v1 = vmov (!%p398_p2), 0.0   ;;  %v1691_v2 = vld [vmem:[%s2099_s2 + $0x8] sm:$0xff] (!%p398_p2)   ;;  %vm1749_vm0 = vmmov (!%p398_p2), 0   ;;  %p446_p3 = scmp.lt.s32.totalorder (!%p398_p2), %s1487_s26, 1  ;;  %vm481_vm1 = vcmask (!%p398_p2), 261120  }
   0x6   : > { %401 = sbr.rel (%p398_p2) target bundleno = 2588 (0xa1c), region = 72  ;;  %1562 = vmatprep.subr.bf16.mxu0 (!%p398_p2), %v1748_v1  ;;  %1570 = vmatprep.subr.bf16.mxu1 (!%p398_p2), %v1748_v1  ;;  %s1750_s18 = smov (!%p398_p2), 120   ;;  %vm538_vm2 = vcmask (!%p398_p2), 64512   ;;  %vm590_vm4 = vcmask (!%p398_p2), 80896   ;;  %vm594_vm6 = vcmask (!%p398_p2), 74752   ;;  %vm624_vm7 = vcmask (!%p398_p2), 1044480  }
   0x7   : > { %1563 = vmatpush3.bf16.msra.mxu0 (!%p398_p2), %v1690_v0  ;;  %1566 = vmatprep.mubr.msk.bf16.mxu0 (!%p398_p2), %vm1749_vm0, %v1748_v1  ;;  %s1751_s19 = smov (!%p398_p2), 96   ;;  %s1752_s20 = smov (!%p398_p2), 80   ;;  %vm1088_vm8 = vcmask (!%p398_p2), 130048   ;;  %vm1091_vm9 = vcmask (!%p398_p2), 195584   ;;  %vm1170_vm10 = vcmask (!%p398_p2), 254976   ;;  %vm1321_vm11 = vcmask (!%p398_p2), 523264  }
   0x8   : > { %1564 = vmatprep.subr.bf16.mxu0 (!%p398_p2), %v1748_v1  ;;  %1572 = vmatprep.mubr.msk.bf16.mxu1 (!%p398_p2), %vm1749_vm0, %v1748_v1  ;;  %s1753_s21 = smov (!%p398_p2), 88   ;;  %s1754_s22 = smov (!%p398_p2), 72  }
   0x9   : > { %s1755_s23 = smov (!%p398_p2), 112   ;;  %s1756_s24 = smov (!%p398_p2), 104  }
   0xa   : > { %s1757_s29 = smov (!%p398_p2), 56   ;;  %s1758_s30 = smov (!%p398_p2), 64  }
   0xb   : > { %1565 = vmatpush3.bf16.msra.mxu0 (!%p398_p2), %v1691_v2  ;;  %s1759_s15 = smov (!%p398_p2), 48   ;;  %s1760_s16 = smov (!%p398_p2), 40  }
   0xc   : > { %1576 = vmatprep.subr.bf16.mxu0 (!%p398_p2), %v1748_v1 }
   0xd   : > { %s2112_s26 = smov (!%p446_p3, %s1487_s26), 1 }
   0xe   : > { %s1857_s14 = sshll.u32 %s2112_s26, 4  ;;  %s1764_s26 = smov 24  }
   0xf   : > { %s455_s17 = scalar_lea.vmem %s2098_s1, %s1857_s14  ;;  %s450_s28 = scalar_lea.vmem %s2097_s0, %s1857_s14 }
  0x10   : > { %v1864_v3 = vld [vmem:[%s455_s17] sm:$0xff]  ;;  %v1866_v4 = vld [vmem:[%s455_s17 + $0x8] sm:$0x3] }
  0x11   : > { %v464_v5 = vpack.c.bf16 %v1866_v4, %v1864_v3  ;;  %v1907_v22 = vld [vmem:[%s450_s28] sm:$0xff]  ;;  %v1909_v23 = vld [vmem:[%s450_s28 + $0x8] sm:$0x3] }
  0x12   : > { %vm532_vm3 = vcmp.gt.f32.partialorder %v1907_v22, 0.5  ;;  %vm533_vm5 = vcmp.gt.f32.partialorder %v1909_v23, 0.5 }
  0x13   : > { %1567 = vmatmul.mubr.msk.bf16.vlgmr.msra.gmra.mrb[0].mxu0 %vm481_vm1, %v464_v5 }
  0x14   : > { %1578 = vmatprep.mubr.msk.bf16.mxu0 %vm1749_vm0, %v1748_v1 }
  0xe6   : > { %v519_v6 = vpop.f32.mrb[0].mxu0 }
  0xe7   : > { %v1568_v7 = vpop.f32.mrb[1].mxu0 }
  0xe8   : > { %v522_v8 = vpop.f32.mrb[2].mxu0 }
  0xe9   : > { %v1873_v9 = vpack.c.bf16 %v522_v8, %v519_v6  ;;  %v1569_v10 = vpop.f32.mrb[3].mxu0 }
  0xeb   : > { %669 = vrot.lane.b32.xlu1 %v1873_v9, %s1750_s18  ;;  %536 = vrot.lane.b32.xlu0 %v1873_v9, %s1751_s19  ;;  %s1761_s19 = smov 8  }
  0xef   : > { %802 = vrot.lane.b32.xlu1 %v1873_v9, %s1752_s20  ;;  %671 = vrot.lane.b32.xlu0 %v1873_v9, %s1753_s21 }
  0xf3   : > { %933 = vrot.lane.b32.xlu1 %v1873_v9, %s1754_s22  ;;  %800 = vrot.lane.b32.xlu0 %v1873_v9, %s1755_s23  ;;  %s1762_s22 = smov 16  }
  0xf7   : > { %931 = vrot.lane.b32.xlu0 %v1873_v9, %s1756_s24 }
 0x15d   : > { %v537_v11 = vpop.permute.xlu0 %536  ;;  %v670_v14 = vpop.permute.xlu1 %669 }
 0x15e   : > { %v543_v12 = vsel %vm538_vm2, %v537_v11, 0 }
 0x15f   : > { %1571 = vmatpush3.bf16.xpose.msra.mxu1 %v543_v12 }
 0x160   : > { %1582 = vmatprep.subr.bf16.mxu1 %v1748_v1 }
 0x161   : > { %v672_v13 = vpop.permute.xlu0 %671  ;;  %v803_v16 = vpop.permute.xlu1 %802 }
 0x162   : > { %v677_v15 = vsel %vm538_vm2, %v672_v13, 0  ;;  %v808_v17 = vsel %vm538_vm2, %v803_v16, 0 }
 0x165   : > { %v934_v18 = vpop.permute.xlu1 %933  ;;  %v801_v19 = vpop.permute.xlu0 %800 }
 0x166   : > { %1573 = vmatmul.mubr.msk.bf16.vlgmr.msra.gmra.mrb[0].mxu1 %vm538_vm2, %v1873_v9  ;;  %v939_v20 = vsel %vm538_vm2, %v934_v18, 0 }
 0x167   : > { %1583 = vmatpush3.bf16.xpose.msra.mxu1 %v677_v15  ;;  %1584 = vmatprep.mubr.msk.bf16.mxu1 %vm1749_vm0, %v1748_v1 }
 0x168   : > { %1594 = vmatprep.subr.bf16.mxu1 %v1748_v1 }
 0x169   : > { %v932_v21 = vpop.permute.xlu0 %931 }
 0x16e   : > { %1585 = vmatmul.mubr.msk.bf16.vlgmr.msra.gmra.mrb[4].mxu1 %vm538_vm2, %v670_v14 }
 0x16f   : > { %1595 = vmatpush3.bf16.xpose.msra.mxu1 %v808_v17  ;;  %1596 = vmatprep.mubr.msk.bf16.mxu1 %vm1749_vm0, %v1748_v1 }
 0x170   : > { %1606 = vmatprep.subr.bf16.mxu1 %v1748_v1 }
 0x176   : > { %1597 = vmatmul.mubr.msk.bf16.vlgmr.msra.gmra.mrb[8].mxu1 %vm538_vm2, %v801_v19 }
 0x177   : > { %1607 = vmatpush3.bf16.xpose.msra.mxu1 %v939_v20  ;;  %1608 = vmatprep.mubr.msk.bf16.mxu1 %vm1749_vm0, %v1748_v1 }
 0x178   : > { %1618 = vmatprep.subr.bf16.mxu1 %v1748_v1 }
 0x17e   : > { %1609 = vmatmul.mubr.msk.bf16.vlgmr.msra.gmra.mrb[12].mxu1 %vm538_vm2, %v932_v21 }
 0x17f   : > { %1622 = vmatprep.mubr.msk.bf16.mxu1 %vm1749_vm0, %v1748_v1 }
 0x239   : > { %v579_v24 = vpop.f32.mrb[0].mxu1 }
 0x23a   : > { %v586_v25 = vmul.f32 0.35355338, %v579_v24  ;;  %v1574_v26 = vpop.f32.mrb[1].mxu1 }
 0x23b   : > { %v582_v27 = vpop.f32.mrb[2].mxu1 }
 0x23c   : > { %v587_v28 = vmul.f32 0.35355338, %v582_v27  ;;  %v1575_v29 = vpop.f32.mrb[3].mxu1  ;;  %v588_v30 = vsel %vm532_vm3, -1e+30, %v586_v25 }
 0x23d   : > { %v591_v31 = vsel %vm590_vm4, %v588_v30, -inf }
 0x23e   : > { %592 = vmax.xlane.f32.xlu1 %v591_v31  ;;  %v589_v32 = vsel %vm533_vm5, -1e+30, %v587_v28 }
 0x23f   : > { %v595_v33 = vsel %vm594_vm6, %v589_v32, -inf }
 0x240   : > { %596 = vmax.xlane.f32.xlu0 %v595_v33 }
 0x241   : > { %v713_v34 = vpop.f32.mrb[4].mxu1 }
 0x242   : > { %v720_v35 = vmul.f32 0.35355338, %v713_v34  ;;  %v1586_v36 = vpop.f32.mrb[5].mxu1 }
 0x243   : > { %v716_v37 = vpop.f32.mrb[6].mxu1 }
 0x244   : > { %v721_v38 = vmul.f32 0.35355338, %v716_v37  ;;  %v1587_v39 = vpop.f32.mrb[7].mxu1  ;;  %v722_v40 = vsel %vm532_vm3, -1e+30, %v720_v35 }
 0x245   : > { %v724_v41 = vsel %vm590_vm4, %v722_v40, -inf }
 0x246   : > { %725 = vmax.xlane.f32.xlu0 %v724_v41  ;;  %v723_v42 = vsel %vm533_vm5, -1e+30, %v721_v38 }
 0x247   : > { %v727_v43 = vsel %vm594_vm6, %v723_v42, -inf }
 0x248   : > { %728 = vmax.xlane.f32.xlu1 %v727_v43 }
 0x249   : > { %v844_v44 = vpop.f32.mrb[8].mxu1 }
 0x24a   : > { %v851_v45 = vmul.f32 0.35355338, %v844_v44  ;;  %v1598_v46 = vpop.f32.mrb[9].mxu1 }
 0x24b   : > { %v847_v47 = vpop.f32.mrb[10].mxu1 }
 0x24c   : > { %v852_v48 = vmul.f32 0.35355338, %v847_v47  ;;  %v1599_v49 = vpop.f32.mrb[11].mxu1  ;;  %v853_v50 = vsel %vm532_vm3, -1e+30, %v851_v45 }
 0x24d   : > { %v855_v51 = vsel %vm590_vm4, %v853_v50, -inf }
 0x24e   : > { %856 = vmax.xlane.f32.xlu0 %v855_v51  ;;  %v854_v52 = vsel %vm533_vm5, -1e+30, %v852_v48 }
 0x24f   : > { %v858_v53 = vsel %vm594_vm6, %v854_v52, -inf }
 0x250   : > { %859 = vmax.xlane.f32.xlu1 %v858_v53 }
 0x251   : > { %v975_v54 = vpop.f32.mrb[12].mxu1 }
 0x252   : > { %v982_v55 = vmul.f32 0.35355338, %v975_v54  ;;  %v1610_v56 = vpop.f32.mrb[13].mxu1 }
 0x253   : > { %v978_v57 = vpop.f32.mrb[14].mxu1 }
 0x254   : > { %v983_v58 = vmul.f32 0.35355338, %v978_v57  ;;  %v1611_v59 = vpop.f32.mrb[15].mxu1  ;;  %v984_v60 = vsel %vm532_vm3, -1e+30, %v982_v55 }
 0x255   : > { %v986_v61 = vsel %vm590_vm4, %v984_v60, -inf }
 0x256   : > { %987 = vmax.xlane.f32.xlu0 %v986_v61  ;;  %v985_v62 = vsel %vm533_vm5, -1e+30, %v983_v58 }
 0x257   : > { %v989_v63 = vsel %vm594_vm6, %v985_v62, -inf }
 0x258   : > { %990 = vmax.xlane.f32.xlu1 %v989_v63 }
 0x2cb   : > { %v593_v0 = vpop.xlane.xlu1 %592 }
 0x2cc   : > { %v598_v2 = vsub.f32 %v588_v30, %v593_v0 }
 0x2cd   : > { %v597_v5 = vpop.xlane.xlu0 %596 }
 0x2ce   : > { %v600_v6 = vmul.f32 1.442695, %v598_v2  ;;  %v599_v7 = vsub.f32 %v589_v32, %v597_v5 }
 0x2d0   : > { %1700 = vpow2.f32 %v600_v6  ;;  %v602_v8 = vmul.f32 1.442695, %v599_v7 }
 0x2d2   : > { %1702 = vpow2.f32 %v602_v8 }
 0x2d3   : > { %v726_v10 = vpop.xlane.xlu0 %725 }
 0x2d4   : > { %v730_v11 = vsub.f32 %v722_v40, %v726_v10 }
 0x2d5   : > { %v729_v24 = vpop.xlane.xlu1 %728 }
 0x2d6   : > { %v732_v12 = vmul.f32 1.442695, %v730_v11  ;;  %v731_v25 = vsub.f32 %v723_v42, %v729_v24 }
 0x2d8   : > { %1704 = vpow2.f32 %v732_v12  ;;  %v734_v28 = vmul.f32 1.442695, %v731_v25 }
 0x2da   : > { %v1701_v13 = vpop.eup %1700  ;;  %1706 = vpow2.f32 %v734_v28 }
 0x2db   : > { %v1939_v14 = vsel %vm532_vm3, 0.0, %v1701_v13  ;;  %v857_v27 = vpop.xlane.xlu0 %856 }
 0x2dc   : > { %v1703_v15 = vpop.eup %1702  ;;  %v606_v16 = vsel %vm590_vm4, %v1939_v14, 0.0  ;;  %v861_v31 = vsub.f32 %v853_v50, %v857_v27 }
 0x2dd   : > { %607 = vadd.xlane.f32.xlu0 %v606_v16  ;;  %v1945_v17 = vsel %vm533_vm5, 0.0, %v1703_v15  ;;  %v860_v26 = vpop.xlane.xlu1 %859 }
 0x2de   : > { %v609_v18 = vsel %vm594_vm6, %v1945_v17, 0.0  ;;  %v862_v29 = vsub.f32 %v854_v52, %v860_v26  ;;  %v863_v35 = vmul.f32 1.442695, %v861_v31 }
 0x2df   : > { %610 = vadd.xlane.f32.xlu1 %v609_v18 }
 0x2e0   : > { %v865_v33 = vmul.f32 1.442695, %v862_v29 }
 0x2e2   : > { %v1705_v19 = vpop.eup %1704  ;;  %1708 = vpow2.f32 %v865_v33 }
 0x2e3   : > { %v1951_v20 = vsel %vm532_vm3, 0.0, %v1705_v19  ;;  %v988_v32 = vpop.xlane.xlu0 %987  ;;  %1710 = vpow2.f32 %v863_v35 }
 0x2e4   : > { %v738_v21 = vsel %vm590_vm4, %v1951_v20, 0.0  ;;  %v992_v36 = vsub.f32 %v984_v60, %v988_v32  ;;  %v1707_v39 = vpop.eup %1706 }
 0x2e5   : > { %739 = vadd.xlane.f32.xlu0 %v738_v21  ;;  %v991_v30 = vpop.xlane.xlu1 %990  ;;  %v1959_v40 = vsel %vm533_vm5, 0.0, %v1707_v39 }
 0x2e6   : > { %v993_v34 = vsub.f32 %v985_v62, %v991_v30  ;;  %v994_v38 = vmul.f32 1.442695, %v992_v36  ;;  %v741_v43 = vsel %vm594_vm6, %v1959_v40, 0.0 }
 0x2e8   : > { %v996_v37 = vmul.f32 1.442695, %v993_v34 }
 0x2ea   : > { %1712 = vpow2.f32 %v996_v37 }
 0x2eb   : > { %1714 = vpow2.f32 %v994_v38 }
 0x2ec   : > { %v1709_v41 = vpop.eup %1708 }
 0x2ed   : > { %v1711_v42 = vpop.eup %1710  ;;  %v1965_v44 = vsel %vm533_vm5, 0.0, %v1709_v41 }
 0x2ee   : > { %v1969_v46 = vsel %vm532_vm3, 0.0, %v1711_v42  ;;  %v872_v48 = vsel %vm594_vm6, %v1965_v44, 0.0 }
 0x2ef   : > { %v869_v50 = vsel %vm590_vm4, %v1969_v46, 0.0 }
 0x2f0   : > { %751 = vrot.lane.b32.xlu1 %v1873_v9, %s1757_s29 }
 0x2f4   : > { %v1713_v45 = vpop.eup %1712 }
 0x2f5   : > { %v1715_v47 = vpop.eup %1714  ;;  %v1975_v49 = vsel %vm533_vm5, 0.0, %v1713_v45 }
 0x2f6   : > { %v1981_v51 = vsel %vm532_vm3, 0.0, %v1715_v47  ;;  %v1003_v52 = vsel %vm594_vm6, %v1975_v49, 0.0 }
 0x2f7   : > { %v1000_v53 = vsel %vm590_vm4, %v1981_v51, 0.0 }
 0x2fb   : > { %619 = vrot.lane.b32.xlu0 %v1873_v9, %s1758_s30 }
 0x314   : > { %742 = vadd.xlane.f32.xlu1 %v741_v43 }
 0x318   : > { %873 = vadd.xlane.f32.xlu1 %v872_v48 }
 0x31a   : > { %870 = vadd.xlane.f32.xlu0 %v869_v50 }
 0x31c   : > { %1004 = vadd.xlane.f32.xlu1 %v1003_v52 }
 0x31e   : > { %1001 = vadd.xlane.f32.xlu0 %v1000_v53  ;;  %v1763_v53 = vmov 0  }
 0x31f   : > { %1687 = vset.pattern.permute.xlu0 %v1763_v53 }
 0x32d   : > { %882 = vrot.lane.b32.xlu1 %v1873_v9, %s1759_s15 }
 0x334   : > { %1013 = vrot.lane.b32.xlu0 %v1873_v9, %s1760_s16 }
 0x36a   : > { %v608_v23 = vpop.xlane.xlu0 %607 }
 0x36b   : > { %v612_v54 = vmax.f32 %v608_v23, 1e-09  ;;  %v2028_v23 = vld [vmem:[%s2109_s12] ss:$0 sm:$0xff] }
 0x36c   : > { %v611_v55 = vpop.xlane.xlu1 %610 }
 0x36d   : > { %1716 = vrcp.f32 %v612_v54  ;;  %v613_v22 = vmax.f32 %v611_v55, 1e-09 }
 0x36f   : > { %1718 = vrcp.f32 %v613_v22 }
 0x370   : > { %v752_v62 = vpop.permute.xlu1 %751 }
 0x371   : > { %v757_v0 = vsel %vm624_vm7, %v752_v62, 0 }
 0x372   : > { %v740_v56 = vpop.xlane.xlu0 %739 }
 0x373   : > { %v744_v2 = vmax.f32 %v740_v56, 1e-09 }
 0x375   : > { %1720 = vrcp.f32 %v744_v2 }
 0x376   : > { %v620_v57 = vpop.permute.xlu0 %619 }
 0x377   : > { %v1717_v58 = vpop.eup %1716  ;;  %v626_v59 = vsel %vm624_vm7, %v620_v57, 0 }
 0x378   : > { %1577 = vmatpush3.bf16.msra.mxu0 %v626_v59  ;;  %v616_v61 = vmul.f32 %v1717_v58, %v1939_v14 }
 0x379   : > { %v1719_v60 = vpop.eup %1718  ;;  %1588 = vmatprep.subr.bf16.mxu0 %v1748_v1 }
 0x37a   : > { %v617_v9 = vmul.f32 %v1719_v60, %v1945_v17 }
 0x37c   : > { %v618_v63 = vpack.c.bf16 %v617_v9, %v616_v61 }
 0x37e   : > { %1579 = vmatmul.mubr.msk.bf16.vlgmr.msra.gmra.mrb[4].mxu0 %vm590_vm4, %v618_v63 }
 0x37f   : > { %1589 = vmatpush3.bf16.msra.mxu0 %v757_v0  ;;  %1590 = vmatprep.mubr.msk.bf16.mxu0 %vm1749_vm0, %v1748_v1  ;;  %v1721_v14 = vpop.eup %1720 }
 0x380   : > { %1600 = vmatprep.subr.bf16.mxu0 %v1748_v1  ;;  %v748_v18 = vmul.f32 %v1721_v14, %v1951_v20 }
 0x3a1   : > { %v743_v5 = vpop.xlane.xlu1 %742 }
 0x3a2   : > { %v745_v6 = vmax.f32 %v743_v5, 1e-09 }
 0x3a4   : > { %1722 = vrcp.f32 %v745_v6 }
 0x3a5   : > { %v874_v7 = vpop.xlane.xlu1 %873 }
 0x3a6   : > { %v876_v8 = vmax.f32 %v874_v7, 1e-09 }
 0x3a7   : > { %v871_v10 = vpop.xlane.xlu0 %870 }
 0x3a8   : > { %v875_v11 = vmax.f32 %v871_v10, 1e-09  ;;  %1724 = vrcp.f32 %v876_v8 }
 0x3a9   : > { %v1005_v12 = vpop.xlane.xlu1 %1004 }
 0x3aa   : > { %1726 = vrcp.f32 %v875_v11  ;;  %v1007_v17 = vmax.f32 %v1005_v12, 1e-09 }
 0x3ab   : > { %v1002_v13 = vpop.xlane.xlu0 %1001 }
 0x3ac   : > { %v1006_v15 = vmax.f32 %v1002_v13, 1e-09 }
 0x3ad   : > { %v883_v21 = vpop.permute.xlu1 %882 }
 0x3ae   : > { %v1723_v16 = vpop.eup %1722  ;;  %1728 = vrcp.f32 %v1006_v15  ;;  %v888_v26 = vsel %vm624_vm7, %v883_v21, 0 }
 0x3af   : > { %v749_v19 = vmul.f32 %v1723_v16, %v1959_v40  ;;  %1730 = vrcp.f32 %v1007_v17  ;;  %v1014_v29 = vpop.permute.xlu0 %1013 }
 0x3b0   : > { %v1019_v32 = vsel %vm624_vm7, %v1014_v29, 0 }
 0x3b1   : > { %v750_v24 = vpack.c.bf16 %v749_v19, %v748_v18 }
 0x3b2   : > { %v1725_v25 = vpop.eup %1724 }
 0x3b3   : > { %1591 = vmatmul.mubr.msk.bf16.vlgmr.msra.gmra.mrb[8].mxu0 %vm590_vm4, %v750_v24  ;;  %v880_v20 = vmul.f32 %v1725_v25, %v1965_v44  ;;  %v1692_v44 = vld [vmem:[%s2100_s3] sm:$0xff]  }
 0x3b4   : > { %v1727_v27 = vpop.eup %1726  ;;  %1601 = vmatpush3.bf16.msra.mxu0 %v888_v26  ;;  %1602 = vmatprep.mubr.msk.bf16.mxu0 %vm1749_vm0, %v1748_v1 }
 0x3b5   : > { %v879_v28 = vmul.f32 %v1727_v27, %v1969_v46  ;;  %1612 = vmatprep.subr.bf16.mxu0 %v1748_v1  ;;  %1619 = vmatpush3.bf16.msra.mxu1 %v1692_v44 }
 0x3b6   : > { %1620 = vmatprep.subr.bf16.mxu1 %v1748_v1 }
 0x3b7   : > { %v881_v30 = vpack.c.bf16 %v880_v20, %v879_v28 }
 0x3b8   : > { %v1729_v31 = vpop.eup %1728 }
 0x3b9   : > { %v1731_v33 = vpop.eup %1730  ;;  %v1010_v34 = vmul.f32 %v1729_v31, %v1981_v51 }
 0x3ba   : > { %v1011_v35 = vmul.f32 %v1731_v33, %v1975_v49  ;;  %v1693_v49 = vld [vmem:[%s2100_s3 + $0x8] sm:$0xff]  }
 0x3bb   : > { %1603 = vmatmul.mubr.msk.bf16.vlgmr.msra.gmra.mrb[12].mxu0 %vm590_vm4, %v881_v30  ;;  %1621 = vmatpush3.bf16.msra.mxu1 %v1693_v49 }
 0x3bc   : > { %1613 = vmatpush3.bf16.msra.mxu0 %v1019_v32  ;;  %1614 = vmatprep.mubr.msk.bf16.mxu0 %vm1749_vm0, %v1748_v1  ;;  %v1012_v36 = vpack.c.bf16 %v1011_v35, %v1010_v34  ;;  %v1695_v35 = vld [vmem:[%s2101_s4 + $0x8] sm:$0xff]  }
 0x3bd   : > { %1626 = vmatprep.subr.bf16.mxu0 %v1748_v1  ;;  %1634 = vmatprep.subr.bf16.mxu1 %v1748_v1 }
 0x3c3   : > { %1615 = vmatmul.mubr.msk.bf16.vlgmr.msra.gmra.mrb[16].mxu0 %vm590_vm4, %v1012_v36  ;;  %v1696_v36 = vld [vmem:[%s2103_s6] sm:$0xff]  }
 0x3c4   : > { %1630 = vmatprep.mubr.msk.bf16.mxu0 %vm1749_vm0, %v1748_v1 }
 0x451   : > { %v662_v37 = vpop.f32.mrb[4].mxu0 }
 0x452   : > { %v1580_v38 = vpop.f32.mrb[5].mxu0 }
 0x453   : > { %v665_v39 = vpop.f32.mrb[6].mxu0 }
 0x454   : > { %v1581_v40 = vpop.f32.mrb[7].mxu0 }
 0x486   : > { %v793_v41 = vpop.f32.mrb[8].mxu0 }
 0x487   : > { %v1592_v42 = vpop.f32.mrb[9].mxu0 }
 0x488   : > { %v796_v43 = vpop.f32.mrb[10].mxu0 }
 0x489   : > { %v1672_v45 = vpack.i.bf16 %v796_v43, %v793_v41  ;;  %v1593_v46 = vpop.f32.mrb[11].mxu0 }
 0x48b   : > { %1673 = vrot.lane.b32.xlu1 %v1672_v45, %s1761_s19  ;;  %v1513_v45 = vld [vmem:[%s2105_s8] ss:$0 sm:$0xff] }
 0x48e   : > { %v924_v47 = vpop.f32.mrb[12].mxu0 }
 0x48f   : > { %v1604_v48 = vpop.f32.mrb[13].mxu0 }
 0x490   : > { %v927_v50 = vpop.f32.mrb[14].mxu0 }
 0x491   : > { %v1677_v51 = vpack.i.bf16 %v927_v50, %v924_v47  ;;  %v1605_v52 = vpop.f32.mrb[15].mxu0  ;;  %v1514_v50 = vld [vmem:[%s2106_s9] ss:$0 sm:$0xff] }
 0x493   : > { %1678 = vrot.lane.b32.xlu0 %v1677_v51, %s1762_s22  ;;  %s460_s22 = scalar_lea.vmem %s2110_s13, %s1857_s14 }
 0x496   : > { %v1055_v54 = vpop.f32.mrb[16].mxu0 }
 0x497   : > { %v1616_v55 = vpop.f32.mrb[17].mxu0  ;;  %1160 = vperm.xlu0 %1687, %v2028_v23  }
 0x498   : > { %v1058_v22 = vpop.f32.mrb[18].mxu0  ;;  %v1698_v55 = vld [vmem:[%s2103_s6 + $0x10] sm:$0xff]  }
 0x499   : > { %v1682_v56 = vpack.i.bf16 %v1058_v22, %v1055_v54  ;;  %v1617_v57 = vpop.f32.mrb[19].mxu0  ;;  %v1699_v22 = vld [vmem:[%s2103_s6 + $0x18] sm:$0xff]  }
 0x49a   : > { %v1515_v57 = vld [vmem:[%s2102_s5] ss:$0 sm:$0xff] }
 0x49b   : > { %1683 = vrot.lane.b32.xlu1 %v1682_v56, %s1764_s26  ;;  %v1765_v56 = vmov 1  }
 0x49c   : > { %1688 = vset.pattern.permute.xlu1 %v1765_v56  ;;  %1689 = vset.pattern.permute.xlu0 %v1765_v56 }
 0x4fd   : > { %v1674_v58 = vpop.permute.xlu1 %1673 }
 0x4fe   : > { %v1676_v60 = vunpack.i.h.bf16 %v1674_v58  ;;  %v1675_v61 = vunpack.i.l.bf16 %v1674_v58 }
 0x500   : > { %v1087_v0 = vsel %vm538_vm2, %v665_v39, %v1676_v60  ;;  %v1086_v2 = vsel %vm538_vm2, %v662_v37, %v1675_v61  ;;  %v1697_v37 = vld [vmem:[%s2103_s6 + $0x8] sm:$0xff]  }
 0x505   : > { %v1679_v59 = vpop.permute.xlu0 %1678 }
 0x506   : > { %v1681_v9 = vunpack.i.h.bf16 %v1679_v59  ;;  %v1680_v62 = vunpack.i.l.bf16 %v1679_v59 }
 0x508   : > { %v1089_v7 = vsel %vm1088_vm8, %v1086_v2, %v1680_v62  ;;  %v1090_v8 = vsel %vm1088_vm8, %v1087_v0, %v1681_v9  ;;  %v1519_v2 = vld [vmem:[%s2104_s7] ss:$0 sm:$0xff] }
 0x50d   : > { %v1684_v63 = vpop.permute.xlu1 %1683 }
 0x50e   : > { %v1686_v5 = vunpack.i.h.bf16 %v1684_v63  ;;  %v1685_v6 = vunpack.i.l.bf16 %v1684_v63 }
 0x510   : > { %v1092_v10 = vsel %vm1091_vm9, %v1089_v7, %v1685_v6  ;;  %v1093_v11 = vsel %vm1091_vm9, %v1090_v8, %v1686_v5 }
 0x511   : > { %v1094_v12 = vpack.c.bf16 %v1093_v11, %v1092_v10 }
 0x513   : > { %1623 = vmatmul.mubr.msk.bf16.vlgmr.msra.gmra.mrb[16].mxu1 %vm481_vm1, %v1094_v12 }
 0x514   : > { %1642 = vmatprep.mubr.msk.bf16.mxu1 %vm1749_vm0, %v1748_v1  ;;  %1635 = vmatpush3.bf16.msra.mxu1 %v1696_v36 }
 0x515   : > { %1636 = vmatprep.subr.bf16.mxu1 %v1748_v1 }
 0x516   : > { %v1161_v13 = vpop.permute.xlu0 %1160 }
 0x518   : > { %1637 = vmatpush3.bf16.msra.mxu1 %v1697_v37  ;;  %v1526_v37 = vld [vmem:[%s2108_s11] ss:$0 sm:$0xff] }
 0x519   : > { %1638 = vmatprep.subr.bf16.mxu1 %v1748_v1 }
 0x51c   : > { %1639 = vmatpush3.bf16.msra.mxu1 %v1698_v55 }
 0x51d   : > { %1640 = vmatprep.subr.bf16.mxu1 %v1748_v1 }
 0x520   : > { %1641 = vmatpush3.bf16.msra.mxu1 %v1699_v22 }
 0x5e6   : > { %v1144_v14 = vpop.f32.mrb[16].mxu1 }
 0x5e7   : > { %v1163_v15 = vmul.f32 %v1161_v13, %v1144_v14  ;;  %v1624_v16 = vpop.f32.mrb[17].mxu1 }
 0x5e8   : > { %v1147_v17 = vpop.f32.mrb[18].mxu1 }
 0x5e9   : > { %v1164_v18 = vmul.f32 %v1161_v13, %v1147_v17  ;;  %v1625_v19 = vpop.f32.mrb[19].mxu1  ;;  %v1165_v21 = vadd.f32 %v1163_v15, %v1864_v3 }
 0x5eb   : > { %v1167_v24 = vsel %vm481_vm1, %v1165_v21, 0.0  ;;  %v1166_v25 = vadd.f32 %v1164_v18, %v1866_v4  ;;  %v1694_v4 = vld [vmem:[%s2101_s4] sm:$0xff]  }
 0x5ec   : > { %1168 = vadd.xlane.f32.xlu1 %v1167_v24  ;;  %1627 = vmatpush3.bf16.msra.mxu0 %v1694_v4 }
 0x5ed   : > { %v1171_v26 = vsel %vm1170_vm10, %v1166_v25, 0.0  ;;  %1628 = vmatprep.subr.bf16.mxu0 %v1748_v1 }
 0x5ee   : > { %1172 = vadd.xlane.f32.xlu0 %v1171_v26 }
 0x5f0   : > { %1629 = vmatpush3.bf16.msra.mxu0 %v1695_v35  ;;  %v1525_v35 = vld [vmem:[%s2107_s10] ss:$0 sm:$0xff] }
 0x679   : > { %v1169_v27 = vpop.xlane.xlu1 %1168 }
 0x67a   : > { %v1175_v28 = vmul.f32 0.03125, %v1169_v27 }
 0x67b   : > { %v1173_v20 = vpop.xlane.xlu0 %1172 }
 0x67c   : > { %v1177_v29 = vsub.f32 %v1165_v21, %v1175_v28  ;;  %v1176_v30 = vmul.f32 0.03125, %v1173_v20 }
 0x67e   : > { %v1178_v31 = vsub.f32 %v1166_v25, %v1176_v30  ;;  %v1179_v32 = vmul.f32 %v1177_v29, %v1177_v29 }
 0x680   : > { %v1181_v33 = vsel %vm481_vm1, %v1179_v32, 0.0  ;;  %v1180_v34 = vmul.f32 %v1178_v31, %v1178_v31 }
 0x681   : > { %1182 = vadd.xlane.f32.xlu1 %v1181_v33 }
 0x682   : > { %v1184_v3 = vsel %vm1170_vm10, %v1180_v34, 0.0 }
 0x683   : > { %1185 = vadd.xlane.f32.xlu0 %v1184_v3 }
 0x692   : > { %1369 = vperm.xlu1 %1688, %v2028_v23  }
 0x70e   : > { %v1183_v38 = vpop.xlane.xlu1 %1182 }
 0x70f   : > { %v1187_v39 = vmul.f32 0.03125, %v1183_v38 }
 0x710   : > { %v1186_v40 = vpop.xlane.xlu0 %1185 }
 0x711   : > { %v1189_v41 = vadd.f32 1e-05, %v1187_v39  ;;  %v1188_v42 = vmul.f32 0.03125, %v1186_v40 }
 0x712   : > { %v1370_v5 = vpop.permute.xlu1 %1369 }
 0x713   : > { %1732 = vrsqrt.f32 %v1189_v41  ;;  %v1190_v43 = vadd.f32 1e-05, %v1188_v42 }
 0x715   : > { %1734 = vrsqrt.f32 %v1190_v43 }
 0x71d   : > { %v1733_v44 = vpop.eup %1732 }
 0x71e   : > { %v1193_v46 = vmul.f32 %v1733_v44, %v1177_v29 }
 0x71f   : > { %v1735_v47 = vpop.eup %1734 }
 0x720   : > { %v1201_v48 = vmul.f32 %v1513_v45, %v1193_v46  ;;  %v1194_v49 = vmul.f32 %v1735_v47, %v1178_v31 }
 0x722   : > { %v1202_v51 = vmul.f32 %v1513_v45, %v1194_v49  ;;  %v1209_v52 = vadd.f32 %v1514_v50, %v1201_v48 }
 0x724   : > { %v1210_v53 = vadd.f32 %v1514_v50, %v1202_v51 }
 0x726   : > { %v1225_v54 = vpack.c.bf16 %v1210_v53, %v1209_v52 }
 0x728   : > { %1631 = vmatmul.mubr.msk.bf16.vlgmr.msra.gmra.mrb[20].mxu0 %vm481_vm1, %v1225_v54 }
 0x7fb   : > { %v1281_v58 = vpop.f32.mrb[20].mxu0 }
 0x7fc   : > { %v1282_v59 = vadd.f32 %v1515_v57, %v1281_v58  ;;  %v1632_v60 = vpop.f32.mrb[21].mxu0 }
 0x7fd   : > { %v1284_v61 = vpop.f32.mrb[22].mxu0 }
 0x7fe   : > { %v1285_v9 = vadd.f32 %v1515_v57, %v1284_v61  ;;  %v1633_v1 = vpop.f32.mrb[23].mxu0  ;;  %v1288_v62 = vmax.f32 %v1282_v59, 0.0 }
 0x800   : > { %v1289_v63 = vmax.f32 %v1285_v9, 0.0 }
 0x802   : > { %v1290_v0 = vpack.c.bf16 %v1289_v63, %v1288_v62 }
 0x804   : > { %1643 = vmatmul.mubr.msk.bf16.vlgmr.msra.gmra.mrb[20].mxu1 %vm1321_vm11, %v1290_v0 }
 0x8d7   : > { %v1359_v23 = vpop.f32.mrb[20].mxu1 }
 0x8d8   : > { %v1360_v6 = vadd.f32 %v1519_v2, %v1359_v23  ;;  %v1644_v7 = vpop.f32.mrb[21].mxu1 }
 0x8d9   : > { %v1362_v8 = vpop.f32.mrb[22].mxu1 }
 0x8da   : > { %v1372_v10 = vmul.f32 %v1370_v5, %v1360_v6  ;;  %v1363_v11 = vadd.f32 %v1519_v2, %v1362_v8  ;;  %v1645_v12 = vpop.f32.mrb[23].mxu1 }
 0x8dc   : > { %v1373_v13 = vmul.f32 %v1370_v5, %v1363_v11  ;;  %v1374_v14 = vadd.f32 %v1372_v10, %v1209_v52 }
 0x8de   : > { %v1376_v15 = vsel %vm481_vm1, %v1374_v14, 0.0  ;;  %v1375_v16 = vadd.f32 %v1373_v13, %v1210_v53 }
 0x8df   : > { %1377 = vadd.xlane.f32.xlu0 %v1376_v15 }
 0x8e0   : > { %v1379_v17 = vsel %vm1170_vm10, %v1375_v16, 0.0 }
 0x8e3   : > { %1380 = vadd.xlane.f32.xlu0 %v1379_v17 }
 0x96c   : > { %v1378_v18 = vpop.xlane.xlu0 %1377 }
 0x96d   : > { %v1382_v19 = vmul.f32 0.03125, %v1378_v18 }
 0x96f   : > { %v1384_v21 = vsub.f32 %v1374_v14, %v1382_v19 }
 0x970   : > { %v1381_v24 = vpop.xlane.xlu0 %1380 }
 0x971   : > { %v1383_v25 = vmul.f32 0.03125, %v1381_v24  ;;  %v1386_v26 = vmul.f32 %v1384_v21, %v1384_v21 }
 0x973   : > { %v1385_v27 = vsub.f32 %v1375_v16, %v1383_v25  ;;  %v1388_v28 = vsel %vm481_vm1, %v1386_v26, 0.0 }
 0x974   : > { %1389 = vadd.xlane.f32.xlu0 %v1388_v28 }
 0x975   : > { %v1387_v20 = vmul.f32 %v1385_v27, %v1385_v27 }
 0x977   : > { %v1391_v29 = vsel %vm1170_vm10, %v1387_v20, 0.0 }
 0x978   : > { %1392 = vadd.xlane.f32.xlu0 %v1391_v29 }
 0xa01   : > { %v1390_v30 = vpop.xlane.xlu0 %1389 }
 0xa02   : > { %v1394_v31 = vmul.f32 0.03125, %v1390_v30 }
 0xa04   : > { %v1396_v32 = vadd.f32 1e-05, %v1394_v31 }
 0xa05   : > { %v1393_v33 = vpop.xlane.xlu0 %1392 }
 0xa06   : > { %1736 = vrsqrt.f32 %v1396_v32  ;;  %v1395_v34 = vmul.f32 0.03125, %v1393_v33 }
 0xa08   : > { %v1397_v3 = vadd.f32 1e-05, %v1395_v34 }
 0xa0a   : > { %1738 = vrsqrt.f32 %v1397_v3 }
 0xa10   : > { %v1737_v4 = vpop.eup %1736 }
 0xa11   : > { %v1400_v36 = vmul.f32 %v1737_v4, %v1384_v21 }
 0xa13   : > { %v1408_v38 = vmul.f32 %v1525_v35, %v1400_v36 }
 0xa14   : > { %v1739_v39 = vpop.eup %1738 }
 0xa15   : > { %v1416_v40 = vadd.f32 %v1526_v37, %v1408_v38  ;;  %v1401_v41 = vmul.f32 %v1739_v39, %v1385_v27 }
 0xa17   : > { %1418 = vst.msk [vmem:[%s460_s22] sm:$0xff] %vm481_vm1, %v1416_v40  ;;  %v1409_v42 = vmul.f32 %v1525_v35, %v1401_v41 }
 0xa19   : > { %v1417_v43 = vadd.f32 %v1526_v37, %v1409_v42 }
 0xa1b   : > { %1419 = vst.msk [vmem:[%s460_s22 + $0x8] sm:$0x3] %vm1170_vm10, %v1417_v43 }
 0xa1c PF: > { %s23_s25 = sadd.s32 1, %s1746_s25  }
 0xa1d   : > { %p20_p4 = scmp.ge.s32.totalorder %s23_s25, 4  }
 0xa1f   :  { %22 = sbr.rel (!%p20_p4) target bundleno = 1 (0x1), region = 105 }

// kernel: transformer_forward.13
= control target key start
LH: loop header
LB: loop body
LE: loop exit
PB: predicated region body
PF: predicated region fallthrough
CT: control target
= control target key end

     0   :  { %s3136_s0 = inlined_call_operand.vmem [shape: f32[2,8,8], index: 0, kind: input, shape index: {}]   ;;  %s3137_s1 = inlined_call_operand.vmem [shape: f32[2,8,10], index: 1, kind: input, shape index: {}]   ;;  %s3138_s2 = inlined_call_operand.vmem [shape: f32[2,8,32], index: 2, kind: input, shape index: {}]   ;;  %s3139_s3 = inlined_call_operand.vmem [shape: f32[2,10,32], index: 3, kind: input, shape index: {}]   ;;  %s3140_s4 = inlined_call_operand.vmem [shape: bf16[32,96], index: 4, kind: input, shape index: {}]   ;;  %s3141_s5 = inlined_call_operand.vmem [shape: bf16[32,32], index: 5, kind: input, shape index: {}]   ;;  %s3142_s6 = inlined_call_operand.vmem [shape: bf16[32,32], index: 6, kind: input, shape index: {}]   ;;  %s3143_s7 = inlined_call_operand.vmem [shape: bf16[32,64], index: 7, kind: input, shape index: {}]   ;;  %s3144_s8 = inlined_call_operand.vmem [shape: bf16[32,32], index: 8, kind: input, shape index: {}]   ;;  %s3145_s9 = inlined_call_operand.vmem [shape: bf16[32,64], index: 9, kind: input, shape index: {}]   ;;  %s3146_s10 = inlined_call_operand.vmem [shape: f32[1,64], index: 10, kind: input, shape index: {}]   ;;  %s3147_s11 = inlined_call_operand.vmem [shape: bf16[64,32], index: 11, kind: input, shape index: {}]   ;;  %s3148_s12 = inlined_call_operand.vmem [shape: f32[1,32], index: 12, kind: input, shape index: {}]   ;;  %s3149_s13 = inlined_call_operand.vmem [shape: f32[1,32], index: 13, kind: input, shape index: {}]   ;;  %s3150_s14 = inlined_call_operand.vmem [shape: f32[1,32], index: 14, kind: input, shape index: {}]   ;;  %s3151_s15 = inlined_call_operand.vmem [shape: f32[1,32], index: 15, kind: input, shape index: {}]   ;;  %s3152_s16 = inlined_call_operand.vmem [shape: f32[1,32], index: 16, kind: input, shape index: {}]   ;;  %s3153_s17 = inlined_call_operand.vmem [shape: f32[1,32], index: 17, kind: input, shape index: {}]   ;;  %s3154_s18 = inlined_call_operand.vmem [shape: f32[1,32], index: 18, kind: input, shape index: {}]   ;;  %s3155_s19 = inlined_call_operand.vmem [shape: f32[1,3], index: 19, kind: input, shape index: {}]   ;;  %s3156_s20 = inlined_call_operand.vmem [shape: f32[2,8,32], index: 20, kind: output, shape index: {}]  }
   0x1   :  { %3167 = sst [smem:[#allocation2_spill]] %s3136_s0 }
   0x2   :  { %3168 = sst [smem:[#allocation3_spill]] %s3137_s1  ;;  %s2780_s1 = smov 0  }
   0x3   :  { %3169 = sst [smem:[#allocation4_spill]] %s3138_s2 }
   0x4   :  { %3170 = sst [smem:[#allocation5_spill]] %s3139_s3 }
   0x5   :  { %3171 = sst [smem:[#allocation6_spill]] %s3140_s4 }
   0x6 LB: > { %s2291_s22 = sadd.s32 4294967295, %s2654_s1   ;;  %p2295_p0 = scmp.ge.s32.totalorder %s2654_s1, 1  ;;  %s2654_s1 = sphi %s2780_s1, %s30_s1  }
   0x7   : > { %p589_p1 = scmp.lt.s32.totalorder %s2654_s1, 3 }
   0x9   : > { %p590_p2 = pnand %p2295_p0, %p589_p1 }
   0xa   : > { %s3172_s2 = sld [smem:[#allocation6_spill]] (!%p590_p2)  ;;  %v2656_v1 = vmov (!%p590_p2), 0.0   ;;  %vm2657_vm0 = vmmov (!%p590_p2), 0   ;;  %p658_p3 = scmp.lt.s32.totalorder (!%p590_p2), %s2291_s22, 1  ;;  %vm700_vm1 = vcmask (!%p590_p2), 261120   ;;  %vm754_vm2 = vcmask (!%p590_p2), 64512  }
   0xb   : > { %593 = sbr.rel (%p590_p2) target bundleno = 4314 (0x10da), region = 100  ;;  %2408 = vmatprep.subr.bf16.mxu1 (!%p590_p2), %v2656_v1  ;;  %2422 = vmatprep.subr.bf16.mxu0 (!%p590_p2), %v2656_v1  ;;  %s3173_s4 = sld [smem:[#allocation4_spill]] (!%p590_p2)  ;;  %vm822_vm4 = vcmask (!%p590_p2), 1043456   ;;  %vm1221_vm5 = vcmask (!%p590_p2), 130048   ;;  %vm1223_vm6 = vcmask (!%p590_p2), 195584   ;;  %vm1500_vm8 = vcmask (!%p590_p2), 80896  }
   0xc   : > { %2412 = vmatprep.mubr.msk.bf16.mxu1 (!%p590_p2), %vm2657_vm0, %v2656_v1  ;;  %2424 = vmatprep.mubr.msk.bf16.mxu0 (!%p590_p2), %vm2657_vm0, %v2656_v1  ;;  %s2658_s30 = smov (!%p590_p2), 120   ;;  %s3164_s0 = smov (!%p590_p2), 96   ;;  %vm1521_vm9 = vcmask (!%p590_p2), 1044480   ;;  %vm2122_vm10 = vcmask (!%p590_p2), 523264  }
   0xd   : > { %s3163_s21 = smov (!%p590_p2), 80   ;;  %s3158_s23 = smov (!%p590_p2), 88  }
   0xe   : > { %s3159_s24 = smov (!%p590_p2), 72   ;;  %s2663_s25 = smov (!%p590_p2), 112  }
   0xf   : > { %s3165_s3 = smov (!%p590_p2), 104   ;;  %s2665_s27 = smov (!%p590_p2), 56  }
  0x10   : > { %v2594_v0 = vld [vmem:[%s3172_s2] sm:$0xff] (!%p590_p2)   ;;  %v2595_v2 = vld [vmem:[%s3172_s2 + $0x8] sm:$0xff] (!%p590_p2)   ;;  %s2666_s28 = smov (!%p590_p2), 64  }
  0x11   : > { %2409 = vmatpush3.bf16.msra.mxu1 (!%p590_p2), %v2594_v0 }
  0x12   : > { %2410 = vmatprep.subr.bf16.mxu1 %v2656_v1  ;;  %s3186_s22 = smov (!%p658_p3, %s2291_s22), 1 }
  0x13   : > { %s2804_s26 = sshll.u32 %s3186_s22, 3 }
  0x14   : > { %s669_s29 = scalar_lea.vmem %s3173_s4, %s2804_s26  ;;  %s3174_s4 = sld [smem:[#allocation2_spill]] }
  0x15   : > { %2411 = vmatpush3.bf16.msra.mxu1 %v2595_v2  ;;  %v2811_v3 = vld [vmem:[%s669_s29] sm:$0xff] }
  0x16   : > { %2416 = vmatprep.subr.bf16.mxu1 %v2656_v1  ;;  %v683_v4 = vpack.c.bf16 %v2811_v3, %v2811_v3 }
  0x18   : > { %2413 = vmatmul.mubr.msk.bf16.vlgmr.msra.gmra.mrb[0].mxu1 %vm700_vm1, %v683_v4 }
  0x19   : > { %2418 = vmatprep.mubr.msk.bf16.mxu1 %vm2657_vm0, %v2656_v1 }
  0x1a   : > { %s661_s29 = scalar_lea.vmem %s3174_s4, %s2804_s26  ;;  %s2667_s4 = smov 40  }
  0x1b   : > { %v2859_v21 = vld [vmem:[%s661_s29] sm:$0xff]  ;;  %s2668_s29 = smov 48  }
  0x1c   : > { %vm749_vm3 = vcmp.gt.f32.partialorder %v2859_v21, 0.5 }
  0xeb   : > { %v738_v5 = vpop.f32.mrb[0].mxu1 }
  0xec   : > { %v2818_v6 = vpack.c.bf16 %v738_v5, %v738_v5  ;;  %v2414_v7 = vpop.f32.mrb[1].mxu1 }
  0xed   : > { %v741_v8 = vpop.f32.mrb[2].mxu1 }
  0xee   : > { %866 = vrot.lane.b32.xlu1 %v2818_v6, %s2658_s30  ;;  %752 = vrot.lane.b32.xlu0 %v2818_v6, %s3164_s0  ;;  %v2415_v9 = vpop.f32.mrb[3].mxu1  ;;  %s3175_s0 = sld [smem:[#allocation5_spill]] }
  0xf2   : > { %982 = vrot.lane.b32.xlu1 %v2818_v6, %s3163_s21  ;;  %868 = vrot.lane.b32.xlu0 %v2818_v6, %s3158_s23  ;;  %s3160_s23 = smov 24   ;;  %s3181_s21 = smov 88  }
  0xf6   : > { %1096 = vrot.lane.b32.xlu1 %v2818_v6, %s3159_s24  ;;  %980 = vrot.lane.b32.xlu0 %v2818_v6, %s2663_s25  ;;  %s3161_s24 = smov 16  }
  0xfa   : > { %1094 = vrot.lane.b32.xlu0 %v2818_v6, %s3165_s3 }
 0x160   : > { %v753_v10 = vpop.permute.xlu0 %752  ;;  %v867_v13 = vpop.permute.xlu1 %866 }
 0x161   : > { %v759_v11 = vsel %vm754_vm2, %v753_v10, 0 }
 0x162   : > { %2417 = vmatpush3.bf16.xpose.msra.mxu1 %v759_v11 }
 0x163   : > { %2428 = vmatprep.subr.bf16.mxu1 %v2656_v1 }
 0x164   : > { %v869_v12 = vpop.permute.xlu0 %868  ;;  %v983_v15 = vpop.permute.xlu1 %982 }
 0x165   : > { %v874_v14 = vsel %vm754_vm2, %v869_v12, 0  ;;  %v988_v16 = vsel %vm754_vm2, %v983_v15, 0 }
 0x168   : > { %v1097_v17 = vpop.permute.xlu1 %1096  ;;  %v981_v18 = vpop.permute.xlu0 %980 }
 0x169   : > { %2419 = vmatmul.mubr.msk.bf16.vlgmr.msra.gmra.mrb[4].mxu1 %vm754_vm2, %v2818_v6  ;;  %v1102_v19 = vsel %vm754_vm2, %v1097_v17, 0 }
 0x16a   : > { %2429 = vmatpush3.bf16.xpose.msra.mxu1 %v874_v14  ;;  %2430 = vmatprep.mubr.msk.bf16.mxu1 %vm2657_vm0, %v2656_v1 }
 0x16b   : > { %2440 = vmatprep.subr.bf16.mxu1 %v2656_v1 }
 0x16c   : > { %v1095_v20 = vpop.permute.xlu0 %1094 }
 0x171   : > { %2431 = vmatmul.mubr.msk.bf16.vlgmr.msra.gmra.mrb[8].mxu1 %vm754_vm2, %v867_v13 }
 0x172   : > { %2441 = vmatpush3.bf16.xpose.msra.mxu1 %v988_v16  ;;  %2442 = vmatprep.mubr.msk.bf16.mxu1 %vm2657_vm0, %v2656_v1 }
 0x173   : > { %2452 = vmatprep.subr.bf16.mxu1 %v2656_v1 }
 0x179   : > { %2443 = vmatmul.mubr.msk.bf16.vlgmr.msra.gmra.mrb[12].mxu1 %vm754_vm2, %v981_v18 }
 0x17a   : > { %2453 = vmatpush3.bf16.xpose.msra.mxu1 %v1102_v19  ;;  %2454 = vmatprep.mubr.msk.bf16.mxu1 %vm2657_vm0, %v2656_v1 }
 0x17b   : > { %2464 = vmatprep.subr.bf16.mxu1 %v2656_v1 }
 0x181   : > { %2455 = vmatmul.mubr.msk.bf16.vlgmr.msra.gmra.mrb[16].mxu1 %vm754_vm2, %v1095_v20 }
 0x182   : > { %2468 = vmatprep.mubr.msk.bf16.mxu1 %vm2657_vm0, %v2656_v1 }
 0x23c   : > { %v795_v22 = vpop.f32.mrb[4].mxu1 }
 0x23d   : > { %v801_v23 = vmul.f32 0.35355338, %v795_v22  ;;  %v2420_v24 = vpop.f32.mrb[5].mxu1 }
 0x23e   : > { %v798_v25 = vpop.f32.mrb[6].mxu1 }
 0x23f   : > { %v2421_v26 = vpop.f32.mrb[7].mxu1  ;;  %v802_v27 = vsel %vm749_vm3, -1e+30, %v801_v23 }
 0x240   : > { %v803_v28 = vsel %vm754_vm2, %v802_v27, -inf }
 0x241   : > { %804 = vmax.xlane.f32.xlu1 %v803_v28 }
 0x244   : > { %v910_v29 = vpop.f32.mrb[8].mxu1 }
 0x245   : > { %v916_v30 = vmul.f32 0.35355338, %v910_v29  ;;  %v2432_v31 = vpop.f32.mrb[9].mxu1 }
 0x246   : > { %v913_v32 = vpop.f32.mrb[10].mxu1 }
 0x247   : > { %v2433_v33 = vpop.f32.mrb[11].mxu1  ;;  %v917_v34 = vsel %vm749_vm3, -1e+30, %v916_v30 }
 0x248   : > { %v918_v35 = vsel %vm754_vm2, %v917_v34, -inf }
 0x249   : > { %919 = vmax.xlane.f32.xlu0 %v918_v35 }
 0x24c   : > { %v1024_v36 = vpop.f32.mrb[12].mxu1 }
 0x24d   : > { %v1030_v37 = vmul.f32 0.35355338, %v1024_v36  ;;  %v2444_v38 = vpop.f32.mrb[13].mxu1 }
 0x24e   : > { %v1027_v39 = vpop.f32.mrb[14].mxu1 }
 0x24f   : > { %v2445_v40 = vpop.f32.mrb[15].mxu1  ;;  %v1031_v41 = vsel %vm749_vm3, -1e+30, %v1030_v37 }
 0x250   : > { %v1032_v42 = vsel %vm754_vm2, %v1031_v41, -inf }
 0x251   : > { %1033 = vmax.xlane.f32.xlu0 %v1032_v42 }
 0x254   : > { %v1138_v43 = vpop.f32.mrb[16].mxu1 }
 0x255   : > { %v1144_v44 = vmul.f32 0.35355338, %v1138_v43  ;;  %v2456_v45 = vpop.f32.mrb[17].mxu1 }
 0x256   : > { %v1141_v46 = vpop.f32.mrb[18].mxu1 }
 0x257   : > { %v2457_v47 = vpop.f32.mrb[19].mxu1  ;;  %v1145_v48 = vsel %vm749_vm3, -1e+30, %v1144_v44 }
 0x258   : > { %v1146_v49 = vsel %vm754_vm2, %v1145_v48, -inf }
 0x259   : > { %1147 = vmax.xlane.f32.xlu1 %v1146_v49  ;;  %v2597_v49 = vld [vmem:[%s3141_s5 + $0x8] sm:$0xff]  }
 0x2ce   : > { %v805_v50 = vpop.xlane.xlu1 %804 }
 0x2cf   : > { %v806_v51 = vsub.f32 %v802_v27, %v805_v50 }
 0x2d1   : > { %v807_v52 = vmul.f32 1.442695, %v806_v51 }
 0x2d3   : > { %2610 = vpow2.f32 %v807_v52 }
 0x2d6   : > { %v920_v53 = vpop.xlane.xlu0 %919 }
 0x2d7   : > { %v921_v54 = vsub.f32 %v917_v34, %v920_v53  ;;  %v2671_v53 = vmov 0  }
 0x2d8   : > { %2591 = vset.pattern.permute.xlu0 %v2671_v53 }
 0x2d9   : > { %v922_v55 = vmul.f32 1.442695, %v921_v54  ;;  %v2923_v54 = vld [vmem:[%s3155_s19] ss:$0 sm:$0xff] }
 0x2db   : > { %2612 = vpow2.f32 %v922_v55 }
 0x2dd   : > { %v2611_v56 = vpop.eup %2610 }
 0x2de   : > { %v1034_v57 = vpop.xlane.xlu0 %1033  ;;  %v809_v58 = vsel %vm749_vm3, 0.0, %v2611_v56 }
 0x2df   : > { %v1035_v59 = vsub.f32 %v1031_v41, %v1034_v57  ;;  %v810_v60 = vsel %vm754_vm2, %v809_v58, 0.0 }
 0x2e0   : > { %811 = vadd.xlane.f32.xlu0 %v810_v60 }
 0x2e1   : > { %v1036_v61 = vmul.f32 1.442695, %v1035_v59 }
 0x2e3   : > { %2614 = vpow2.f32 %v1036_v61 }
 0x2e5   : > { %v2613_v62 = vpop.eup %2612 }
 0x2e6   : > { %v924_v63 = vsel %vm749_vm3, 0.0, %v2613_v62  ;;  %v1148_v7 = vpop.xlane.xlu1 %1147 }
 0x2e7   : > { %v925_v0 = vsel %vm754_vm2, %v924_v63, 0.0  ;;  %v1149_v8 = vsub.f32 %v1145_v48, %v1148_v7  ;;  %v2596_v48 = vld [vmem:[%s3141_s5] sm:$0xff]  }
 0x2e8   : > { %926 = vadd.xlane.f32.xlu1 %v925_v0  ;;  %2465 = vmatpush3.bf16.msra.mxu1 %v2596_v48 }
 0x2e9   : > { %v1150_v9 = vmul.f32 1.442695, %v1149_v8  ;;  %2466 = vmatprep.subr.bf16.mxu1 %v2656_v1 }
 0x2eb   : > { %2616 = vpow2.f32 %v1150_v9 }
 0x2ec   : > { %2467 = vmatpush3.bf16.msra.mxu1 %v2597_v49 }
 0x2ed   : > { %v2615_v2 = vpop.eup %2614  ;;  %2480 = vmatprep.subr.bf16.mxu1 %v2656_v1 }
 0x2ee   : > { %v1038_v4 = vsel %vm749_vm3, 0.0, %v2615_v2 }
 0x2ef   : > { %v1039_v5 = vsel %vm754_vm2, %v1038_v4, 0.0 }
 0x2f0   : > { %1040 = vadd.xlane.f32.xlu0 %v1039_v5 }
 0x2f5   : > { %v2617_v10 = vpop.eup %2616 }
 0x2f6   : > { %v1152_v11 = vsel %vm749_vm3, 0.0, %v2617_v10 }
 0x2f7   : > { %v1153_v12 = vsel %vm754_vm2, %v1152_v11, 0.0 }
 0x2f9   : > { %932 = vrot.lane.b32.xlu1 %v2818_v6, %s2665_s27  ;;  %s3162_s27 = smov 8  }
 0x306   : > { %817 = vrot.lane.b32.xlu0 %v2818_v6, %s2666_s28  ;;  %s3178_s28 = smov 96  }
 0x30a   : > { %1160 = vrot.lane.b32.xlu0 %v2818_v6, %s2667_s4  ;;  %s3177_s4 = sld [smem:[#allocation3_spill]] }
 0x31d   : > { %1154 = vadd.xlane.f32.xlu1 %v1153_v12 }
 0x32e   : > { %1046 = vrot.lane.b32.xlu1 %v2818_v6, %s2668_s29  ;;  %s665_s29 = scalar_lea.vmem %s3177_s4, %s2804_s26  ;;  %s3184_s4 = smov 24  }
 0x36d   : > { %v812_v13 = vpop.xlane.xlu0 %811 }
 0x36e   : > { %v813_v14 = vmax.f32 %v812_v13, 1e-09 }
 0x370   : > { %2618 = vrcp.f32 %v813_v14 }
 0x375   : > { %v927_v15 = vpop.xlane.xlu1 %926 }
 0x376   : > { %v928_v16 = vmax.f32 %v927_v15, 1e-09 }
 0x378   : > { %2620 = vrcp.f32 %v928_v16 }
 0x379   : > { %v933_v22 = vpop.permute.xlu1 %932 }
 0x37a   : > { %v2619_v17 = vpop.eup %2618  ;;  %v938_v6 = vsel %vm822_vm4, %v933_v22, 0 }
 0x37b   : > { %v815_v19 = vmul.f32 %v2619_v17, %v809_v58 }
 0x37d   : > { %v1041_v18 = vpop.xlane.xlu0 %1040  ;;  %v816_v23 = vpack.c.bf16 %v815_v19, %v815_v19  ;;  %v2598_v19 = vld [vmem:[%s3143_s7] sm:$0xff]  }
 0x37e   : > { %v1042_v27 = vmax.f32 %v1041_v18, 1e-09 }
 0x380   : > { %2622 = vrcp.f32 %v1042_v27 }
 0x381   : > { %v818_v20 = vpop.permute.xlu0 %817 }
 0x382   : > { %v824_v21 = vsel %vm822_vm4, %v818_v20, 0  ;;  %v2621_v24 = vpop.eup %2620 }
 0x383   : > { %2423 = vmatpush3.bf16.msra.mxu0 %v824_v21  ;;  %v930_v25 = vmul.f32 %v2621_v24, %v924_v63  ;;  %v2601_v24 = vld [vmem:[%s3142_s6 + $0x8] sm:$0xff]  }
 0x384   : > { %2434 = vmatprep.subr.bf16.mxu0 %v2656_v1 }
 0x385   : > { %v931_v26 = vpack.c.bf16 %v930_v25, %v930_v25  ;;  %v1161_v34 = vpop.permute.xlu0 %1160 }
 0x386   : > { %2425 = vmatmul.mubr.msk.bf16.vlgmr.msra.gmra.mrb[0].mxu0 %vm754_vm2, %v816_v23  ;;  %v1166_v36 = vsel %vm822_vm4, %v1161_v34, 0  ;;  %v2600_v23 = vld [vmem:[%s3142_s6] sm:$0xff]  }
 0x387   : > { %2435 = vmatpush3.bf16.msra.mxu0 %v938_v6  ;;  %2436 = vmatprep.mubr.msk.bf16.mxu0 %vm2657_vm0, %v2656_v1 }
 0x388   : > { %2446 = vmatprep.subr.bf16.mxu0 %v2656_v1 }
 0x38a   : > { %v2623_v28 = vpop.eup %2622 }
 0x38b   : > { %v1044_v31 = vmul.f32 %v2623_v28, %v1038_v4  ;;  %v2317_v28 = vld [vmem:[%s3149_s13] ss:$0 sm:$0xff] }
 0x38d   : > { %v1045_v35 = vpack.c.bf16 %v1044_v31, %v1044_v31 }
 0x38e   : > { %2437 = vmatmul.mubr.msk.bf16.vlgmr.msra.gmra.mrb[4].mxu0 %vm754_vm2, %v931_v26 }
 0x38f   : > { %2448 = vmatprep.mubr.msk.bf16.mxu0 %vm2657_vm0, %v2656_v1 }
 0x3aa   : > { %v1155_v29 = vpop.xlane.xlu1 %1154 }
 0x3ab   : > { %v1156_v30 = vmax.f32 %v1155_v29, 1e-09 }
 0x3ad   : > { %2624 = vrcp.f32 %v1156_v30  ;;  %v2318_v30 = vld [vmem:[%s3150_s14] ss:$0 sm:$0xff] }
 0x3ae   : > { %v1047_v32 = vpop.permute.xlu1 %1046 }
 0x3af   : > { %v1052_v33 = vsel %vm822_vm4, %v1047_v32, 0 }
 0x3b0   : > { %2447 = vmatpush3.bf16.msra.mxu0 %v1052_v33 }
 0x3b1   : > { %2458 = vmatprep.subr.bf16.mxu0 %v2656_v1 }
 0x3b3   : > { %2449 = vmatmul.mubr.msk.bf16.vlgmr.msra.gmra.mrb[8].mxu0 %vm754_vm2, %v1045_v35 }
 0x3b4   : > { %2459 = vmatpush3.bf16.msra.mxu0 %v1166_v36  ;;  %2460 = vmatprep.mubr.msk.bf16.mxu0 %vm2657_vm0, %v2656_v1 }
 0x3b5   : > { %2472 = vmatprep.subr.bf16.mxu0 %v2656_v1 }
 0x3b7   : > { %v2625_v37 = vpop.eup %2624 }
 0x3b8   : > { %v1158_v38 = vmul.f32 %v2625_v37, %v1152_v11 }
 0x3ba   : > { %v1159_v39 = vpack.c.bf16 %v1158_v38, %v1158_v38 }
 0x3bc   : > { %2461 = vmatmul.mubr.msk.bf16.vlgmr.msra.gmra.mrb[12].mxu0 %vm754_vm2, %v1159_v39 }
 0x3bd   : > { %2476 = vmatprep.mubr.msk.bf16.mxu0 %vm2657_vm0, %v2656_v1  ;;  %2473 = vmatpush3.bf16.msra.mxu0 %v2600_v23 }
 0x3be   : > { %2474 = vmatprep.subr.bf16.mxu0 %v2656_v1 }
 0x3c1   : > { %2475 = vmatpush3.bf16.msra.mxu0 %v2601_v24 }
 0x3c2   : > { %2488 = vmatprep.subr.bf16.mxu0 %v2656_v1 }
 0x459   : > { %v860_v40 = vpop.f32.mrb[0].mxu0 }
 0x45a   : > { %v2426_v41 = vpop.f32.mrb[1].mxu0 }
 0x45b   : > { %v863_v42 = vpop.f32.mrb[2].mxu0 }
 0x45c   : > { %v2427_v43 = vpop.f32.mrb[3].mxu0 }
 0x461   : > { %v974_v44 = vpop.f32.mrb[4].mxu0 }
 0x462   : > { %1209 = vrot.lane.b32.xlu1 %v974_v44, %s3162_s27  ;;  %v2438_v45 = vpop.f32.mrb[5].mxu0  ;;  %s3182_s27 = smov 8  }
 0x463   : > { %v977_v46 = vpop.f32.mrb[6].mxu0 }
 0x464   : > { %v2439_v47 = vpop.f32.mrb[7].mxu0 }
 0x486   : > { %v1088_v50 = vpop.f32.mrb[8].mxu0 }
 0x487   : > { %1213 = vrot.lane.b32.xlu0 %v1088_v50, %s3161_s24  ;;  %v2450_v51 = vpop.f32.mrb[9].mxu0  ;;  %s2352_s24 = sshll.u32 %s3186_s22, 4  ;;  %s3179_s22 = smov 80  }
 0x488   : > { %v1091_v52 = vpop.f32.mrb[10].mxu0  ;;  %s674_s3 = scalar_lea.vmem %s3175_s0, %s2352_s24  ;;  %s3180_s0 = smov 72  }
 0x489   : > { %v2451_v55 = vpop.f32.mrb[11].mxu0  ;;  %v681_v20 = vld [vmem:[%s674_s3] sm:$0xff]  ;;  %v682_v21 = vld [vmem:[%s674_s3 + $0x8] sm:$0x3] }
 0x48a   : > { %v1383_v22 = vpack.c.bf16 %v682_v21, %v681_v20  ;;  %v3008_v55 = vld [vmem:[%s665_s29] sm:$0xff] }
 0x48b   : > { %1290 = vperm.xlu0 %2591, %v2923_v54   ;;  %vm1449_vm7 = vcmp.gt.f32.partialorder %v3008_v55, 0.5 }
 0x48f   : > { %v1202_v56 = vpop.f32.mrb[12].mxu0 }
 0x490   : > { %1217 = vrot.lane.b32.xlu1 %v1202_v56, %s3160_s23  ;;  %v2462_v57 = vpop.f32.mrb[13].mxu0  ;;  %s3176_s23 = smov 104  }
 0x491   : > { %v1205_v58 = vpop.f32.mrb[14].mxu0 }
 0x492   : > { %v2463_v59 = vpop.f32.mrb[15].mxu0 }
 0x4d4   : > { %v1210_v60 = vpop.permute.xlu1 %1209 }
 0x4d5   : > { %v1220_v62 = vsel %vm754_vm2, %v860_v40, %v1210_v60 }
 0x4f9   : > { %v1214_v61 = vpop.permute.xlu0 %1213 }
 0x4fa   : > { %v1222_v63 = vsel %vm1221_vm5, %v1220_v62, %v1214_v61 }
 0x502   : > { %v1218_v0 = vpop.permute.xlu1 %1217 }
 0x503   : > { %v1224_v2 = vsel %vm1223_vm6, %v1222_v63, %v1218_v0 }
 0x504   : > { %v1225_v4 = vpack.c.bf16 %v1224_v2, %v1224_v2 }
 0x506   : > { %2469 = vmatmul.mubr.msk.bf16.vlgmr.msra.gmra.mrb[20].mxu1 %vm700_vm1, %v1225_v4 }
 0x507   : > { %2484 = vmatprep.mubr.msk.bf16.mxu1 %vm2657_vm0, %v2656_v1  ;;  %2481 = vmatpush3.bf16.msra.mxu1 %v2598_v19 }
 0x508   : > { %2482 = vmatprep.subr.bf16.mxu1 %v2656_v1 }
 0x50a   : > { %v1291_v5 = vpop.permute.xlu0 %1290 }
 0x5d9   : > { %v1275_v7 = vpop.f32.mrb[20].mxu1 }
 0x5da   : > { %v1293_v8 = vmul.f32 %v1291_v5, %v1275_v7  ;;  %v2470_v9 = vpop.f32.mrb[21].mxu1 }
 0x5db   : > { %v1278_v10 = vpop.f32.mrb[22].mxu1 }
 0x5dc   : > { %v2471_v11 = vpop.f32.mrb[23].mxu1  ;;  %v1294_v12 = vadd.f32 %v1293_v8, %v2811_v3  ;;  %v2599_v3 = vld [vmem:[%s3143_s7 + $0x8] sm:$0xff]  }
 0x5dd   : > { %2483 = vmatpush3.bf16.msra.mxu1 %v2599_v3 }
 0x5de   : > { %v1295_v13 = vsel %vm700_vm1, %v1294_v12, 0.0  ;;  %2494 = vmatprep.subr.bf16.mxu1 %v2656_v1 }
 0x5df   : > { %1296 = vadd.xlane.f32.xlu1 %v1295_v13 }
 0x5e0   : > { %2485 = vmatmul.mubr.msk.bf16.vlgmr.msra.gmra.mrb[24].mxu1 %vm700_vm1, %v1383_v22 }
 0x5e1   : > { %2496 = vmatprep.mubr.msk.bf16.mxu1 %vm2657_vm0, %v2656_v1 }
 0x66c   : > { %v1297_v14 = vpop.xlane.xlu1 %1296 }
 0x66d   : > { %v1299_v15 = vmul.f32 0.03125, %v1297_v14 }
 0x66f   : > { %v1300_v16 = vsub.f32 %v1294_v12, %v1299_v15 }
 0x671   : > { %v1301_v17 = vmul.f32 %v1300_v16, %v1300_v16 }
 0x673   : > { %v1302_v18 = vsel %vm700_vm1, %v1301_v17, 0.0 }
 0x674   : > { %1303 = vadd.xlane.f32.xlu0 %v1302_v18 }
 0x6b3   : > { %v1437_v34 = vpop.f32.mrb[24].mxu1 }
 0x6b4   : > { %v2486_v35 = vpop.f32.mrb[25].mxu1 }
 0x6b5   : > { %v1440_v36 = vpop.f32.mrb[26].mxu1 }
 0x6b6   : > { %v2972_v37 = vpack.c.bf16 %v1440_v36, %v1437_v34  ;;  %v2487_v38 = vpop.f32.mrb[27].mxu1 }
 0x6b8   : > { %1568 = vrot.lane.b32.xlu1 %v2972_v37, %s2658_s30  ;;  %v1456_v39 = vsel %vm754_vm2, %v2972_v37, 0 }
 0x6bc   : > { %1682 = vrot.lane.b32.xlu1 %v2972_v37, %s2663_s25 }
 0x701   : > { %v1304_v6 = vpop.xlane.xlu0 %1303 }
 0x702   : > { %v1305_v25 = vmul.f32 0.03125, %v1304_v6 }
 0x704   : > { %v1306_v26 = vadd.f32 1e-05, %v1305_v25 }
 0x706   : > { %2626 = vrsqrt.f32 %v1306_v26 }
 0x710   : > { %v2627_v27 = vpop.eup %2626 }
 0x711   : > { %v1308_v29 = vmul.f32 %v2627_v27, %v1300_v16 }
 0x713   : > { %v1315_v31 = vmul.f32 %v2317_v28, %v1308_v29 }
 0x715   : > { %v2965_v32 = vadd.f32 %v2318_v30, %v1315_v31 }
 0x717   : > { %v1323_v33 = vpack.c.bf16 %v2965_v32, %v2965_v32 }
 0x719   : > { %2477 = vmatmul.mubr.msk.bf16.vlgmr.msra.gmra.mrb[16].mxu0 %vm700_vm1, %v1323_v33 }
 0x71a   : > { %2490 = vmatprep.mubr.msk.bf16.mxu0 %vm2657_vm0, %v2656_v1  ;;  %2489 = vmatpush3.bf16.xpose.msra.mxu0 %v1456_v39 }
 0x71b   : > { %2500 = vmatprep.subr.bf16.mxu0 %v2656_v1 }
 0x72a   : > { %v1569_v43 = vpop.permute.xlu1 %1568 }
 0x72b   : > { %v1574_v45 = vsel %vm754_vm2, %v1569_v43, 0 }
 0x72e   : > { %v1683_v47 = vpop.permute.xlu1 %1682 }
 0x72f   : > { %v1688_v49 = vsel %vm754_vm2, %v1683_v47, 0 }
 0x7ec   : > { %v1377_v40 = vpop.f32.mrb[16].mxu0 }
 0x7ed   : > { %v1450_v41 = vpack.c.bf16 %v1377_v40, %v1377_v40  ;;  %v2478_v42 = vpop.f32.mrb[17].mxu0 }
 0x7ee   : > { %v1380_v44 = vpop.f32.mrb[18].mxu0 }
 0x7ef   : > { %1566 = vrot.lane.b32.xlu0 %v1450_v41, %s2658_s30  ;;  %v2479_v46 = vpop.f32.mrb[19].mxu0  ;;  %1680 = vrot.lane.b32.xlu1 %v1450_v41, %s2663_s25  ;;  %s3183_s25 = smov 16  }
 0x7f0   : > { %2491 = vmatmul.mubr.msk.bf16.vlgmr.msra.gmra.mrb[20].mxu0 %vm754_vm2, %v1450_v41 }
 0x7f1   : > { %2501 = vmatpush3.bf16.xpose.msra.mxu0 %v1574_v45  ;;  %2502 = vmatprep.mubr.msk.bf16.mxu0 %vm2657_vm0, %v2656_v1 }
 0x7f2   : > { %2512 = vmatprep.subr.bf16.mxu0 %v2656_v1 }
 0x7f3   : > { %1796 = vrot.lane.b32.xlu0 %v2972_v37, %s3176_s23  ;;  %1794 = vrot.lane.b32.xlu1 %v1450_v41, %s3176_s23 }
 0x861   : > { %v1567_v48 = vpop.permute.xlu0 %1566  ;;  %v1681_v51 = vpop.permute.xlu1 %1680 }
 0x862   : > { %2503 = vmatmul.mubr.msk.bf16.vlgmr.msra.gmra.mrb[24].mxu0 %vm754_vm2, %v1567_v48 }
 0x863   : > { %2513 = vmatpush3.bf16.xpose.msra.mxu0 %v1688_v49  ;;  %2514 = vmatprep.mubr.msk.bf16.mxu0 %vm2657_vm0, %v2656_v1 }
 0x864   : > { %2524 = vmatprep.subr.bf16.mxu0 %v2656_v1 }
 0x865   : > { %v1797_v50 = vpop.permute.xlu0 %1796  ;;  %v1795_v53 = vpop.permute.xlu1 %1794 }
 0x866   : > { %v1802_v52 = vsel %vm754_vm2, %v1797_v50, 0 }
 0x86a   : > { %2515 = vmatmul.mubr.msk.bf16.vlgmr.msra.gmra.mrb[28].mxu0 %vm754_vm2, %v1681_v51 }
 0x86b   : > { %2525 = vmatpush3.bf16.xpose.msra.mxu0 %v1802_v52  ;;  %2526 = vmatprep.mubr.msk.bf16.mxu0 %vm2657_vm0, %v2656_v1 }
 0x86c   : > { %2536 = vmatprep.subr.bf16.mxu0 %v2656_v1 }
 0x872   : > { %2527 = vmatmul.mubr.msk.bf16.vlgmr.msra.gmra.mrb[32].mxu0 %vm754_vm2, %v1795_v53 }
 0x873   : > { %2540 = vmatprep.mubr.msk.bf16.mxu0 %vm2657_vm0, %v2656_v1 }
 0x8c3   : > { %v1492_v56 = vpop.f32.mrb[20].mxu0 }
 0x8c4   : > { %v1498_v57 = vmul.f32 0.35355338, %v1492_v56  ;;  %v2492_v58 = vpop.f32.mrb[21].mxu0 }
 0x8c5   : > { %v1495_v59 = vpop.f32.mrb[22].mxu0 }
 0x8c6   : > { %v2493_v60 = vpop.f32.mrb[23].mxu0  ;;  %v1499_v61 = vsel %vm1449_vm7, -1e+30, %v1498_v57 }
 0x8c7   : > { %v1501_v62 = vsel %vm1500_vm8, %v1499_v61, -inf }
 0x8c8   : > { %1502 = vmax.xlane.f32.xlu0 %v1501_v62 }
 0x935   : > { %v1610_v63 = vpop.f32.mrb[24].mxu0 }
 0x936   : > { %v1616_v0 = vmul.f32 0.35355338, %v1610_v63  ;;  %v2504_v2 = vpop.f32.mrb[25].mxu0 }
 0x937   : > { %v1613_v4 = vpop.f32.mrb[26].mxu0 }
 0x938   : > { %v2505_v5 = vpop.f32.mrb[27].mxu0  ;;  %v1617_v7 = vsel %vm1449_vm7, -1e+30, %v1616_v0 }
 0x939   : > { %v1618_v8 = vsel %vm1500_vm8, %v1617_v7, -inf }
 0x93a   : > { %1619 = vmax.xlane.f32.xlu1 %v1618_v8 }
 0x93d   : > { %v1724_v9 = vpop.f32.mrb[28].mxu0 }
 0x93e   : > { %v1730_v10 = vmul.f32 0.35355338, %v1724_v9  ;;  %v2516_v11 = vpop.f32.mrb[29].mxu0 }
 0x93f   : > { %v1727_v12 = vpop.f32.mrb[30].mxu0 }
 0x940   : > { %v2517_v13 = vpop.f32.mrb[31].mxu0  ;;  %v1731_v14 = vsel %vm1449_vm7, -1e+30, %v1730_v10 }
 0x941   : > { %v1732_v15 = vsel %vm1500_vm8, %v1731_v14, -inf }
 0x942   : > { %1733 = vmax.xlane.f32.xlu0 %v1732_v15 }
 0x945   : > { %v1838_v16 = vpop.f32.mrb[32].mxu0 }
 0x946   : > { %v1844_v17 = vmul.f32 0.35355338, %v1838_v16  ;;  %v2528_v18 = vpop.f32.mrb[33].mxu0 }
 0x947   : > { %v1841_v19 = vpop.f32.mrb[34].mxu0  ;;  %v2602_v18 = vld [vmem:[%s3144_s8] sm:$0xff]  }
 0x948   : > { %v2529_v3 = vpop.f32.mrb[35].mxu0  ;;  %v1845_v20 = vsel %vm1449_vm7, -1e+30, %v1844_v17  ;;  %2537 = vmatpush3.bf16.msra.mxu0 %v2602_v18 }
 0x949   : > { %v1846_v21 = vsel %vm1500_vm8, %v1845_v20, -inf  ;;  %2538 = vmatprep.subr.bf16.mxu0 %v2656_v1 }
 0x94a   : > { %1847 = vmax.xlane.f32.xlu0 %v1846_v21 }
 0x955   : > { %v1503_v22 = vpop.xlane.xlu0 %1502 }
 0x956   : > { %v1504_v23 = vsub.f32 %v1499_v61, %v1503_v22  ;;  %v2603_v22 = vld [vmem:[%s3144_s8 + $0x8] sm:$0xff]  }
 0x957   : > { %2539 = vmatpush3.bf16.msra.mxu0 %v2603_v22 }
 0x958   : > { %v1505_v24 = vmul.f32 1.442695, %v1504_v23  ;;  %2552 = vmatprep.subr.bf16.mxu0 %v2656_v1 }
 0x95a   : > { %2628 = vpow2.f32 %v1505_v24  ;;  %v2673_v24 = vmov 1  }
 0x95b   : > { %2592 = vset.pattern.permute.xlu1 %v2673_v24 }
 0x964   : > { %v2629_v6 = vpop.eup %2628 }
 0x965   : > { %v1507_v25 = vsel %vm1449_vm7, 0.0, %v2629_v6 }
 0x966   : > { %v1508_v26 = vsel %vm1500_vm8, %v1507_v25, 0.0 }
 0x967   : > { %1509 = vadd.xlane.f32.xlu1 %v1508_v26 }
 0x978   : > { %1516 = vrot.lane.b32.xlu1 %v2972_v37, %s3178_s28 }
 0x9c7   : > { %v1620_v27 = vpop.xlane.xlu1 %1619 }
 0x9c8   : > { %v1621_v28 = vsub.f32 %v1617_v7, %v1620_v27 }
 0x9ca   : > { %v1622_v29 = vmul.f32 1.442695, %v1621_v28 }
 0x9cc   : > { %2630 = vpow2.f32 %v1622_v29 }
 0x9cf   : > { %v1734_v30 = vpop.xlane.xlu0 %1733 }
 0x9d0   : > { %v1735_v31 = vsub.f32 %v1731_v14, %v1734_v30 }
 0x9d2   : > { %v1736_v33 = vmul.f32 1.442695, %v1735_v31 }
 0x9d4   : > { %2632 = vpow2.f32 %v1736_v33 }
 0x9d6   : > { %v2631_v34 = vpop.eup %2630 }
 0x9d7   : > { %v1848_v35 = vpop.xlane.xlu0 %1847  ;;  %v1624_v36 = vsel %vm1449_vm7, 0.0, %v2631_v34 }
 0x9d8   : > { %v1849_v38 = vsub.f32 %v1845_v20, %v1848_v35  ;;  %v1625_v39 = vsel %vm1500_vm8, %v1624_v36, 0.0 }
 0x9d9   : > { %1626 = vadd.xlane.f32.xlu0 %v1625_v39 }
 0x9da   : > { %v1850_v40 = vmul.f32 1.442695, %v1849_v38 }
 0x9dc   : > { %2634 = vpow2.f32 %v1850_v40 }
 0x9de   : > { %v2633_v41 = vpop.eup %2632 }
 0x9df   : > { %v1738_v42 = vsel %vm1449_vm7, 0.0, %v2633_v41 }
 0x9e0   : > { %v1739_v43 = vsel %vm1500_vm8, %v1738_v42, 0.0 }
 0x9e1   : > { %1740 = vadd.xlane.f32.xlu1 %v1739_v43 }
 0x9e6   : > { %v2635_v44 = vpop.eup %2634 }
 0x9e7   : > { %v1852_v45 = vsel %vm1449_vm7, 0.0, %v2635_v44 }
 0x9e8   : > { %v1853_v46 = vsel %vm1500_vm8, %v1852_v45, 0.0 }
 0x9e9   : > { %1854 = vadd.xlane.f32.xlu0 %v1853_v46 }
 0x9f2   : > { %1746 = vrot.lane.b32.xlu1 %v2972_v37, %s3179_s22  ;;  %s678_s22 = scalar_lea.vmem %s3156_s20, %s2804_s26 }
 0x9f4   : > { %v1510_v47 = vpop.xlane.xlu1 %1509 }
 0x9f5   : > { %v1511_v48 = vmax.f32 %v1510_v47, 1e-09 }
 0x9f6   : > { %1860 = vrot.lane.b32.xlu1 %v2972_v37, %s3180_s0 }
 0x9f7   : > { %2636 = vrcp.f32 %v1511_v48 }
 0x9f8   : > { %v1517_v49 = vpop.permute.xlu1 %1516 }
 0x9f9   : > { %v1523_v50 = vsel %vm1521_vm9, %v1517_v49, 0 }
 0x9fa   : > { %2495 = vmatpush3.bf16.msra.mxu1 %v1523_v50 }
 0x9fb   : > { %2506 = vmatprep.subr.bf16.mxu1 %v2656_v1 }
 0x9ff   : > { %1632 = vrot.lane.b32.xlu0 %v2972_v37, %s3181_s21 }
 0xa01   : > { %v2637_v51 = vpop.eup %2636 }
 0xa02   : > { %v1513_v52 = vmul.f32 %v2637_v51, %v1507_v25 }
 0xa04   : > { %v1514_v53 = vpack.c.bf16 %v1513_v52, %v1513_v52 }
 0xa06   : > { %2497 = vmatmul.mubr.msk.bf16.vlgmr.msra.gmra.mrb[28].mxu1 %vm1500_vm8, %v1514_v53  ;;  %v2604_v53 = vld [vmem:[%s3145_s9] sm:$0xff]  }
 0xa07   : > { %2508 = vmatprep.mubr.msk.bf16.mxu1 %vm2657_vm0, %v2656_v1 }
 0xa66   : > { %v1627_v55 = vpop.xlane.xlu0 %1626 }
 0xa67   : > { %v1628_v56 = vmax.f32 %v1627_v55, 1e-09  ;;  %v2605_v55 = vld [vmem:[%s3145_s9 + $0x8] sm:$0xff]  }
 0xa69   : > { %2638 = vrcp.f32 %v1628_v56  ;;  %v2607_v56 = vld [vmem:[%s3147_s11 + $0x8] sm:$0xff]  }
 0xa6e   : > { %v1741_v57 = vpop.xlane.xlu1 %1740 }
 0xa6f   : > { %v1742_v58 = vmax.f32 %v1741_v57, 1e-09 }
 0xa71   : > { %2640 = vrcp.f32 %v1742_v58 }
 0xa72   : > { %v1747_v0 = vpop.permute.xlu1 %1746 }
 0xa73   : > { %v2639_v59 = vpop.eup %2638  ;;  %v1752_v5 = vsel %vm1521_vm9, %v1747_v0, 0 }
 0xa74   : > { %v1630_v62 = vmul.f32 %v2639_v59, %v1624_v36 }
 0xa76   : > { %v1855_v60 = vpop.xlane.xlu0 %1854  ;;  %v1631_v2 = vpack.c.bf16 %v1630_v62, %v1630_v62  ;;  %v1861_v8 = vpop.permute.xlu1 %1860 }
 0xa77   : > { %v1856_v61 = vmax.f32 %v1855_v60, 1e-09  ;;  %v1866_v11 = vsel %vm1521_vm9, %v1861_v8, 0  ;;  %v2338_v8 = vld [vmem:[%s3146_s10] ss:$0 sm:$0xff] }
 0xa79   : > { %2642 = vrcp.f32 %v1856_v61  ;;  %v2336_v61 = vld [vmem:[%s3151_s15] ss:$0 sm:$0xff] }
 0xa7a   : > { %v1633_v63 = vpop.permute.xlu0 %1632 }
 0xa7b   : > { %v1638_v37 = vsel %vm1521_vm9, %v1633_v63, 0  ;;  %v2641_v4 = vpop.eup %2640  ;;  %v2337_v63 = vld [vmem:[%s3152_s16] ss:$0 sm:$0xff] }
 0xa7c   : > { %2507 = vmatpush3.bf16.msra.mxu1 %v1638_v37  ;;  %v1744_v7 = vmul.f32 %v2641_v4, %v1738_v42  ;;  %v2608_v4 = vld [vmem:[%s3147_s11 + $0x10] sm:$0xff]  }
 0xa7d   : > { %2518 = vmatprep.subr.bf16.mxu1 %v2656_v1 }
 0xa7e   : > { %v1745_v9 = vpack.c.bf16 %v1744_v7, %v1744_v7  ;;  %v2674_v7 = vmov 2  }
 0xa7f   : > { %2509 = vmatmul.mubr.msk.bf16.vlgmr.msra.gmra.mrb[32].mxu1 %vm1500_vm8, %v1631_v2  ;;  %2593 = vset.pattern.permute.xlu0 %v2674_v7 }
 0xa80   : > { %2519 = vmatpush3.bf16.msra.mxu1 %v1752_v5  ;;  %2520 = vmatprep.mubr.msk.bf16.mxu1 %vm2657_vm0, %v2656_v1  ;;  %v2609_v5 = vld [vmem:[%s3147_s11 + $0x18] sm:$0xff]  }
 0xa81   : > { %2530 = vmatprep.subr.bf16.mxu1 %v2656_v1 }
 0xa83   : > { %v2643_v10 = vpop.eup %2642 }
 0xa84   : > { %v1858_v12 = vmul.f32 %v2643_v10, %v1852_v45 }
 0xa86   : > { %v1859_v13 = vpack.c.bf16 %v1858_v12, %v1858_v12 }
 0xa87   : > { %2521 = vmatmul.mubr.msk.bf16.vlgmr.msra.gmra.mrb[36].mxu1 %vm1500_vm8, %v1745_v9 }
 0xa88   : > { %2531 = vmatpush3.bf16.msra.mxu1 %v1866_v11  ;;  %2532 = vmatprep.mubr.msk.bf16.mxu1 %vm2657_vm0, %v2656_v1 }
 0xa89   : > { %2544 = vmatprep.subr.bf16.mxu1 %v2656_v1 }
 0xa8f   : > { %2533 = vmatmul.mubr.msk.bf16.vlgmr.msra.gmra.mrb[40].mxu1 %vm1500_vm8, %v1859_v13 }
 0xa90   : > { %2548 = vmatprep.mubr.msk.bf16.mxu1 %vm2657_vm0, %v2656_v1  ;;  %2545 = vmatpush3.bf16.msra.mxu1 %v2604_v53 }
 0xa91   : > { %2546 = vmatprep.subr.bf16.mxu1 %v2656_v1 }
 0xa94   : > { %2547 = vmatpush3.bf16.msra.mxu1 %v2605_v55 }
 0xad9   : > { %v1559_v14 = vpop.f32.mrb[28].mxu1 }
 0xada   : > { %v2498_v15 = vpop.f32.mrb[29].mxu1 }
 0xadb   : > { %v1562_v16 = vpop.f32.mrb[30].mxu1  ;;  %v2342_v15 = vld [vmem:[%s3148_s12] ss:$0 sm:$0xff] }
 0xadc   : > { %v2499_v17 = vpop.f32.mrb[31].mxu1 }
 0xb52   : > { %v1674_v19 = vpop.f32.mrb[32].mxu1 }
 0xb53   : > { %1909 = vrot.lane.b32.xlu0 %v1674_v19, %s3182_s27  ;;  %v2510_v3 = vpop.f32.mrb[33].mxu1 }
 0xb54   : > { %v1677_v20 = vpop.f32.mrb[34].mxu1 }
 0xb55   : > { %v2511_v21 = vpop.f32.mrb[35].mxu1 }
 0xb5a   : > { %v1788_v23 = vpop.f32.mrb[36].mxu1 }
 0xb5b   : > { %1913 = vrot.lane.b32.xlu1 %v1788_v23, %s3183_s25  ;;  %v2522_v6 = vpop.f32.mrb[37].mxu1 }
 0xb5c   : > { %v1791_v25 = vpop.f32.mrb[38].mxu1 }
 0xb5d   : > { %v2523_v26 = vpop.f32.mrb[39].mxu1 }
 0xb5f   : > { %1982 = vperm.xlu1 %2592, %v2923_v54  }
 0xb62   : > { %v1902_v27 = vpop.f32.mrb[40].mxu1 }
 0xb63   : > { %1917 = vrot.lane.b32.xlu0 %v1902_v27, %s3184_s4  ;;  %v2534_v28 = vpop.f32.mrb[41].mxu1 }
 0xb64   : > { %v1905_v29 = vpop.f32.mrb[42].mxu1 }
 0xb65   : > { %v2535_v30 = vpop.f32.mrb[43].mxu1 }
 0xbc5   : > { %v1910_v31 = vpop.permute.xlu0 %1909 }
 0xbc6   : > { %v1920_v34 = vsel %vm754_vm2, %v1559_v14, %v1910_v31  ;;  %v2348_v31 = vld [vmem:[%s3153_s17] ss:$0 sm:$0xff] }
 0xbcd   : > { %v1914_v33 = vpop.permute.xlu1 %1913 }
 0xbce   : > { %v1921_v35 = vsel %vm1221_vm5, %v1920_v34, %v1914_v33  ;;  %v2349_v34 = vld [vmem:[%s3154_s18] ss:$0 sm:$0xff] }
 0xbd5   : > { %v1918_v36 = vpop.permute.xlu0 %1917 }
 0xbd6   : > { %v1922_v38 = vsel %vm1223_vm6, %v1921_v35, %v1918_v36 }
 0xbd7   : > { %v1923_v39 = vpack.c.bf16 %v1922_v38, %v1922_v38 }
 0xbd9   : > { %2541 = vmatmul.mubr.msk.bf16.vlgmr.msra.gmra.mrb[36].mxu0 %vm700_vm1, %v1923_v39 }
 0xbda   : > { %2560 = vmatprep.mubr.msk.bf16.mxu0 %vm2657_vm0, %v2656_v1 }
 0xbde   : > { %v1983_v40 = vpop.permute.xlu1 %1982 }
 0xcac   : > { %v1973_v41 = vpop.f32.mrb[36].mxu0 }
 0xcad   : > { %v1985_v42 = vmul.f32 %v1983_v40, %v1973_v41  ;;  %v2542_v43 = vpop.f32.mrb[37].mxu0 }
 0xcae   : > { %v1976_v44 = vpop.f32.mrb[38].mxu0 }
 0xcaf   : > { %v2543_v45 = vpop.f32.mrb[39].mxu0  ;;  %v1986_v46 = vadd.f32 %v1985_v42, %v2965_v32  ;;  %v2606_v32 = vld [vmem:[%s3147_s11] sm:$0xff]  }
 0xcb0   : > { %2553 = vmatpush3.bf16.msra.mxu0 %v2606_v32 }
 0xcb1   : > { %v1987_v47 = vsel %vm700_vm1, %v1986_v46, 0.0  ;;  %2554 = vmatprep.subr.bf16.mxu0 %v2656_v1 }
 0xcb2   : > { %1988 = vadd.xlane.f32.xlu0 %v1987_v47 }
 0xcb4   : > { %2555 = vmatpush3.bf16.msra.mxu0 %v2607_v56 }
 0xcb5   : > { %2556 = vmatprep.subr.bf16.mxu0 %v2656_v1 }
 0xcb8   : > { %2557 = vmatpush3.bf16.msra.mxu0 %v2608_v4 }
 0xcb9   : > { %2558 = vmatprep.subr.bf16.mxu0 %v2656_v1 }
 0xcbc   : > { %2559 = vmatpush3.bf16.msra.mxu0 %v2609_v5 }
 0xcc8   : > { %2169 = vperm.xlu0 %2593, %v2923_v54  }
 0xd3f   : > { %v1989_v48 = vpop.xlane.xlu0 %1988 }
 0xd40   : > { %v1990_v49 = vmul.f32 0.03125, %v1989_v48 }
 0xd42   : > { %v1991_v50 = vsub.f32 %v1986_v46, %v1990_v49 }
 0xd44   : > { %v1992_v51 = vmul.f32 %v1991_v50, %v1991_v50 }
 0xd46   : > { %v1993_v52 = vsel %vm700_vm1, %v1992_v51, 0.0 }
 0xd47   : > { %1994 = vadd.xlane.f32.xlu1 %v1993_v52  ;;  %v2170_v17 = vpop.permute.xlu0 %2169 }
 0xdd4   : > { %v1995_v57 = vpop.xlane.xlu1 %1994 }
 0xdd5   : > { %v1996_v58 = vmul.f32 0.03125, %v1995_v57 }
 0xdd7   : > { %v1997_v59 = vadd.f32 1e-05, %v1996_v58 }
 0xdd9   : > { %2644 = vrsqrt.f32 %v1997_v59 }
 0xde3   : > { %v2645_v60 = vpop.eup %2644 }
 0xde4   : > { %v1999_v62 = vmul.f32 %v2645_v60, %v1991_v50 }
 0xde6   : > { %v2006_v37 = vmul.f32 %v2336_v61, %v1999_v62 }
 0xde8   : > { %v2013_v0 = vadd.f32 %v2337_v63, %v2006_v37 }
 0xdea   : > { %v2028_v2 = vpack.c.bf16 %v2013_v0, %v2013_v0 }
 0xdec   : > { %2549 = vmatmul.mubr.msk.bf16.vlgmr.msra.gmra.mrb[44].mxu1 %vm700_vm1, %v2028_v2 }
 0xebf   : > { %v2084_v9 = vpop.f32.mrb[44].mxu1 }
 0xec0   : > { %v2085_v10 = vadd.f32 %v2338_v8, %v2084_v9  ;;  %v2550_v11 = vpop.f32.mrb[45].mxu1 }
 0xec1   : > { %v2087_v12 = vpop.f32.mrb[46].mxu1 }
 0xec2   : > { %v2090_v13 = vmax.f32 %v2085_v10, 0.0  ;;  %v2551_v14 = vpop.f32.mrb[47].mxu1 }
 0xec4   : > { %v2091_v1 = vpack.c.bf16 %v2090_v13, %v2090_v13 }
 0xec6   : > { %2561 = vmatmul.mubr.msk.bf16.vlgmr.msra.gmra.mrb[40].mxu0 %vm2122_vm10, %v2091_v1 }
 0xf99   : > { %v2160_v16 = vpop.f32.mrb[40].mxu0 }
 0xf9a   : > { %v2161_v54 = vadd.f32 %v2342_v15, %v2160_v16  ;;  %v2562_v18 = vpop.f32.mrb[41].mxu0 }
 0xf9b   : > { %v2163_v19 = vpop.f32.mrb[42].mxu0 }
 0xf9c   : > { %v2172_v3 = vmul.f32 %v2170_v17, %v2161_v54  ;;  %v2563_v20 = vpop.f32.mrb[43].mxu0 }
 0xf9e   : > { %v2173_v21 = vadd.f32 %v2172_v3, %v2013_v0 }
 0xfa0   : > { %v2174_v22 = vsel %vm700_vm1, %v2173_v21, 0.0 }
 0xfa1   : > { %2175 = vadd.xlane.f32.xlu1 %v2174_v22 }
0x102e   : > { %v2176_v23 = vpop.xlane.xlu1 %2175 }
0x102f   : > { %v2177_v24 = vmul.f32 0.03125, %v2176_v23 }
0x1031   : > { %v2178_v6 = vsub.f32 %v2173_v21, %v2177_v24 }
0x1033   : > { %v2179_v25 = vmul.f32 %v2178_v6, %v2178_v6 }
0x1035   : > { %v2180_v26 = vsel %vm700_vm1, %v2179_v25, 0.0 }
0x1036   : > { %2181 = vadd.xlane.f32.xlu1 %v2180_v26 }
0x10c3   : > { %v2182_v27 = vpop.xlane.xlu1 %2181 }
0x10c4   : > { %v2183_v28 = vmul.f32 0.03125, %v2182_v27 }
0x10c6   : > { %v2184_v29 = vadd.f32 1e-05, %v2183_v28 }
0x10c8   : > { %2646 = vrsqrt.f32 %v2184_v29 }
0x10d2   : > { %v2647_v30 = vpop.eup %2646 }
0x10d3   : > { %v2186_v33 = vmul.f32 %v2647_v30, %v2178_v6 }
0x10d5   : > { %v2193_v35 = vmul.f32 %v2348_v31, %v2186_v33 }
0x10d7   : > { %v2200_v36 = vadd.f32 %v2349_v34, %v2193_v35 }
0x10d9   : > { %2201 = vst.msk [vmem:[%s678_s22] sm:$0xff] %vm700_vm1, %v2200_v36 }
0x10da PF: > { %s30_s1 = sadd.s32 1, %s2654_s1  }
0x10db   : > { %p27_p4 = scmp.ge.s32.totalorder %s30_s1, 4  }
0x10dd   :  { %29 = sbr.rel (!%p27_p4) target bundleno = 6 (0x6), region = 139 }

</bundles_post_ra>
